<compile_context>
chip_gen: v7x
topology: tpu7x:2x2x1
jax: 0.10.0
libtpu: 0.0.40
codegen_flags: <defaults>
</compile_context>

<pallas_src>
import functools
import math

import jax
import jax.numpy as jnp
from jax import lax
from jax.experimental import pallas as pl
from jax.experimental.pallas import tpu as pltpu


def mha_kernel(x_ref, wqkv_ref, bqkv_ref, o_ref, qkv_ref, *,
               num_heads, head_dim, q_tile, seq_len):
    H, Hd = num_heads, head_dim
    HHd = H * Hd
    qi = pl.program_id(1)
    cdtype = qkv_ref.dtype                       # compute dtype (input dtype)

    # ---- Once per batch element: fused QKV projection of the full sequence.
    # Chunked over rows with a fori_loop so the f32 pre-cast intermediate is
    # bounded to (q_tile, 3*H*Hd); the scratch is stored already cast to the
    # compute dtype (halves the resident slab for bf16 inputs).
    @pl.when(qi == 0)
    def _():
        n_chunks = seq_len // q_tile

        def proj(r, carry):
            row = pl.multiple_of(r * q_tile, q_tile)
            xb = x_ref[0, pl.ds(row, q_tile), :]                      # (tq, D)
            blk = jnp.dot(xb, wqkv_ref[...],
                          preferred_element_type=jnp.float32)
            blk = blk + bqkv_ref[...]                                 # (tq, 3*H*Hd) f32
            qkv_ref[pl.ds(row, q_tile), :] = blk.astype(cdtype)
            return carry

        lax.fori_loop(0, n_chunks, proj, None)

    # ---- Per query tile: exact softmax attention against the full (resident)
    # K/V of this batch element.  Scores are (tq, S), never (S, S).
    row0 = pl.multiple_of(qi * q_tile, q_tile)
    use_lp_exp = jnp.dtype(cdtype) == jnp.dtype(jnp.bfloat16)

    for h in range(H):                            # static lane-aligned slices
        q = qkv_ref[pl.ds(row0, q_tile), h * Hd:(h + 1) * Hd]          # (tq, Hd)
        k = qkv_ref[:, HHd + h * Hd:HHd + (h + 1) * Hd]                # (S, Hd)
        v = qkv_ref[:, 2 * HHd + h * Hd:2 * HHd + (h + 1) * Hd]        # (S, Hd)

        # QK^T: contract last dims of both operands (no explicit transpose).
        # Note: 1/sqrt(Hd) is already folded into the Q projection weights.
        s = lax.dot_general(q, k, (((1,), (1,)), ((), ())),
                            preferred_element_type=jnp.float32)        # (tq, S) f32

        m = jnp.max(s, axis=-1, keepdims=True)                         # f32
        z = s - m                                                      # f32
        if use_lp_exp:
            # bf16 exp roughly doubles EUP throughput on v6e/v7x; on v5e the
            # compiler upcasts (no bf16 EUP) so this is still correct.
            z = z.astype(jnp.bfloat16)
        p = jnp.exp(z)
        l = jnp.sum(p.astype(jnp.float32), axis=-1, keepdims=True)     # (tq, 1) f32

        o = jnp.dot(p.astype(cdtype), v,
                    preferred_element_type=jnp.float32)                # (tq, Hd) f32
        # Approximate EUP reciprocal: fine for inference; use the exact
        # reciprocal if this ever feeds training / logit-sensitive math.
        o = o * pl.reciprocal(l, approx=True)

        # Direct lane-dense store of this head's slice (unmasked vst when Hd
        # is a multiple of 128); nothing accumulated across the head loop.
        o_ref[0, :, h * Hd:(h + 1) * Hd] = o.astype(o_ref.dtype)


def fuse_qkv_params(wq, wk, wv, bq, bk, bv, *, head_dim, compute_dtype):
    """Fuse the three nn.Linear params (out, in)/(out,) into (D, 3*H*Hd)/(1, 3*H*Hd).

    Done ONCE at init (hoisted out of the per-call path).  The 1/sqrt(Hd)
    attention scale is folded into the Q third here, in f32, before the single
    cast to the compute dtype.
    """
    scale = 1.0 / math.sqrt(head_dim)
    wqkv = jnp.concatenate([wq.T * scale, wk.T, wv.T], axis=1).astype(compute_dtype)
    bqkv = jnp.concatenate([bq * scale, bk, bv]).reshape(1, -1).astype(jnp.float32)
    return wqkv, bqkv


def _pick_q_tile(seq_len, target=256):
    """Largest multiple of 8 <= target dividing seq_len (else one full tile)."""
    if seq_len <= target:
        return seq_len
    for t in range(target, 7, -8):
        if seq_len % t == 0:
            return t
    return seq_len  # fallback: single (possibly large) query tile


def _default_vmem_limit(seq_len, d_model, hhd, q_tile, dtype):
    isz = jnp.dtype(dtype).itemsize
    est = (2 * seq_len * d_model * isz        # x tile (double-buffered)
           + 2 * d_model * 3 * hhd * isz      # fused W_qkv (worst case 2 bufs)
           + 2 * 3 * hhd * 4                  # fused bias
           + 2 * q_tile * hhd * isz           # output tile (double-buffered)
           + seq_len * 3 * hhd * isz          # persistent qkv scratch
           + q_tile * 3 * hhd * 4             # f32 projection chunk pre-cast
           + 3 * q_tile * seq_len * 4         # live (tq, S) f32 score tiles
           + q_tile * hhd * 4)                # per-head f32 output in flight
    est = int(est * 1.25) + (4 << 20)         # headroom for compiler temps
    try:
        cap = int(pltpu.get_tpu_info().vmem_capacity_bytes * 0.85)
    except Exception:
        cap = 100 << 20
    return max(32 << 20, min(est, cap))


def _mha_call(x, wqkv, bqkv, *, num_heads, head_dim, q_tile,
              single_buffer_weights):
    B, S, D = x.shape
    H, Hd = num_heads, head_dim
    HHd = H * Hd
    assert wqkv.shape == (D, 3 * HHd) and bqkv.shape == (1, 3 * HHd)

    tq = min(q_tile, S) if q_tile is not None else _pick_q_tile(S)
    assert S % tq == 0 and (tq == S or tq % 8 == 0), (S, tq)
    n_qt = S // tq

    vmem_limit = _default_vmem_limit(S, D, HHd, tq, x.dtype)

    kernel = functools.partial(mha_kernel, num_heads=H, head_dim=Hd,
                               q_tile=tq, seq_len=S)

    # Constant-index weight/bias blocks: request single buffering to reclaim a
    # full weight buffer of VMEM (fall back handled by the caller).
    w_extra = {"pipeline_mode": pl.Buffered(1)} if single_buffer_weights else {}

    grid_spec = pltpu.PrefetchScalarGridSpec(
        num_scalar_prefetch=0,
        grid=(B, n_qt),
        in_specs=[
            pl.BlockSpec((1, S, D), lambda b, qi: (b, 0, 0)),            # x (per batch)
            pl.BlockSpec((D, 3 * HHd), lambda b, qi: (0, 0), **w_extra),  # fused W_qkv
            pl.BlockSpec((1, 3 * HHd), lambda b, qi: (0, 0), **w_extra),  # fused bias
        ],
        out_specs=pl.BlockSpec((1, tq, HHd), lambda b, qi: (b, qi, 0)),   # lane-dense out
        scratch_shapes=[pltpu.VMEM((S, 3 * HHd), x.dtype)],               # persistent QKV
    )

    return pl.pallas_call(
        kernel,
        out_shape=jax.ShapeDtypeStruct((B, S, HHd), x.dtype),
        grid_spec=grid_spec,
        compiler_params=pltpu.CompilerParams(
            dimension_semantics=("parallel", "arbitrary"),
            vmem_limit_bytes=int(vmem_limit)),
    )(x, wqkv, bqkv)


def mha_forward(x, wqkv, bqkv, *, num_heads, head_dim, q_tile=None):
    """x: (B, S, D); wqkv: (D, 3*H*Hd); bqkv: (1, 3*H*Hd)  ->  (B, S, H*Hd)."""
    try:
        return _mha_call(x, wqkv, bqkv, num_heads=num_heads, head_dim=head_dim,
                         q_tile=q_tile, single_buffer_weights=True)
    except Exception:
        # pipeline_mode=pl.Buffered(1) not supported by this pallas_call
        # pipeliner: fall back to default (double-buffered) weight specs.
        return _mha_call(x, wqkv, bqkv, num_heads=num_heads, head_dim=head_dim,
                         q_tile=q_tile, single_buffer_weights=False)


def mha_reference(x, wq, wk, wv, bq, bk, bv, *, num_heads, head_dim):
    B, S, D = x.shape
    H, Hd = num_heads, head_dim
    q = (x @ wq.T + bq).reshape(B, S, H, Hd).transpose(0, 2, 1, 3)
    k = (x @ wk.T + bk).reshape(B, S, H, Hd).transpose(0, 2, 1, 3)
    v = (x @ wv.T + bv).reshape(B, S, H, Hd).transpose(0, 2, 1, 3)
    s = jnp.einsum("bhqd,bhkd->bhqk", q, k) / math.sqrt(Hd)
    p = jax.nn.softmax(s, axis=-1)
    o = jnp.einsum("bhqk,bhkd->bhqd", p, v)
    return o.transpose(0, 2, 1, 3).reshape(B, S, H * Hd)


if __name__ == "__main__":
    # Small shapes consistent with the module (scaled-down MHA(d_model=512,
    # head_dim=128, num_heads=8)).  head_dim=128 keeps per-head slices and the
    # output slab lane-aligned (H*Hd multiple of 128, no masked stores).
    B, S = 2, 16
    d_model, head_dim, num_heads = 128, 128, 4

    key = jax.random.PRNGKey(0)
    kx, kq, kk, kv, kbq, kbk, kbv = jax.random.split(key, 7)

    x = jax.random.normal(kx, (B, S, d_model), dtype=jnp.float32)
    # nn.Linear weight layout: (out_features, in_features)
    wq = jax.random.normal(kq, (num_heads * head_dim, d_model), jnp.float32) * 0.05
    wk = jax.random.normal(kk, (num_heads * head_dim, d_model), jnp.float32) * 0.05
    wv = jax.random.normal(kv, (num_heads * head_dim, d_model), jnp.float32) * 0.05
    bq = jax.random.normal(kbq, (num_heads * head_dim,), jnp.float32) * 0.05
    bk = jax.random.normal(kbk, (num_heads * head_dim,), jnp.float32) * 0.05
    bv = jax.random.normal(kbv, (num_heads * head_dim,), jnp.float32) * 0.05

    # Fuse/scale the projection params ONCE (init-time, not per forward call).
    wqkv, bqkv = fuse_qkv_params(wq, wk, wv, bq, bk, bv,
                                 head_dim=head_dim, compute_dtype=x.dtype)

    # q_tile=8 (< S) so the query-tile grid axis, the scratch carry across it
    # and the chunked projection fori_loop are all exercised at this test size.
    out = mha_forward(x, wqkv, bqkv, num_heads=num_heads, head_dim=head_dim,
                      q_tile=8)
    out = jax.block_until_ready(out)

    ref = mha_reference(x, wq, wk, wv, bq, bk, bv,
                        num_heads=num_heads, head_dim=head_dim)
    assert out.shape == (B, S, num_heads * head_dim)
    # Tolerance accommodates the approximate (EUP) reciprocal used for the
    # softmax normalization.
    assert jnp.allclose(out, ref, atol=1e-2, rtol=1e-2), float(
        jnp.max(jnp.abs(out - ref)))

    print("KERNEL_OK")
</pallas_src>

<mosaic_0001>
module attributes {stable_mosaic.version = 11 : i64} {
  func.func @mha_kernel(%arg0: i32, %arg1: i32, %arg2: memref<1x16x128xf32, #tpu.memory_space<vmem>>, %arg3: memref<128x1536xf32, #tpu.memory_space<vmem>>, %arg4: memref<1x1536xf32, #tpu.memory_space<vmem>>, %arg5: memref<1x8x512xf32, #tpu.memory_space<vmem>>, %arg6: memref<16x1536xf32, #tpu.memory_space<vmem>>) attributes {dimension_semantics = [#tpu.dimension_semantics<parallel>, #tpu.dimension_semantics<arbitrary>], iteration_bounds = array<i64: 2, 2>, scalar_prefetch = 0 : i64, scratch_operands = 1 : i64, tpu.core_type = #tpu.core_type<tc>, window_params = [{transform_indices = @transform_0, window_bounds = array<i64: 1, 16, 128>}, {pipeline_mode = #tpu.pipeline_mode<synchronous>, transform_indices = @transform_1, window_bounds = array<i64: 128, 1536>}, {pipeline_mode = #tpu.pipeline_mode<synchronous>, transform_indices = @transform_2, window_bounds = array<i64: 1, 1536>}, {transform_indices = @transform_3, window_bounds = array<i64: 1, 8, 512>}]} {
    %c0_i32 = arith.constant 0 : i32
    %0 = arith.cmpi eq, %arg1, %c0_i32 : i32
    %1 = arith.extui %0 : i1 to i32
    %c0_i32_0 = arith.constant 0 : i32
    %2 = arith.cmpi ne, %1, %c0_i32_0 : i32
    scf.if %2 {
      %c0_i32_36 = arith.constant 0 : i32
      %c2_i32 = arith.constant 2 : i32
      %81 = arith.addi %c0_i32_36, %c2_i32 : i32
      %c1_i32 = arith.constant 1 : i32
      scf.for %arg7 = %c0_i32_36 to %81 step %c1_i32  : i32 {
        %c8_i32_38 = arith.constant 8 : i32
        %82 = arith.muli %arg7, %c8_i32_38 : i32
        %83 = tpu.assume_multiple %82, 8 : i32
        %c0_39 = arith.constant 0 : index
        %84 = arith.index_cast %83 : i32 to index
        %c0_40 = arith.constant 0 : index
        %85 = vector.load %arg2[%c0_39, %84, %c0_40] : memref<1x16x128xf32, #tpu.memory_space<vmem>>, vector<1x8x128xf32>
        %86 = vector.shape_cast %85 : vector<1x8x128xf32> to vector<8x128xf32>
        %c0_41 = arith.constant 0 : index
        %c0_42 = arith.constant 0 : index
        %87 = vector.load %arg3[%c0_41, %c0_42] : memref<128x1536xf32, #tpu.memory_space<vmem>>, vector<128x1536xf32>
        %cst_43 = arith.constant dense<0.000000e+00> : vector<8x1536xf32>
        %88 = tpu.matmul %86, %87, %cst_43 {dimension_numbers = #tpu.dot_dimension_numbers<[1], [0], [0], [1], [0, 0, 1, 1], [], []>} : vector<8x128xf32>, vector<128x1536xf32>, vector<8x1536xf32> -> vector<8x1536xf32>
        %c0_44 = arith.constant 0 : index
        %c0_45 = arith.constant 0 : index
        %89 = vector.load %arg4[%c0_44, %c0_45] : memref<1x1536xf32, #tpu.memory_space<vmem>>, vector<1x1536xf32>
        %90 = vector.broadcast %89 : vector<1x1536xf32> to vector<8x1536xf32>
        %91 = arith.addf %88, %90 : vector<8x1536xf32>
        %92 = arith.index_cast %83 : i32 to index
        %c0_46 = arith.constant 0 : index
        %93 = vector.load %arg6[%92, %c0_46] : memref<16x1536xf32, #tpu.memory_space<vmem>>, vector<8x1536xf32>
        tpu.vector_store %arg6[%92, %c0_46], %91 {strides = array<i32>} : memref<16x1536xf32, #tpu.memory_space<vmem>>, vector<8x1536xf32>,
      }
      %c2_i32_37 = arith.constant 2 : i32
    } else {
    }
    %c8_i32 = arith.constant 8 : i32
    %3 = arith.muli %arg1, %c8_i32 : i32
    %4 = tpu.assume_multiple %3, 8 : i32
    %5 = arith.index_cast %4 : i32 to index
    %c0 = arith.constant 0 : index
    %6 = vector.load %arg6[%5, %c0] : memref<16x1536xf32, #tpu.memory_space<vmem>>, vector<8x128xf32>
    %c0_1 = arith.constant 0 : index
    %c512 = arith.constant 512 : index
    %7 = vector.load %arg6[%c0_1, %c512] : memref<16x1536xf32, #tpu.memory_space<vmem>>, vector<16x128xf32>
    %c0_2 = arith.constant 0 : index
    %c1024 = arith.constant 1024 : index
    %8 = vector.load %arg6[%c0_2, %c1024] : memref<16x1536xf32, #tpu.memory_space<vmem>>, vector<16x128xf32>
    %cst = arith.constant dense<0.000000e+00> : vector<8x16xf32>
    %9 = tpu.matmul %6, %7, %cst {dimension_numbers = #tpu.dot_dimension_numbers<[1], [1], [0], [0], [0, 0, 1, 0], [], []>} : vector<8x128xf32>, vector<16x128xf32>, vector<8x16xf32> -> vector<8x16xf32>
    %cst_3 = arith.constant dense<0xFF800000> : vector<8xf32>
    %10 = vector.multi_reduction <maximumf>, %9, %cst_3 [1] : vector<8x16xf32> to vector<8xf32>
    %11 = vector.shape_cast %10 : vector<8xf32> to vector<8x1xf32>
    %12 = vector.broadcast %11 : vector<8x1xf32> to vector<8x16xf32>
    %13 = arith.subf %9, %12 : vector<8x16xf32>
    %14 = math.exp %13 : vector<8x16xf32>
    %cst_4 = arith.constant dense<0.000000e+00> : vector<8xf32>
    %15 = vector.multi_reduction <add>, %14, %cst_4 [1] : vector<8x16xf32> to vector<8xf32>
    %16 = vector.shape_cast %15 : vector<8xf32> to vector<8x1xf32>
    %cst_5 = arith.constant dense<0.000000e+00> : vector<8x128xf32>
    %17 = tpu.matmul %14, %8, %cst_5 {dimension_numbers = #tpu.dot_dimension_numbers<[1], [0], [0], [1], [0, 0, 1, 1], [], []>} : vector<8x16xf32>, vector<16x128xf32>, vector<8x128xf32> -> vector<8x128xf32>
    %18 = tpu.reciprocal %16 {approx = true} : vector<8x1xf32> -> vector<8x1xf32>
    %19 = vector.broadcast %18 : vector<8x1xf32> to vector<8x128xf32>
    %20 = arith.mulf %17, %19 : vector<8x128xf32>
    %c0_6 = arith.constant 0 : index
    %c0_7 = arith.constant 0 : index
    %c0_8 = arith.constant 0 : index
    %21 = vector.load %arg5[%c0_6, %c0_7, %c0_8] : memref<1x8x512xf32, #tpu.memory_space<vmem>>, vector<1x8x128xf32>
    %22 = vector.shape_cast %21 : vector<1x8x128xf32> to vector<8x128xf32>
    %23 = vector.shape_cast %20 : vector<8x128xf32> to vector<1x8x128xf32>
    tpu.vector_store %arg5[%c0_6, %c0_7, %c0_8], %23 {strides = array<i32>} : memref<1x8x512xf32, #tpu.memory_space<vmem>>, vector<1x8x128xf32>,
    %24 = arith.index_cast %4 : i32 to index
    %c128 = arith.constant 128 : index
    %25 = vector.load %arg6[%24, %c128] : memref<16x1536xf32, #tpu.memory_space<vmem>>, vector<8x128xf32>
    %c0_9 = arith.constant 0 : index
    %c640 = arith.constant 640 : index
    %26 = vector.load %arg6[%c0_9, %c640] : memref<16x1536xf32, #tpu.memory_space<vmem>>, vector<16x128xf32>
    %c0_10 = arith.constant 0 : index
    %c1152 = arith.constant 1152 : index
    %27 = vector.load %arg6[%c0_10, %c1152] : memref<16x1536xf32, #tpu.memory_space<vmem>>, vector<16x128xf32>
    %cst_11 = arith.constant dense<0.000000e+00> : vector<8x16xf32>
    %28 = tpu.matmul %25, %26, %cst_11 {dimension_numbers = #tpu.dot_dimension_numbers<[1], [1], [0], [0], [0, 0, 1, 0], [], []>} : vector<8x128xf32>, vector<16x128xf32>, vector<8x16xf32> -> vector<8x16xf32>
    %cst_12 = arith.constant dense<0xFF800000> : vector<8xf32>
    %29 = vector.multi_reduction <maximumf>, %28, %cst_12 [1] : vector<8x16xf32> to vector<8xf32>
    %30 = vector.shape_cast %29 : vector<8xf32> to vector<8x1xf32>
    %31 = vector.broadcast %30 : vector<8x1xf32> to vector<8x16xf32>
    %32 = arith.subf %28, %31 : vector<8x16xf32>
    %33 = math.exp %32 : vector<8x16xf32>
    %cst_13 = arith.constant dense<0.000000e+00> : vector<8xf32>
    %34 = vector.multi_reduction <add>, %33, %cst_13 [1] : vector<8x16xf32> to vector<8xf32>
    %35 = vector.shape_cast %34 : vector<8xf32> to vector<8x1xf32>
    %cst_14 = arith.constant dense<0.000000e+00> : vector<8x128xf32>
    %36 = tpu.matmul %33, %27, %cst_14 {dimension_numbers = #tpu.dot_dimension_numbers<[1], [0], [0], [1], [0, 0, 1, 1], [], []>} : vector<8x16xf32>, vector<16x128xf32>, vector<8x128xf32> -> vector<8x128xf32>
    %37 = tpu.reciprocal %35 {approx = true} : vector<8x1xf32> -> vector<8x1xf32>
    %38 = vector.broadcast %37 : vector<8x1xf32> to vector<8x128xf32>
    %39 = arith.mulf %36, %38 : vector<8x128xf32>
    %c0_15 = arith.constant 0 : index
    %c0_16 = arith.constant 0 : index
    %c128_17 = arith.constant 128 : index
    %40 = vector.load %arg5[%c0_15, %c0_16, %c128_17] : memref<1x8x512xf32, #tpu.memory_space<vmem>>, vector<1x8x128xf32>
    %41 = vector.shape_cast %40 : vector<1x8x128xf32> to vector<8x128xf32>
    %42 = vector.shape_cast %39 : vector<8x128xf32> to vector<1x8x128xf32>
    tpu.vector_store %arg5[%c0_15, %c0_16, %c128_17], %42 {strides = array<i32>} : memref<1x8x512xf32, #tpu.memory_space<vmem>>, vector<1x8x128xf32>,
    %43 = arith.index_cast %4 : i32 to index
    %c256 = arith.constant 256 : index
    %44 = vector.load %arg6[%43, %c256] : memref<16x1536xf32, #tpu.memory_space<vmem>>, vector<8x128xf32>
    %c0_18 = arith.constant 0 : index
    %c768 = arith.constant 768 : index
    %45 = vector.load %arg6[%c0_18, %c768] : memref<16x1536xf32, #tpu.memory_space<vmem>>, vector<16x128xf32>
    %c0_19 = arith.constant 0 : index
    %c1280 = arith.constant 1280 : index
    %46 = vector.load %arg6[%c0_19, %c1280] : memref<16x1536xf32, #tpu.memory_space<vmem>>, vector<16x128xf32>
    %cst_20 = arith.constant dense<0.000000e+00> : vector<8x16xf32>
    %47 = tpu.matmul %44, %45, %cst_20 {dimension_numbers = #tpu.dot_dimension_numbers<[1], [1], [0], [0], [0, 0, 1, 0], [], []>} : vector<8x128xf32>, vector<16x128xf32>, vector<8x16xf32> -> vector<8x16xf32>
    %cst_21 = arith.constant dense<0xFF800000> : vector<8xf32>
    %48 = vector.multi_reduction <maximumf>, %47, %cst_21 [1] : vector<8x16xf32> to vector<8xf32>
    %49 = vector.shape_cast %48 : vector<8xf32> to vector<8x1xf32>
    %50 = vector.broadcast %49 : vector<8x1xf32> to vector<8x16xf32>
    %51 = arith.subf %47, %50 : vector<8x16xf32>
    %52 = math.exp %51 : vector<8x16xf32>
    %cst_22 = arith.constant dense<0.000000e+00> : vector<8xf32>
    %53 = vector.multi_reduction <add>, %52, %cst_22 [1] : vector<8x16xf32> to vector<8xf32>
    %54 = vector.shape_cast %53 : vector<8xf32> to vector<8x1xf32>
    %cst_23 = arith.constant dense<0.000000e+00> : vector<8x128xf32>
    %55 = tpu.matmul %52, %46, %cst_23 {dimension_numbers = #tpu.dot_dimension_numbers<[1], [0], [0], [1], [0, 0, 1, 1], [], []>} : vector<8x16xf32>, vector<16x128xf32>, vector<8x128xf32> -> vector<8x128xf32>
    %56 = tpu.reciprocal %54 {approx = true} : vector<8x1xf32> -> vector<8x1xf32>
    %57 = vector.broadcast %56 : vector<8x1xf32> to vector<8x128xf32>
    %58 = arith.mulf %55, %57 : vector<8x128xf32>
    %c0_24 = arith.constant 0 : index
    %c0_25 = arith.constant 0 : index
    %c256_26 = arith.constant 256 : index
    %59 = vector.load %arg5[%c0_24, %c0_25, %c256_26] : memref<1x8x512xf32, #tpu.memory_space<vmem>>, vector<1x8x128xf32>
    %60 = vector.shape_cast %59 : vector<1x8x128xf32> to vector<8x128xf32>
    %61 = vector.shape_cast %58 : vector<8x128xf32> to vector<1x8x128xf32>
    tpu.vector_store %arg5[%c0_24, %c0_25, %c256_26], %61 {strides = array<i32>} : memref<1x8x512xf32, #tpu.memory_space<vmem>>, vector<1x8x128xf32>,
    %62 = arith.index_cast %4 : i32 to index
    %c384 = arith.constant 384 : index
    %63 = vector.load %arg6[%62, %c384] : memref<16x1536xf32, #tpu.memory_space<vmem>>, vector<8x128xf32>
    %c0_27 = arith.constant 0 : index
    %c896 = arith.constant 896 : index
    %64 = vector.load %arg6[%c0_27, %c896] : memref<16x1536xf32, #tpu.memory_space<vmem>>, vector<16x128xf32>
    %c0_28 = arith.constant 0 : index
    %c1408 = arith.constant 1408 : index
    %65 = vector.load %arg6[%c0_28, %c1408] : memref<16x1536xf32, #tpu.memory_space<vmem>>, vector<16x128xf32>
    %cst_29 = arith.constant dense<0.000000e+00> : vector<8x16xf32>
    %66 = tpu.matmul %63, %64, %cst_29 {dimension_numbers = #tpu.dot_dimension_numbers<[1], [1], [0], [0], [0, 0, 1, 0], [], []>} : vector<8x128xf32>, vector<16x128xf32>, vector<8x16xf32> -> vector<8x16xf32>
    %cst_30 = arith.constant dense<0xFF800000> : vector<8xf32>
    %67 = vector.multi_reduction <maximumf>, %66, %cst_30 [1] : vector<8x16xf32> to vector<8xf32>
    %68 = vector.shape_cast %67 : vector<8xf32> to vector<8x1xf32>
    %69 = vector.broadcast %68 : vector<8x1xf32> to vector<8x16xf32>
    %70 = arith.subf %66, %69 : vector<8x16xf32>
    %71 = math.exp %70 : vector<8x16xf32>
    %cst_31 = arith.constant dense<0.000000e+00> : vector<8xf32>
    %72 = vector.multi_reduction <add>, %71, %cst_31 [1] : vector<8x16xf32> to vector<8xf32>
    %73 = vector.shape_cast %72 : vector<8xf32> to vector<8x1xf32>
    %cst_32 = arith.constant dense<0.000000e+00> : vector<8x128xf32>
    %74 = tpu.matmul %71, %65, %cst_32 {dimension_numbers = #tpu.dot_dimension_numbers<[1], [0], [0], [1], [0, 0, 1, 1], [], []>} : vector<8x16xf32>, vector<16x128xf32>, vector<8x128xf32> -> vector<8x128xf32>
    %75 = tpu.reciprocal %73 {approx = true} : vector<8x1xf32> -> vector<8x1xf32>
    %76 = vector.broadcast %75 : vector<8x1xf32> to vector<8x128xf32>
    %77 = arith.mulf %74, %76 : vector<8x128xf32>
    %c0_33 = arith.constant 0 : index
    %c0_34 = arith.constant 0 : index
    %c384_35 = arith.constant 384 : index
    %78 = vector.load %arg5[%c0_33, %c0_34, %c384_35] : memref<1x8x512xf32, #tpu.memory_space<vmem>>, vector<1x8x128xf32>
    %79 = vector.shape_cast %78 : vector<1x8x128xf32> to vector<8x128xf32>
    %80 = vector.shape_cast %77 : vector<8x128xf32> to vector<1x8x128xf32>
    tpu.vector_store %arg5[%c0_33, %c0_34, %c384_35], %80 {strides = array<i32>} : memref<1x8x512xf32, #tpu.memory_space<vmem>>, vector<1x8x128xf32>,
    return
  }
  func.func @transform_0(%arg0: i32, %arg1: i32) -> (i32, i32, i32) {
    %c0_i32 = arith.constant 0 : i32
    %c0_i32_0 = arith.constant 0 : i32
    %c0_i32_1 = arith.constant 0 : i32
    return %arg0, %c0_i32, %c0_i32_0 : i32, i32, i32
  }
  func.func @transform_1(%arg0: i32, %arg1: i32) -> (i32, i32) {
    %c0_i32 = arith.constant 0 : i32
    %c0_i32_0 = arith.constant 0 : i32
    %c0_i32_1 = arith.constant 0 : i32
    return %c0_i32, %c0_i32_0 : i32, i32
  }
  func.func @transform_2(%arg0: i32, %arg1: i32) -> (i32, i32) {
    %c0_i32 = arith.constant 0 : i32
    %c0_i32_0 = arith.constant 0 : i32
    %c0_i32_1 = arith.constant 0 : i32
    return %c0_i32, %c0_i32_0 : i32, i32
  }
  func.func @transform_3(%arg0: i32, %arg1: i32) -> (i32, i32, i32) {
    %c0_i32 = arith.constant 0 : i32
    %c0_i32_0 = arith.constant 0 : i32
    return %arg0, %arg1, %c0_i32 : i32, i32, i32
  }
}

module attributes {stable_mosaic.version = 11 : i64} {
  func.func @mha_kernel(%arg0: i32, %arg1: i32, %arg2: memref<1x16x128xf32, #tpu.memory_space<vmem>>, %arg3: memref<128x1536xf32, #tpu.memory_space<vmem>>, %arg4: memref<1x1536xf32, #tpu.memory_space<vmem>>, %arg5: memref<1x8x512xf32, #tpu.memory_space<vmem>>, %arg6: memref<16x1536xf32, #tpu.memory_space<vmem>>) attributes {dimension_semantics = [#tpu.dimension_semantics<parallel>, #tpu.dimension_semantics<arbitrary>], iteration_bounds = array<i64: 2, 2>, scalar_prefetch = 0 : i64, scratch_operands = 1 : i64, tpu.core_type = #tpu.core_type<tc>, window_params = [{transform_indices = @transform_0, window_bounds = array<i64: 1, 16, 128>}, {pipeline_mode = #tpu.pipeline_mode<synchronous>, transform_indices = @transform_1, window_bounds = array<i64: 128, 1536>}, {pipeline_mode = #tpu.pipeline_mode<synchronous>, transform_indices = @transform_2, window_bounds = array<i64: 1, 1536>}, {transform_indices = @transform_3, window_bounds = array<i64: 1, 8, 512>}]} {
    %c0_i32 = arith.constant 0 : i32
    %0 = arith.cmpi eq, %arg1, %c0_i32 : i32
    %1 = arith.extui %0 : i1 to i32
    %c0_i32_0 = arith.constant 0 : i32
    %2 = arith.cmpi ne, %1, %c0_i32_0 : i32
    scf.if %2 {
      %c0_i32_36 = arith.constant 0 : i32
      %c2_i32 = arith.constant 2 : i32
      %81 = arith.addi %c0_i32_36, %c2_i32 : i32
      %c1_i32 = arith.constant 1 : i32
      scf.for %arg7 = %c0_i32_36 to %81 step %c1_i32  : i32 {
        %c8_i32_38 = arith.constant 8 : i32
        %82 = arith.muli %arg7, %c8_i32_38 : i32
        %83 = tpu.assume_multiple %82, 8 : i32
        %c0_39 = arith.constant 0 : index
        %84 = arith.index_cast %83 : i32 to index
        %c0_40 = arith.constant 0 : index
        %85 = vector.load %arg2[%c0_39, %84, %c0_40] : memref<1x16x128xf32, #tpu.memory_space<vmem>>, vector<1x8x128xf32>
        %86 = vector.shape_cast %85 : vector<1x8x128xf32> to vector<8x128xf32>
        %c0_41 = arith.constant 0 : index
        %c0_42 = arith.constant 0 : index
        %87 = vector.load %arg3[%c0_41, %c0_42] : memref<128x1536xf32, #tpu.memory_space<vmem>>, vector<128x1536xf32>
        %cst_43 = arith.constant dense<0.000000e+00> : vector<8x1536xf32>
        %88 = tpu.matmul %86, %87, %cst_43 {dimension_numbers = #tpu.dot_dimension_numbers<[1], [0], [0], [1], [0, 0, 1, 1], [], []>} : vector<8x128xf32>, vector<128x1536xf32>, vector<8x1536xf32> -> vector<8x1536xf32>
        %c0_44 = arith.constant 0 : index
        %c0_45 = arith.constant 0 : index
        %89 = vector.load %arg4[%c0_44, %c0_45] : memref<1x1536xf32, #tpu.memory_space<vmem>>, vector<1x1536xf32>
        %90 = vector.broadcast %89 : vector<1x1536xf32> to vector<8x1536xf32>
        %91 = arith.addf %88, %90 : vector<8x1536xf32>
        %92 = arith.index_cast %83 : i32 to index
        %c0_46 = arith.constant 0 : index
        %93 = vector.load %arg6[%92, %c0_46] : memref<16x1536xf32, #tpu.memory_space<vmem>>, vector<8x1536xf32>
        tpu.vector_store %arg6[%92, %c0_46], %91 {strides = array<i32>} : memref<16x1536xf32, #tpu.memory_space<vmem>>, vector<8x1536xf32>,
      }
      %c2_i32_37 = arith.constant 2 : i32
    } else {
    }
    %c8_i32 = arith.constant 8 : i32
    %3 = arith.muli %arg1, %c8_i32 : i32
    %4 = tpu.assume_multiple %3, 8 : i32
    %5 = arith.index_cast %4 : i32 to index
    %c0 = arith.constant 0 : index
    %6 = vector.load %arg6[%5, %c0] : memref<16x1536xf32, #tpu.memory_space<vmem>>, vector<8x128xf32>
    %c0_1 = arith.constant 0 : index
    %c512 = arith.constant 512 : index
    %7 = vector.load %arg6[%c0_1, %c512] : memref<16x1536xf32, #tpu.memory_space<vmem>>, vector<16x128xf32>
    %c0_2 = arith.constant 0 : index
    %c1024 = arith.constant 1024 : index
    %8 = vector.load %arg6[%c0_2, %c1024] : memref<16x1536xf32, #tpu.memory_space<vmem>>, vector<16x128xf32>
    %cst = arith.constant dense<0.000000e+00> : vector<8x16xf32>
    %9 = tpu.matmul %6, %7, %cst {dimension_numbers = #tpu.dot_dimension_numbers<[1], [1], [0], [0], [0, 0, 1, 0], [], []>} : vector<8x128xf32>, vector<16x128xf32>, vector<8x16xf32> -> vector<8x16xf32>
    %cst_3 = arith.constant dense<0xFF800000> : vector<8xf32>
    %10 = vector.multi_reduction <maximumf>, %9, %cst_3 [1] : vector<8x16xf32> to vector<8xf32>
    %11 = vector.shape_cast %10 : vector<8xf32> to vector<8x1xf32>
    %12 = vector.broadcast %11 : vector<8x1xf32> to vector<8x16xf32>
    %13 = arith.subf %9, %12 : vector<8x16xf32>
    %14 = math.exp %13 : vector<8x16xf32>
    %cst_4 = arith.constant dense<0.000000e+00> : vector<8xf32>
    %15 = vector.multi_reduction <add>, %14, %cst_4 [1] : vector<8x16xf32> to vector<8xf32>
    %16 = vector.shape_cast %15 : vector<8xf32> to vector<8x1xf32>
    %cst_5 = arith.constant dense<0.000000e+00> : vector<8x128xf32>
    %17 = tpu.matmul %14, %8, %cst_5 {dimension_numbers = #tpu.dot_dimension_numbers<[1], [0], [0], [1], [0, 0, 1, 1], [], []>} : vector<8x16xf32>, vector<16x128xf32>, vector<8x128xf32> -> vector<8x128xf32>
    %18 = tpu.reciprocal %16 {approx = true} : vector<8x1xf32> -> vector<8x1xf32>
    %19 = vector.broadcast %18 : vector<8x1xf32> to vector<8x128xf32>
    %20 = arith.mulf %17, %19 : vector<8x128xf32>
    %c0_6 = arith.constant 0 : index
    %c0_7 = arith.constant 0 : index
    %c0_8 = arith.constant 0 : index
    %21 = vector.load %arg5[%c0_6, %c0_7, %c0_8] : memref<1x8x512xf32, #tpu.memory_space<vmem>>, vector<1x8x128xf32>
    %22 = vector.shape_cast %21 : vector<1x8x128xf32> to vector<8x128xf32>
    %23 = vector.shape_cast %20 : vector<8x128xf32> to vector<1x8x128xf32>
    tpu.vector_store %arg5[%c0_6, %c0_7, %c0_8], %23 {strides = array<i32>} : memref<1x8x512xf32, #tpu.memory_space<vmem>>, vector<1x8x128xf32>,
    %24 = arith.index_cast %4 : i32 to index
    %c128 = arith.constant 128 : index
    %25 = vector.load %arg6[%24, %c128] : memref<16x1536xf32, #tpu.memory_space<vmem>>, vector<8x128xf32>
    %c0_9 = arith.constant 0 : index
    %c640 = arith.constant 640 : index
    %26 = vector.load %arg6[%c0_9, %c640] : memref<16x1536xf32, #tpu.memory_space<vmem>>, vector<16x128xf32>
    %c0_10 = arith.constant 0 : index
    %c1152 = arith.constant 1152 : index
    %27 = vector.load %arg6[%c0_10, %c1152] : memref<16x1536xf32, #tpu.memory_space<vmem>>, vector<16x128xf32>
    %cst_11 = arith.constant dense<0.000000e+00> : vector<8x16xf32>
    %28 = tpu.matmul %25, %26, %cst_11 {dimension_numbers = #tpu.dot_dimension_numbers<[1], [1], [0], [0], [0, 0, 1, 0], [], []>} : vector<8x128xf32>, vector<16x128xf32>, vector<8x16xf32> -> vector<8x16xf32>
    %cst_12 = arith.constant dense<0xFF800000> : vector<8xf32>
    %29 = vector.multi_reduction <maximumf>, %28, %cst_12 [1] : vector<8x16xf32> to vector<8xf32>
    %30 = vector.shape_cast %29 : vector<8xf32> to vector<8x1xf32>
    %31 = vector.broadcast %30 : vector<8x1xf32> to vector<8x16xf32>
    %32 = arith.subf %28, %31 : vector<8x16xf32>
    %33 = math.exp %32 : vector<8x16xf32>
    %cst_13 = arith.constant dense<0.000000e+00> : vector<8xf32>
    %34 = vector.multi_reduction <add>, %33, %cst_13 [1] : vector<8x16xf32> to vector<8xf32>
    %35 = vector.shape_cast %34 : vector<8xf32> to vector<8x1xf32>
    %cst_14 = arith.constant dense<0.000000e+00> : vector<8x128xf32>
    %36 = tpu.matmul %33, %27, %cst_14 {dimension_numbers = #tpu.dot_dimension_numbers<[1], [0], [0], [1], [0, 0, 1, 1], [], []>} : vector<8x16xf32>, vector<16x128xf32>, vector<8x128xf32> -> vector<8x128xf32>
    %37 = tpu.reciprocal %35 {approx = true} : vector<8x1xf32> -> vector<8x1xf32>
    %38 = vector.broadcast %37 : vector<8x1xf32> to vector<8x128xf32>
    %39 = arith.mulf %36, %38 : vector<8x128xf32>
    %c0_15 = arith.constant 0 : index
    %c0_16 = arith.constant 0 : index
    %c128_17 = arith.constant 128 : index
    %40 = vector.load %arg5[%c0_15, %c0_16, %c128_17] : memref<1x8x512xf32, #tpu.memory_space<vmem>>, vector<1x8x128xf32>
    %41 = vector.shape_cast %40 : vector<1x8x128xf32> to vector<8x128xf32>
    %42 = vector.shape_cast %39 : vector<8x128xf32> to vector<1x8x128xf32>
    tpu.vector_store %arg5[%c0_15, %c0_16, %c128_17], %42 {strides = array<i32>} : memref<1x8x512xf32, #tpu.memory_space<vmem>>, vector<1x8x128xf32>,
    %43 = arith.index_cast %4 : i32 to index
    %c256 = arith.constant 256 : index
    %44 = vector.load %arg6[%43, %c256] : memref<16x1536xf32, #tpu.memory_space<vmem>>, vector<8x128xf32>
    %c0_18 = arith.constant 0 : index
    %c768 = arith.constant 768 : index
    %45 = vector.load %arg6[%c0_18, %c768] : memref<16x1536xf32, #tpu.memory_space<vmem>>, vector<16x128xf32>
    %c0_19 = arith.constant 0 : index
    %c1280 = arith.constant 1280 : index
    %46 = vector.load %arg6[%c0_19, %c1280] : memref<16x1536xf32, #tpu.memory_space<vmem>>, vector<16x128xf32>
    %cst_20 = arith.constant dense<0.000000e+00> : vector<8x16xf32>
    %47 = tpu.matmul %44, %45, %cst_20 {dimension_numbers = #tpu.dot_dimension_numbers<[1], [1], [0], [0], [0, 0, 1, 0], [], []>} : vector<8x128xf32>, vector<16x128xf32>, vector<8x16xf32> -> vector<8x16xf32>
    %cst_21 = arith.constant dense<0xFF800000> : vector<8xf32>
    %48 = vector.multi_reduction <maximumf>, %47, %cst_21 [1] : vector<8x16xf32> to vector<8xf32>
    %49 = vector.shape_cast %48 : vector<8xf32> to vector<8x1xf32>
    %50 = vector.broadcast %49 : vector<8x1xf32> to vector<8x16xf32>
    %51 = arith.subf %47, %50 : vector<8x16xf32>
    %52 = math.exp %51 : vector<8x16xf32>
    %cst_22 = arith.constant dense<0.000000e+00> : vector<8xf32>
    %53 = vector.multi_reduction <add>, %52, %cst_22 [1] : vector<8x16xf32> to vector<8xf32>
    %54 = vector.shape_cast %53 : vector<8xf32> to vector<8x1xf32>
    %cst_23 = arith.constant dense<0.000000e+00> : vector<8x128xf32>
    %55 = tpu.matmul %52, %46, %cst_23 {dimension_numbers = #tpu.dot_dimension_numbers<[1], [0], [0], [1], [0, 0, 1, 1], [], []>} : vector<8x16xf32>, vector<16x128xf32>, vector<8x128xf32> -> vector<8x128xf32>
    %56 = tpu.reciprocal %54 {approx = true} : vector<8x1xf32> -> vector<8x1xf32>
    %57 = vector.broadcast %56 : vector<8x1xf32> to vector<8x128xf32>
    %58 = arith.mulf %55, %57 : vector<8x128xf32>
    %c0_24 = arith.constant 0 : index
    %c0_25 = arith.constant 0 : index
    %c256_26 = arith.constant 256 : index
    %59 = vector.load %arg5[%c0_24, %c0_25, %c256_26] : memref<1x8x512xf32, #tpu.memory_space<vmem>>, vector<1x8x128xf32>
    %60 = vector.shape_cast %59 : vector<1x8x128xf32> to vector<8x128xf32>
    %61 = vector.shape_cast %58 : vector<8x128xf32> to vector<1x8x128xf32>
    tpu.vector_store %arg5[%c0_24, %c0_25, %c256_26], %61 {strides = array<i32>} : memref<1x8x512xf32, #tpu.memory_space<vmem>>, vector<1x8x128xf32>,
    %62 = arith.index_cast %4 : i32 to index
    %c384 = arith.constant 384 : index
    %63 = vector.load %arg6[%62, %c384] : memref<16x1536xf32, #tpu.memory_space<vmem>>, vector<8x128xf32>
    %c0_27 = arith.constant 0 : index
    %c896 = arith.constant 896 : index
    %64 = vector.load %arg6[%c0_27, %c896] : memref<16x1536xf32, #tpu.memory_space<vmem>>, vector<16x128xf32>
    %c0_28 = arith.constant 0 : index
    %c1408 = arith.constant 1408 : index
    %65 = vector.load %arg6[%c0_28, %c1408] : memref<16x1536xf32, #tpu.memory_space<vmem>>, vector<16x128xf32>
    %cst_29 = arith.constant dense<0.000000e+00> : vector<8x16xf32>
    %66 = tpu.matmul %63, %64, %cst_29 {dimension_numbers = #tpu.dot_dimension_numbers<[1], [1], [0], [0], [0, 0, 1, 0], [], []>} : vector<8x128xf32>, vector<16x128xf32>, vector<8x16xf32> -> vector<8x16xf32>
    %cst_30 = arith.constant dense<0xFF800000> : vector<8xf32>
    %67 = vector.multi_reduction <maximumf>, %66, %cst_30 [1] : vector<8x16xf32> to vector<8xf32>
    %68 = vector.shape_cast %67 : vector<8xf32> to vector<8x1xf32>
    %69 = vector.broadcast %68 : vector<8x1xf32> to vector<8x16xf32>
    %70 = arith.subf %66, %69 : vector<8x16xf32>
    %71 = math.exp %70 : vector<8x16xf32>
    %cst_31 = arith.constant dense<0.000000e+00> : vector<8xf32>
    %72 = vector.multi_reduction <add>, %71, %cst_31 [1] : vector<8x16xf32> to vector<8xf32>
    %73 = vector.shape_cast %72 : vector<8xf32> to vector<8x1xf32>
    %cst_32 = arith.constant dense<0.000000e+00> : vector<8x128xf32>
    %74 = tpu.matmul %71, %65, %cst_32 {dimension_numbers = #tpu.dot_dimension_numbers<[1], [0], [0], [1], [0, 0, 1, 1], [], []>} : vector<8x16xf32>, vector<16x128xf32>, vector<8x128xf32> -> vector<8x128xf32>
    %75 = tpu.reciprocal %73 {approx = true} : vector<8x1xf32> -> vector<8x1xf32>
    %76 = vector.broadcast %75 : vector<8x1xf32> to vector<8x128xf32>
    %77 = arith.mulf %74, %76 : vector<8x128xf32>
    %c0_33 = arith.constant 0 : index
    %c0_34 = arith.constant 0 : index
    %c384_35 = arith.constant 384 : index
    %78 = vector.load %arg5[%c0_33, %c0_34, %c384_35] : memref<1x8x512xf32, #tpu.memory_space<vmem>>, vector<1x8x128xf32>
    %79 = vector.shape_cast %78 : vector<1x8x128xf32> to vector<8x128xf32>
    %80 = vector.shape_cast %77 : vector<8x128xf32> to vector<1x8x128xf32>
    tpu.vector_store %arg5[%c0_33, %c0_34, %c384_35], %80 {strides = array<i32>} : memref<1x8x512xf32, #tpu.memory_space<vmem>>, vector<1x8x128xf32>,
    return
  }
  func.func @transform_0(%arg0: i32, %arg1: i32) -> (i32, i32, i32) {
    %c0_i32 = arith.constant 0 : i32
    %c0_i32_0 = arith.constant 0 : i32
    %c0_i32_1 = arith.constant 0 : i32
    return %arg0, %c0_i32, %c0_i32_0 : i32, i32, i32
  }
  func.func @transform_1(%arg0: i32, %arg1: i32) -> (i32, i32) {
    %c0_i32 = arith.constant 0 : i32
    %c0_i32_0 = arith.constant 0 : i32
    %c0_i32_1 = arith.constant 0 : i32
    return %c0_i32, %c0_i32_0 : i32, i32
  }
  func.func @transform_2(%arg0: i32, %arg1: i32) -> (i32, i32) {
    %c0_i32 = arith.constant 0 : i32
    %c0_i32_0 = arith.constant 0 : i32
    %c0_i32_1 = arith.constant 0 : i32
    return %c0_i32, %c0_i32_0 : i32, i32
  }
  func.func @transform_3(%arg0: i32, %arg1: i32) -> (i32, i32, i32) {
    %c0_i32 = arith.constant 0 : i32
    %c0_i32_0 = arith.constant 0 : i32
    return %arg0, %arg1, %c0_i32 : i32, i32, i32
  }
}

</mosaic_0001>

<bundles_post_ra>
// kernel: tpu_custom_call.1
= control target key start
LH: loop header
LB: loop body
LE: loop exit
PB: predicated region body
PF: predicated region fallthrough
CT: control target
= control target key end

     0   :  { %s2852_s0 = inlined_call_operand.hbm [shape: f32[2,16,128], index: 0, kind: input, shape index: {}]   ;;  %s2853_s1 = inlined_call_operand.hbm [shape: f32[128,1536], index: 1, kind: input, shape index: {}]   ;;  %s2854_s2 = inlined_call_operand.hbm [shape: f32[1,1536], index: 2, kind: input, shape index: {}]   ;;  %s2855_s3 = inlined_call_operand.hbm [shape: f32[2,16,512], index: 3, kind: output, shape index: {}]  }
   0x1   :  { %2865 = sst [smem:[#allocation17_spill]] %s2853_s1 }
   0x2   :  { %2866 = sst [smem:[#allocation18_spill]] %s2854_s2 }
   0x3   :  { %8 = vsyncpa [#allocation4], 0 }
   0x4   :  { %10 = vsyncpa [#allocation4 + $0x1], 0 }
   0x5   :  { %11 = vsyncpa [#allocation7], 0 }
   0x6   :  { %12 = vsyncpa [#allocation5], 0 }
   0x7   :  { %14 = vsyncpa [#allocation5 + $0x1], 0  ;;  %s2457_s12 = smov 0   ;;  %s2459_s13 = smov 0  }
   0x8   :  { %s2461_s14 = smov 0   ;;  %s2463_s15 = smov 0  }
   0x9   :  { %s2465_s16 = smov 0   ;;  %s2467_s17 = smov 0  }
   0xa   :  { %s2469_s18 = smov 0   ;;  %s2471_s19 = smov 0  }
   0xb   :  { %s2473_s20 = smov 0   ;;  %s2475_s21 = smov 0  }
   0xc   :  { %s2477_s22 = smov 0  }
   0xd LB: > { %2867 = sst [smem:[#allocation13_spill]] %s2379_s12  ;;  %s1720_s23 = sadd.s32 4294967295, %s2419_s22   ;;  %s2419_s22 = sphi %s2477_s22, %s20_s22   ;;  %s2415_s21 = sphi %s2475_s21, %s2898_s21   ;;  %s2411_s20 = sphi %s2473_s20, %s2890_s20   ;;  %s2407_s19 = sphi %s2471_s19, %s2897_s19   ;;  %s2403_s18 = sphi %s2469_s18, %s2889_s18   ;;  %s2399_s17 = sphi %s2467_s17, %s2896_s17   ;;  %s2395_s16 = sphi %s2465_s16, %s2895_s16   ;;  %s2391_s15 = sphi %s2463_s15, %s2894_s15   ;;  %s2387_s14 = sphi %s2461_s14, %s2893_s14   ;;  %s2383_s13 = sphi %s2459_s13, %s2892_s13   ;;  %s2379_s12 = sphi %s2457_s12, %s2891_s12  }
   0xe   : > { %2868 = sst [smem:[#allocation14_spill]] %s2411_s20  ;;  %s1721_s24 = sadd.s32 4294967294, %s2419_s22  }
   0xf   : > { %p52_p0 = scmp.ne.s32.totalorder %s2395_s16, %s2391_s15  ;;  %p2513_p1 = scmp.eq.s32.totalorder %s1720_s23, 0 }
  0x10   : > { %p119_p2 = scmp.ne.s32.totalorder %s2387_s14, %s2383_s13  ;;  %p120_p4 = scmp.eq.s32.totalorder %s1720_s23, 3 }
  0x11   : > { %s2869_s25 = scalar_select %p2513_p1, 1, 0 }
  0x12   : > { %p2522_p3 = por %p2513_p1, %p52_p0  ;;  %p125_p5 = scmp.ne.s32.totalorder %s2383_s13, %s2379_s12 }
  0x13   : > { %p126_p6 = scmp.eq.s32.totalorder %s1721_s24, 3  ;;  %p2528_p7 = por %p120_p4, %p119_p2 }
  0x14   : > { %s2870_s27 = scalar_select %p2522_p3, 1, 0 }
  0x15   : > { %s2871_s28 = scalar_select %p2528_p7, 1, 0 }
  0x16   : > { %p1722_p8 = scmp.ge.s32.totalorder %s2419_s22, 1  ;;  %p2533_p9 = por %p126_p6, %p125_p5 }
  0x17   : > { %p133_p10 = scmp.lt.s32.totalorder %s2419_s22, 5  ;;  %s2425_s4 = smov [#allocation6]  }
  0x18   : > { %s2872_s29 = scalar_select %p2533_p9, 1, 0 }
  0x19   : > { %p2538_p11 = pnand %p1722_p8, %p133_p10  ;;  %s145_s5 = sshll.u32 %s2425_s4, 4  ;;  %s146_s5 = int_to_ptr.vmem [resolvable:$true] %s145_s5 }
  0x1a   : > { %2873 = sst [smem:[#allocation15_spill]] %s2872_s29  ;;  %s2426_s7 = smov [#allocation8]  }
  0x1b   : > { %s2874_s30 = scalar_select %p2538_p11, 1, 0 }
  0x1c   : > { %p2060_p12 = pneg %p2538_p11  ;;  %s159_s8 = sshll.u32 %s2426_s7, 4  ;;  %s2550_s8 = int_to_ptr.vmem [resolvable:$true] %s159_s8 }
  0x1d   : > { %s2876_s1 = sld [smem:[#allocation17_spill]] }
  0x1e   : > { %p2546_p13 = pnand %p2060_p12, %p2513_p1 }
  0x20   : > { %p2205_p2 = pneg %p2546_p13 }
  0x23   : > { %s2203_s11 = scalar_lea.hbm %s2876_s1, 24576 }
  0x24   : > { %p2204_p0 = scmp.ne.s32.totalorder %s2876_s1, %s2203_s11  ;;  %p2210_p6 = scmp.lt.u32.totalorder %s2203_s11, %s2876_s1 }
  0x26   : > { %p2206_p4 = pnand %p2205_p2, %p2204_p0 }
  0x28   : > { %p2207_p5 = pneg %p2206_p4 }
  0x2a   : > { %p2212_p8 = pnand %p2210_p6, %p2207_p5 }
  0x2c   : > { %2215 = shalt.err (!%p2212_p8)
}
  0x2d   : > { %s2216_s7 = scalar_lea.vmem %s146_s5, 24576  ;;  %p2224_p7 = scmp.lt.s32.totalorder %s146_s5, %s146_s5 }
  0x2e   : > { %p2217_p10 = scmp.ne.s32.totalorder %s146_s5, %s2216_s7  ;;  %p2225_p1 = scmp.lt.s32.totalorder %s2216_s7, %s2216_s7 }
  0x30   : > { %p2219_p12 = pnand %p2217_p10, %p2205_p2  ;;  %p2226_p3 = por %p2225_p1, %p2224_p7 }
  0x32   : > { %p2220_p9 = pneg %p2219_p12 }
  0x34   : > { %p2227_p11 = pnand %p2226_p3, %p2220_p9 }
  0x36   : > { %2230 = shalt.err (!%p2227_p11)
}
  0x37   : > { %s2427_s9 = smov 1536   ;;  %s2428_s10 = smov 96  }
  0x38   : > { %2063 = dma.hbm_to_vmem [thread:$0]  (!%p2546_p13), %s2876_s1, 24576, %s146_s5, [#allocation7], %s2427_s9, %s2427_s9, %s2428_s10  }
  0x39   : > { %s2877_s2 = sld [smem:[#allocation18_spill]] }
  0x3f   : > { %s2231_s4 = scalar_lea.hbm %s2877_s2, 192 }
  0x40   : > { %p2232_p0 = scmp.ne.s32.totalorder %s2877_s2, %s2231_s4  ;;  %p2238_p7 = scmp.lt.u32.totalorder %s2231_s4, %s2877_s2 }
  0x42   : > { %p2234_p1 = pnand %p2232_p0, %p2205_p2 }
  0x44   : > { %p2235_p3 = pneg %p2234_p1 }
  0x46   : > { %p2240_p9 = pnand %p2238_p7, %p2235_p3 }
  0x48   : > { %2243 = shalt.err (!%p2240_p9)
}
  0x49   : > { %s2244_s5 = scalar_lea.vmem %s2550_s8, 192  ;;  %p2252_p6 = scmp.lt.s32.totalorder %s2550_s8, %s2550_s8 }
  0x4a   : > { %p2245_p11 = scmp.ne.s32.totalorder %s2550_s8, %s2244_s5  ;;  %p2253_p8 = scmp.lt.s32.totalorder %s2244_s5, %s2244_s5 }
  0x4c   : > { %p2247_p4 = pnand %p2245_p11, %p2205_p2  ;;  %p2254_p10 = por %p2253_p8, %p2252_p6 }
  0x4e   : > { %p2248_p5 = pneg %p2247_p4 }
  0x50   : > { %p2255_p12 = pnand %p2254_p10, %p2248_p5 }
  0x52   : > { %2258 = shalt.err (!%p2255_p12)
}
  0x53   : > { %2066 = dma.hbm_to_vmem [thread:$0]  (!%p2546_p13), %s2877_s2, 192, %s2550_s8, [#allocation7]  }
  0x54   : > { %s29_s29 = sadd.s32 1, %s2411_s20  ;;  %s32_s9 = sadd.s32 1, %s2415_s21 }
  0x55   : > { %p30_p2 = scmp.ge.s32.totalorder %s29_s29, 2  ;;  %s39_s6 = sadd.s32 1, %s2399_s17 }
  0x56   : > { %p46_p0 = scmp.ne.s32.totalorder %s2399_s17, %s2395_s16  ;;  %p47_p1 = scmp.eq.s32.totalorder %s2419_s22, 0 }
  0x57   : > { %s2900_s29 = smov (%p30_p2, %s29_s29), 0  ;;  %s2902_s9 = smov (!%p30_p2, %s32_s9), %s2415_s21 }
  0x58   : > { %2878 = sst [smem:[#allocation16_spill]] %s2900_s29  ;;  %p2608_p3 = por %p47_p1, %p46_p0 }
  0x59   : > { %s105_s11 = ssub.s32 %s2411_s20, %s2900_s29  ;;  %p34_p13 = scmp.ge.s32.totalorder %s2902_s9, 2 }
  0x5a   : > { %p2077_p7 = scmp.lt.s32.totalorder %s2419_s22, 4  ;;  %s170_s8 = sand.u32 1, %s2399_s17  }
  0x5b   : > { %s1749_s15 = sshll.u32 %s2415_s21, 8  ;;  %s2904_s9 = smov (%p34_p13, %s2902_s9), 0 }
  0x5c   : > { %s1726_s23 = sshll.u32 %s170_s8, 4  ;;  %s36_s24 = ssub.s32 %s2415_s21, %s2904_s9 }
  0x5d   : > { %p37_p9 = scmp.eq.s32.totalorder %s36_s24, 0  ;;  %s106_s4 = sor.u32 %s105_s11, %s36_s24 }
  0x5e   : > { %p107_p11 = scmp.eq.s32.totalorder %s106_s4, 0  ;;  %s2624_s12 = scalar_lea.hbm %s2852_s0, %s1749_s15 }
  0x5f   : > { %s2627_s26 = scalar_select %p37_p9, %s2399_s17, %s39_s6  }
  0x60   : > { %s2880_s1 = sadd.s32 1, %s2387_s14  ;;  %s174_s29 = scalar_lea.vmem [#allocation3], %s1726_s23 }
  0x61   : > { %s2632_s2 = scalar_select %p107_p11, %s2387_s14, %s2880_s1  }
  0x62   : > { %s181_s20 = sshll.u32 %s174_s29, 4  ;;  %p2638_p4 = pnand %p2077_p7, %p2608_p3  ;;  %s2642_s20 = int_to_ptr.vmem [resolvable:$true] %s181_s20 }
  0x63   : > { %s2644_s15 = scalar_lea.sflag [#allocation4], %s170_s8  ;;  %s2259_s6 = scalar_lea.hbm %s2624_s12, 256 }
  0x64   : > { %p2260_p5 = scmp.ne.s32.totalorder %s2624_s12, %s2259_s6  ;;  %p2261_p6 = pneg %p2638_p4 }
  0x65   : > { %s2264_s10 = scalar_lea.hbm %s2852_s0, 512  ;;  %p2265_p12 = scmp.lt.u32.totalorder %s2624_s12, %s2852_s0 }
  0x66   : > { %p2262_p8 = pnand %p2261_p6, %p2260_p5  ;;  %p2266_p2 = scmp.lt.u32.totalorder %s2264_s10, %s2259_s6 }
  0x67   : > { %p2268_p1 = scmp.lt.u32.totalorder %s2259_s6, %s2624_s12 }
  0x68   : > { %p2263_p10 = pneg %p2262_p8  ;;  %p2267_p0 = por %p2266_p2, %p2265_p12 }
  0x6a   : > { %p2269_p3 = por %p2268_p1, %p2267_p0 }
  0x6c   : > { %p2270_p13 = pnand %p2269_p3, %p2263_p10 }
  0x6e   : > { %2273 = shalt.err (!%p2270_p13)
}
  0x6f   : > { %s2274_s8 = scalar_lea.vmem %s2642_s20, 256  ;;  %s2429_s4 = smov [#allocation3]  }
  0x70   : > { %p2275_p7 = scmp.ne.s32.totalorder %s2642_s20, %s2274_s8  ;;  %s2279_s7 = sshll.u32 %s2429_s4, 4  ;;  %s2280_s7 = int_to_ptr.vmem [resolvable:$false] %s2279_s7 }
  0x71   : > { %s2281_s5 = scalar_lea.vmem %s2280_s7, 512  ;;  %p2282_p5 = scmp.lt.s32.totalorder %s2642_s20, %s2280_s7 }
  0x72   : > { %p2277_p9 = pnand %p2275_p7, %p2261_p6  ;;  %p2283_p8 = scmp.lt.s32.totalorder %s2281_s5, %s2274_s8 }
  0x74   : > { %p2278_p11 = pneg %p2277_p9  ;;  %p2284_p12 = por %p2283_p8, %p2282_p5 }
  0x76   : > { %p2285_p2 = pnand %p2284_p12, %p2278_p11 }
  0x78   : > { %2288 = shalt.err (!%p2285_p2)
}
  0x79   : > { %s2430_s6 = smov 128   ;;  %s2431_s1 = smov 8  }
  0x7a   : > { %2070 = dma.hbm_to_vmem [thread:$0]  (!%p2638_p4), %s2624_s12, 256, %s2642_s20, %s2644_s15, %s2430_s6, %s2430_s6, %s2431_s1  }
  0x7b   : > { %p2882_p6 = scmp.ne.s32.totalorder %s2874_s30, 0 }
  0x7c   : > { %s195_s29 = sand.u32 (!%p2882_p6), 1, %s2395_s16   ;;  %p2883_p10 = scmp.ne.s32.totalorder (!%p2882_p6), %s2870_s27, 0 }
  0x7d   : > { %193 = sbr.rel (%p2882_p6) target bundleno = 2211 (0x8a3), region = 32  ;;  %s2675_s10 = sshll.u32 (!%p2882_p6), %s195_s29, 4 }
  0x7e   : > { %s196_s23 = scalar_lea.sflag (!%p2882_p6), [#allocation4], %s195_s29  ;;  %s199_s24 = scalar_lea.vmem (!%p2882_p6), [#allocation3], %s2675_s10 }
  0x84   : > { %2366 = dma.done.wait (%p2883_p10), %s196_s23, 256  }
  0x85   : > { %2368 = vsyncadd (%p2883_p10), %s196_s23, 4294967040  ;;  %p2884_p0 = scmp.ne.s32.totalorder %s2869_s25, 0 }
  0x87   : > { %2370 = dma.done.wait (%p2884_p0), [#allocation7], 24768  }
  0x88   : > { %2372 = vsyncadd (%p2884_p0), [#allocation7], 4294942528  ;;  %s227_s20 = sand.u32 1, %s2383_s13   ;;  %p1734_p4 = scmp.ne.s32.totalorder %s2403_s18, 0 }
  0x89   : > { %s1733_s30 = sshll.u32 %s227_s20, 5  ;;  %s2692_s11 = smov (!%p1734_p4), 0  }
  0x8a   : > { %s2689_s12 = scalar_lea.vmem [#allocation9], %s1733_s30  ;;  %233 = sbr.rel (%p1734_p4) target bundleno = 462 (0x1ce), region = 48 }
  0x91 LB: >> { %v244_v0 = vld [vmem:[#allocation6 + $0x8] sm:$0xff]  ;;  %v246_v2 = vld [vmem:[#allocation6 + $0x18] sm:$0xff]  ;;  %v243_v5 = vld [vmem:[#allocation6] sm:$0xff]  ;;  %v2432_v7 = vmov 0.0   ;;  %s1735_s25 = sshll.u32 %s2423_s11, 3  ;;  %s239_s11 = sadd.s32 1, %s2423_s11   ;;  %s2423_s11 = sphi %s2692_s11, %s239_s11  }
  0x92   : >> { %v256_v1 = vld [vmem:[#allocation6 + $0x68] sm:$0xff]  ;;  %v258_v4 = vld [vmem:[#allocation6 + $0x78] sm:$0xff]  ;;  %v255_v6 = vld [vmem:[#allocation6 + $0x60] sm:$0xff]  ;;  %563 = vmatprep.mubr.f32.mxu0 %v2432_v7  ;;  %634 = vmatprep.mubr.f32.mxu1 %v2432_v7  ;;  %s241_s27 = scalar_lea.vmem %s199_s24, %s1735_s25 [#allocation3]  ;;  %s925_s15 = sshra.s32 %s1735_s25, 3 }
  0x93   : >> { %v1832_v3 = vpack.c.bf16 %v256_v1, %v244_v0  ;;  %v1864_v8 = vpack.c.bf16 %v258_v4, %v246_v2  ;;  %v1834_v9 = vpack.c.bf16 %v255_v6, %v243_v5  ;;  %v245_v10 = vld [vmem:[#allocation6 + $0x10] sm:$0xff]  ;;  %v268_v12 = vld [vmem:[#allocation6 + $0xc8] sm:$0xff]  ;;  %v270_v15 = vld [vmem:[#allocation6 + $0xd8] sm:$0xff]  ;;  %s1750_s8 = smul.u32 96, %s925_s15  ;;  %p236_p1 = scmp.ge.s32.totalorder %s239_s11, 2  }
  0x94   : >> { %v257_v11 = vld [vmem:[#allocation6 + $0x70] sm:$0xff]  ;;  %v280_v14 = vld [vmem:[#allocation6 + $0x128] sm:$0xff]  ;;  %v282_v16 = vld [vmem:[#allocation6 + $0x138] sm:$0xff] }
  0x95   : >> { %1833 = vmatprep.subr.bf16.mxu0 %v1832_v3  ;;  %v1866_v13 = vpack.c.bf16 %v257_v11, %v245_v10  ;;  %1865 = vmatprep.subr.bf16.mxu1 %v1864_v8  ;;  %v1836_v17 = vpack.c.bf16 %v280_v14, %v268_v12  ;;  %v1868_v18 = vpack.c.bf16 %v282_v16, %v270_v15  ;;  %v267_v19 = vld [vmem:[#allocation6 + $0xc0] sm:$0xff]  ;;  %v269_v21 = vld [vmem:[#allocation6 + $0xd0] sm:$0xff]  ;;  %v292_v24 = vld [vmem:[#allocation6 + $0x188] sm:$0xff]  ;;  %s2718_s4 = scalar_lea.vmem [#allocation2], %s1750_s8 }
  0x96   : >> { %1835 = vmatpush1.bf16.msra.mxu0 %v1834_v9  ;;  %v279_v20 = vld [vmem:[#allocation6 + $0x120] sm:$0xff]  ;;  %v281_v23 = vld [vmem:[#allocation6 + $0x130] sm:$0xff]  ;;  %v304_v25 = vld [vmem:[#allocation6 + $0x1e8] sm:$0xff] }
  0x97   : >> { %1867 = vmatpush1.bf16.msra.mxu1 %v1866_v13  ;;  %v1838_v22 = vpack.c.bf16 %v279_v20, %v267_v19  ;;  %1837 = vmatprep.subr.bf16.mxu0 %v1836_v17  ;;  %v1870_v26 = vpack.c.bf16 %v281_v23, %v269_v21  ;;  %v1840_v27 = vpack.c.bf16 %v304_v25, %v292_v24  ;;  %v294_v28 = vld [vmem:[#allocation6 + $0x198] sm:$0xff]  ;;  %v291_v30 = vld [vmem:[#allocation6 + $0x180] sm:$0xff]  ;;  %v293_v33 = vld [vmem:[#allocation6 + $0x190] sm:$0xff] }
  0x98   : >> { %1869 = vmatprep.subr.bf16.mxu1 %v1868_v18  ;;  %v306_v29 = vld [vmem:[#allocation6 + $0x1f8] sm:$0xff]  ;;  %v303_v32 = vld [vmem:[#allocation6 + $0x1e0] sm:$0xff]  ;;  %v305_v34 = vld [vmem:[#allocation6 + $0x1f0] sm:$0xff] }
  0x99   : >> { %v1872_v31 = vpack.c.bf16 %v306_v29, %v294_v28  ;;  %v1842_v35 = vpack.c.bf16 %v303_v32, %v291_v30  ;;  %v316_v36 = vld [vmem:[#allocation6 + $0x248] sm:$0xff]  ;;  %v318_v38 = vld [vmem:[#allocation6 + $0x258] sm:$0xff]  ;;  %v1874_v39 = vpack.c.bf16 %v305_v34, %v293_v33  ;;  %v315_v42 = vld [vmem:[#allocation6 + $0x240] sm:$0xff] }
  0x9a   : >> { %1839 = vmatpush1.bf16.msra.mxu0 %v1838_v22  ;;  %v328_v37 = vld [vmem:[#allocation6 + $0x2a8] sm:$0xff]  ;;  %v330_v41 = vld [vmem:[#allocation6 + $0x2b8] sm:$0xff]  ;;  %v327_v43 = vld [vmem:[#allocation6 + $0x2a0] sm:$0xff] }
  0x9b   : >> { %1871 = vmatpush1.bf16.msra.mxu1 %v1870_v26  ;;  %1841 = vmatprep.subr.bf16.mxu0 %v1840_v27  ;;  %v1844_v40 = vpack.c.bf16 %v328_v37, %v316_v36  ;;  %v1876_v44 = vpack.c.bf16 %v330_v41, %v318_v38  ;;  %v317_v45 = vld [vmem:[#allocation6 + $0x250] sm:$0xff]  ;;  %v340_v47 = vld [vmem:[#allocation6 + $0x308] sm:$0xff]  ;;  %v342_v49 = vld [vmem:[#allocation6 + $0x318] sm:$0xff]  ;;  %v1846_v51 = vpack.c.bf16 %v327_v43, %v315_v42 }
  0x9c   : >> { %1873 = vmatprep.subr.bf16.mxu1 %v1872_v31  ;;  %v329_v46 = vld [vmem:[#allocation6 + $0x2b0] sm:$0xff]  ;;  %v352_v48 = vld [vmem:[#allocation6 + $0x368] sm:$0xff]  ;;  %v354_v50 = vld [vmem:[#allocation6 + $0x378] sm:$0xff] }
  0x9d   : >> { %v1878_v52 = vpack.c.bf16 %v329_v46, %v317_v45  ;;  %v1848_v53 = vpack.c.bf16 %v352_v48, %v340_v47  ;;  %v339_v54 = vld [vmem:[#allocation6 + $0x300] sm:$0xff]  ;;  %v341_v56 = vld [vmem:[#allocation6 + $0x310] sm:$0xff]  ;;  %v1880_v57 = vpack.c.bf16 %v354_v50, %v342_v49  ;;  %v364_v59 = vld [vmem:[#allocation6 + $0x3c8] sm:$0xff] }
  0x9e   : >> { %1843 = vmatpush1.bf16.msra.mxu0 %v1842_v35  ;;  %v351_v55 = vld [vmem:[#allocation6 + $0x360] sm:$0xff]  ;;  %v353_v58 = vld [vmem:[#allocation6 + $0x370] sm:$0xff]  ;;  %v376_v60 = vld [vmem:[#allocation6 + $0x428] sm:$0xff] }
  0x9f   : >> { %1875 = vmatpush1.bf16.msra.mxu1 %v1874_v39  ;;  %1845 = vmatprep.subr.bf16.mxu0 %v1844_v40  ;;  %v366_v61 = vld [vmem:[#allocation6 + $0x3d8] sm:$0xff]  ;;  %v1850_v63 = vpack.c.bf16 %v351_v55, %v339_v54  ;;  %v1882_v0 = vpack.c.bf16 %v353_v58, %v341_v56  ;;  %v1852_v1 = vpack.c.bf16 %v376_v60, %v364_v59  ;;  %v363_v2 = vld [vmem:[#allocation6 + $0x3c0] sm:$0xff]  ;;  %v365_v4 = vld [vmem:[#allocation6 + $0x3d0] sm:$0xff] }
  0xa0   : >> { %1877 = vmatprep.subr.bf16.mxu1 %v1876_v44  ;;  %v378_v62 = vld [vmem:[#allocation6 + $0x438] sm:$0xff]  ;;  %v375_v3 = vld [vmem:[#allocation6 + $0x420] sm:$0xff]  ;;  %v377_v6 = vld [vmem:[#allocation6 + $0x430] sm:$0xff] }
  0xa1   : >> { %v1884_v5 = vpack.c.bf16 %v378_v62, %v366_v61  ;;  %v388_v8 = vld [vmem:[#allocation6 + $0x488] sm:$0xff]  ;;  %v390_v10 = vld [vmem:[#allocation6 + $0x498] sm:$0xff]  ;;  %v1854_v12 = vpack.c.bf16 %v375_v3, %v363_v2  ;;  %v1886_v13 = vpack.c.bf16 %v377_v6, %v365_v4  ;;  %v387_v15 = vld [vmem:[#allocation6 + $0x480] sm:$0xff] }
  0xa2   : >> { %1847 = vmatpush1.bf16.msra.mxu0 %v1846_v51  ;;  %v400_v9 = vld [vmem:[#allocation6 + $0x4e8] sm:$0xff]  ;;  %v402_v11 = vld [vmem:[#allocation6 + $0x4f8] sm:$0xff]  ;;  %v399_v16 = vld [vmem:[#allocation6 + $0x4e0] sm:$0xff] }
  0xa3   : >> { %1879 = vmatpush1.bf16.msra.mxu1 %v1878_v52  ;;  %1849 = vmatprep.subr.bf16.mxu0 %v1848_v53  ;;  %v1856_v14 = vpack.c.bf16 %v400_v9, %v388_v8  ;;  %v389_v17 = vld [vmem:[#allocation6 + $0x490] sm:$0xff]  ;;  %v1888_v18 = vpack.c.bf16 %v402_v11, %v390_v10  ;;  %v412_v20 = vld [vmem:[#allocation6 + $0x548] sm:$0xff]  ;;  %v414_v22 = vld [vmem:[#allocation6 + $0x558] sm:$0xff]  ;;  %v1858_v24 = vpack.c.bf16 %v399_v16, %v387_v15 }
  0xa4   : >> { %1881 = vmatprep.subr.bf16.mxu1 %v1880_v57  ;;  %v401_v19 = vld [vmem:[#allocation6 + $0x4f0] sm:$0xff]  ;;  %v424_v21 = vld [vmem:[#allocation6 + $0x5a8] sm:$0xff]  ;;  %v426_v23 = vld [vmem:[#allocation6 + $0x5b8] sm:$0xff] }
  0xa5   : >> { %v1890_v25 = vpack.c.bf16 %v401_v19, %v389_v17  ;;  %v1860_v26 = vpack.c.bf16 %v424_v21, %v412_v20  ;;  %v411_v27 = vld [vmem:[#allocation6 + $0x540] sm:$0xff]  ;;  %v413_v29 = vld [vmem:[#allocation6 + $0x550] sm:$0xff]  ;;  %v1892_v30 = vpack.c.bf16 %v426_v23, %v414_v22  ;;  %v248_v32 = vld [vmem:[#allocation6 + $0x28] sm:$0xff] }
  0xa6   : >> { %1851 = vmatpush1.bf16.msra.mxu0 %v1850_v63  ;;  %v423_v28 = vld [vmem:[#allocation6 + $0x5a0] sm:$0xff]  ;;  %v425_v31 = vld [vmem:[#allocation6 + $0x5b0] sm:$0xff]  ;;  %v260_v33 = vld [vmem:[#allocation6 + $0x88] sm:$0xff] }
  0xa7   : >> { %1883 = vmatpush1.bf16.msra.mxu1 %v1882_v0  ;;  %1853 = vmatprep.subr.bf16.mxu0 %v1852_v1  ;;  %v250_v34 = vld [vmem:[#allocation6 + $0x38] sm:$0xff]  ;;  %v1862_v36 = vpack.c.bf16 %v423_v28, %v411_v27  ;;  %v1894_v37 = vpack.c.bf16 %v425_v31, %v413_v29  ;;  %v1896_v38 = vpack.c.bf16 %v260_v33, %v248_v32  ;;  %v247_v39 = vld [vmem:[#allocation6 + $0x20] sm:$0xff]  ;;  %v249_v41 = vld [vmem:[#allocation6 + $0x30] sm:$0xff] }
  0xa8   : >> { %1885 = vmatprep.subr.bf16.mxu1 %v1884_v5  ;;  %v262_v35 = vld [vmem:[#allocation6 + $0x98] sm:$0xff]  ;;  %v259_v40 = vld [vmem:[#allocation6 + $0x80] sm:$0xff]  ;;  %v261_v43 = vld [vmem:[#allocation6 + $0x90] sm:$0xff] }
  0xa9   : >> { %v1928_v42 = vpack.c.bf16 %v262_v35, %v250_v34  ;;  %v272_v44 = vld [vmem:[#allocation6 + $0xe8] sm:$0xff]  ;;  %v274_v46 = vld [vmem:[#allocation6 + $0xf8] sm:$0xff]  ;;  %v2704_v48 = vld [vmem:[%s241_s27] sm:$0xff]  ;;  %v1898_v49 = vpack.c.bf16 %v259_v40, %v247_v39  ;;  %v1930_v50 = vpack.c.bf16 %v261_v43, %v249_v41 }
  0xaa   : >> { %1855 = vmatpush1.bf16.msra.mxu0 %v1854_v12  ;;  %v284_v45 = vld [vmem:[#allocation6 + $0x148] sm:$0xff]  ;;  %v286_v47 = vld [vmem:[#allocation6 + $0x158] sm:$0xff]  ;;  %v271_v52 = vld [vmem:[#allocation6 + $0xe0] sm:$0xff] }
  0xab   : >> { %1887 = vmatpush1.bf16.msra.mxu1 %v1886_v13  ;;  %1857 = vmatprep.subr.bf16.mxu0 %v1856_v14  ;;  %v1900_v51 = vpack.c.bf16 %v284_v45, %v272_v44  ;;  %v283_v53 = vld [vmem:[#allocation6 + $0x140] sm:$0xff]  ;;  %v273_v54 = vld [vmem:[#allocation6 + $0xf0] sm:$0xff]  ;;  %v1932_v55 = vpack.c.bf16 %v286_v47, %v274_v46  ;;  %v296_v57 = vld [vmem:[#allocation6 + $0x1a8] sm:$0xff] }
  0xac   : >> { %1889 = vmatprep.subr.bf16.mxu1 %v1888_v18  ;;  %v285_v56 = vld [vmem:[#allocation6 + $0x150] sm:$0xff]  ;;  %v308_v58 = vld [vmem:[#allocation6 + $0x208] sm:$0xff]  ;;  %v298_v59 = vld [vmem:[#allocation6 + $0x1b8] sm:$0xff]  ;;  %v1902_v61 = vpack.c.bf16 %v283_v53, %v271_v52 }
  0xad   : >> { %v310_v60 = vld [vmem:[#allocation6 + $0x218] sm:$0xff]  ;;  %v1934_v62 = vpack.c.bf16 %v285_v56, %v273_v54  ;;  %v1904_v63 = vpack.c.bf16 %v308_v58, %v296_v57  ;;  %v295_v0 = vld [vmem:[#allocation6 + $0x1a0] sm:$0xff]  ;;  %v297_v2 = vld [vmem:[#allocation6 + $0x1b0] sm:$0xff] }
  0xae   : >> { %1859 = vmatpush1.bf16.msra.mxu0 %v1858_v24  ;;  %v307_v1 = vld [vmem:[#allocation6 + $0x200] sm:$0xff]  ;;  %v1936_v3 = vpack.c.bf16 %v310_v60, %v298_v59  ;;  %v309_v4 = vld [vmem:[#allocation6 + $0x210] sm:$0xff]  ;;  %v320_v5 = vld [vmem:[#allocation6 + $0x268] sm:$0xff] }
  0xaf   : >> { %1891 = vmatpush1.bf16.msra.mxu1 %v1890_v25  ;;  %1861 = vmatprep.subr.bf16.mxu0 %v1860_v26  ;;  %v332_v6 = vld [vmem:[#allocation6 + $0x2c8] sm:$0xff]  ;;  %v322_v8 = vld [vmem:[#allocation6 + $0x278] sm:$0xff]  ;;  %v1906_v10 = vpack.c.bf16 %v307_v1, %v295_v0  ;;  %v1938_v11 = vpack.c.bf16 %v309_v4, %v297_v2  ;;  %v319_v13 = vld [vmem:[#allocation6 + $0x260] sm:$0xff] }
  0xb0   : >> { %1893 = vmatprep.subr.bf16.mxu1 %v1892_v30  ;;  %v334_v9 = vld [vmem:[#allocation6 + $0x2d8] sm:$0xff]  ;;  %v1908_v12 = vpack.c.bf16 %v332_v6, %v320_v5  ;;  %v331_v14 = vld [vmem:[#allocation6 + $0x2c0] sm:$0xff]  ;;  %v321_v15 = vld [vmem:[#allocation6 + $0x270] sm:$0xff] }
  0xb1   : >> { %v1940_v16 = vpack.c.bf16 %v334_v9, %v322_v8  ;;  %v333_v17 = vld [vmem:[#allocation6 + $0x2d0] sm:$0xff]  ;;  %v344_v18 = vld [vmem:[#allocation6 + $0x328] sm:$0xff]  ;;  %v346_v20 = vld [vmem:[#allocation6 + $0x338] sm:$0xff]  ;;  %v1910_v22 = vpack.c.bf16 %v331_v14, %v319_v13 }
  0xb2   : >> { %1863 = vmatpush1.bf16.msra.mxu0 %v1862_v36  ;;  %v356_v19 = vld [vmem:[#allocation6 + $0x388] sm:$0xff]  ;;  %v358_v21 = vld [vmem:[#allocation6 + $0x398] sm:$0xff]  ;;  %v1942_v23 = vpack.c.bf16 %v333_v17, %v321_v15  ;;  %v343_v25 = vld [vmem:[#allocation6 + $0x320] sm:$0xff] }
  0xb3   : >> { %1895 = vmatpush1.bf16.msra.mxu1 %v1894_v37  ;;  %1897 = vmatprep.subr.bf16.mxu0 %v1896_v38  ;;  %v1912_v24 = vpack.c.bf16 %v356_v19, %v344_v18  ;;  %v355_v26 = vld [vmem:[#allocation6 + $0x380] sm:$0xff]  ;;  %v345_v27 = vld [vmem:[#allocation6 + $0x330] sm:$0xff]  ;;  %v1944_v28 = vpack.c.bf16 %v358_v21, %v346_v20  ;;  %v368_v30 = vld [vmem:[#allocation6 + $0x3e8] sm:$0xff] }
  0xb4   : >> { %1929 = vmatprep.subr.bf16.mxu1 %v1928_v42  ;;  %v357_v29 = vld [vmem:[#allocation6 + $0x390] sm:$0xff]  ;;  %v380_v31 = vld [vmem:[#allocation6 + $0x448] sm:$0xff]  ;;  %v370_v32 = vld [vmem:[#allocation6 + $0x3f8] sm:$0xff]  ;;  %v1914_v34 = vpack.c.bf16 %v355_v26, %v343_v25 }
  0xb5   : >> { %564 = vmatmul.mubr.f32.vlgmr.msra.gmra.mrb[0].mxu0 %v2704_v48  ;;  %v382_v33 = vld [vmem:[#allocation6 + $0x458] sm:$0xff]  ;;  %v1946_v35 = vpack.c.bf16 %v357_v29, %v345_v27  ;;  %v1916_v36 = vpack.c.bf16 %v380_v31, %v368_v30  ;;  %v367_v37 = vld [vmem:[#allocation6 + $0x3e0] sm:$0xff]  ;;  %v369_v39 = vld [vmem:[#allocation6 + $0x3f0] sm:$0xff] }
  0xb6   : >> { %635 = vmatmul.mubr.f32.vlgmr.msra.gmra.mrb[0].mxu1 %v2704_v48  ;;  %1899 = vmatpush1.bf16.msra.mxu0 %v1898_v49  ;;  %v379_v38 = vld [vmem:[#allocation6 + $0x440] sm:$0xff]  ;;  %v1948_v40 = vpack.c.bf16 %v382_v33, %v370_v32  ;;  %v381_v41 = vld [vmem:[#allocation6 + $0x450] sm:$0xff]  ;;  %v392_v42 = vld [vmem:[#allocation6 + $0x4a8] sm:$0xff] }
  0xb7   : >> { %1931 = vmatpush1.bf16.msra.mxu1 %v1930_v50  ;;  %1901 = vmatprep.subr.bf16.mxu0 %v1900_v51  ;;  %v404_v43 = vld [vmem:[#allocation6 + $0x508] sm:$0xff]  ;;  %v394_v44 = vld [vmem:[#allocation6 + $0x4b8] sm:$0xff]  ;;  %v1918_v46 = vpack.c.bf16 %v379_v38, %v367_v37  ;;  %v1950_v47 = vpack.c.bf16 %v381_v41, %v369_v39  ;;  %v391_v50 = vld [vmem:[#allocation6 + $0x4a0] sm:$0xff] }
  0xb8   : >> { %1933 = vmatprep.subr.bf16.mxu1 %v1932_v55  ;;  %705 = vmatprep.mubr.f32.mxu0 %v2432_v7  ;;  %v406_v45 = vld [vmem:[#allocation6 + $0x518] sm:$0xff]  ;;  %v1920_v49 = vpack.c.bf16 %v404_v43, %v392_v42  ;;  %v403_v51 = vld [vmem:[#allocation6 + $0x500] sm:$0xff]  ;;  %v393_v52 = vld [vmem:[#allocation6 + $0x4b0] sm:$0xff] }
  0xb9   : >> { %776 = vmatprep.mubr.f32.mxu1 %v2432_v7  ;;  %v1952_v53 = vpack.c.bf16 %v406_v45, %v394_v44  ;;  %v405_v54 = vld [vmem:[#allocation6 + $0x510] sm:$0xff]  ;;  %v416_v55 = vld [vmem:[#allocation6 + $0x568] sm:$0xff]  ;;  %v418_v57 = vld [vmem:[#allocation6 + $0x578] sm:$0xff]  ;;  %v1922_v59 = vpack.c.bf16 %v403_v51, %v391_v50 }
  0xba   : >> { %1903 = vmatpush1.bf16.msra.mxu0 %v1902_v61  ;;  %v428_v56 = vld [vmem:[#allocation6 + $0x5c8] sm:$0xff]  ;;  %v430_v58 = vld [vmem:[#allocation6 + $0x5d8] sm:$0xff]  ;;  %v1954_v60 = vpack.c.bf16 %v405_v54, %v393_v52  ;;  %v417_v0 = vld [vmem:[#allocation6 + $0x570] sm:$0xff] }
  0xbb   : >> { %1935 = vmatpush1.bf16.msra.mxu1 %v1934_v62  ;;  %1905 = vmatprep.subr.bf16.mxu0 %v1904_v63  ;;  %v1924_v61 = vpack.c.bf16 %v428_v56, %v416_v55  ;;  %v415_v62 = vld [vmem:[#allocation6 + $0x560] sm:$0xff]  ;;  %v1956_v1 = vpack.c.bf16 %v430_v58, %v418_v57  ;;  %v429_v2 = vld [vmem:[#allocation6 + $0x5d0] sm:$0xff]  ;;  %v264_v4 = vld [vmem:[#allocation6 + $0xa8] sm:$0xff] }
  0xbc   : >> { %1937 = vmatprep.subr.bf16.mxu1 %v1936_v3  ;;  %v427_v63 = vld [vmem:[#allocation6 + $0x5c0] sm:$0xff]  ;;  %v252_v3 = vld [vmem:[#allocation6 + $0x48] sm:$0xff]  ;;  %v254_v5 = vld [vmem:[#allocation6 + $0x58] sm:$0xff]  ;;  %v1958_v9 = vpack.c.bf16 %v429_v2, %v417_v0 }
  0xbd   : >> { %v266_v6 = vld [vmem:[#allocation6 + $0xb8] sm:$0xff]  ;;  %v1926_v8 = vpack.c.bf16 %v427_v63, %v415_v62  ;;  %v253_v13 = vld [vmem:[#allocation6 + $0x50] sm:$0xff]  ;;  %v288_v17 = vld [vmem:[#allocation6 + $0x168] sm:$0xff] }
  0xbe   : >> { %1907 = vmatpush1.bf16.msra.mxu0 %v1906_v10  ;;  %v1960_v10 = vpack.c.bf16 %v264_v4, %v252_v3  ;;  %v1992_v14 = vpack.c.bf16 %v266_v6, %v254_v5  ;;  %v265_v15 = vld [vmem:[#allocation6 + $0xb0] sm:$0xff]  ;;  %v278_v18 = vld [vmem:[#allocation6 + $0x118] sm:$0xff]  ;;  %v312_v29 = vld [vmem:[#allocation6 + $0x228] sm:$0xff] }
  0xbf   : >> { %1939 = vmatpush1.bf16.msra.mxu1 %v1938_v11  ;;  %1909 = vmatprep.subr.bf16.mxu0 %v1908_v12  ;;  %v251_v11 = vld [vmem:[#allocation6 + $0x40] sm:$0xff]  ;;  %v290_v19 = vld [vmem:[#allocation6 + $0x178] sm:$0xff]  ;;  %v1994_v21 = vpack.c.bf16 %v265_v15, %v253_v13  ;;  %v277_v25 = vld [vmem:[#allocation6 + $0x110] sm:$0xff] }
  0xc0   : >> { %1941 = vmatprep.subr.bf16.mxu1 %v1940_v16  ;;  %v263_v12 = vld [vmem:[#allocation6 + $0xa0] sm:$0xff]  ;;  %v276_v16 = vld [vmem:[#allocation6 + $0x108] sm:$0xff]  ;;  %v1996_v26 = vpack.c.bf16 %v290_v19, %v278_v18  ;;  %v289_v27 = vld [vmem:[#allocation6 + $0x170] sm:$0xff] }
  0xc1   : >> { %v1962_v20 = vpack.c.bf16 %v263_v12, %v251_v11  ;;  %v302_v30 = vld [vmem:[#allocation6 + $0x1d8] sm:$0xff]  ;;  %v1998_v33 = vpack.c.bf16 %v289_v27, %v277_v25  ;;  %v301_v37 = vld [vmem:[#allocation6 + $0x1d0] sm:$0xff]  ;;  %v336_v41 = vld [vmem:[#allocation6 + $0x2e8] sm:$0xff] }
  0xc2   : >> { %1911 = vmatpush1.bf16.msra.mxu0 %v1910_v22  ;;  %v1964_v22 = vpack.c.bf16 %v288_v17, %v276_v16  ;;  %v314_v31 = vld [vmem:[#allocation6 + $0x238] sm:$0xff]  ;;  %v313_v39 = vld [vmem:[#allocation6 + $0x230] sm:$0xff]  ;;  %v360_v54 = vld [vmem:[#allocation6 + $0x3a8] sm:$0xff] }
  0xc3   : >> { %1943 = vmatpush1.bf16.msra.mxu1 %v1942_v23  ;;  %1913 = vmatprep.subr.bf16.mxu0 %v1912_v24  ;;  %v275_v23 = vld [vmem:[#allocation6 + $0x100] sm:$0xff]  ;;  %v2000_v38 = vpack.c.bf16 %v314_v31, %v302_v30  ;;  %v326_v42 = vld [vmem:[#allocation6 + $0x298] sm:$0xff]  ;;  %v2002_v45 = vpack.c.bf16 %v313_v39, %v301_v37  ;;  %v325_v50 = vld [vmem:[#allocation6 + $0x290] sm:$0xff]  ;;  %v439_v39 = vlaneseq }
  0xc4   : >> { %1945 = vmatprep.subr.bf16.mxu1 %v1944_v28  ;;  %v287_v24 = vld [vmem:[#allocation6 + $0x160] sm:$0xff]  ;;  %v300_v28 = vld [vmem:[#allocation6 + $0x1c8] sm:$0xff]  ;;  %v338_v43 = vld [vmem:[#allocation6 + $0x2f8] sm:$0xff] }
  0xc5   : >> { %v1966_v32 = vpack.c.bf16 %v287_v24, %v275_v23  ;;  %v2004_v51 = vpack.c.bf16 %v338_v43, %v326_v42  ;;  %v337_v52 = vld [vmem:[#allocation6 + $0x2f0] sm:$0xff]  ;;  %v350_v55 = vld [vmem:[#allocation6 + $0x358] sm:$0xff]  ;;  %v372_v0 = vld [vmem:[#allocation6 + $0x408] sm:$0xff] }
  0xc6   : >> { %1915 = vmatpush1.bf16.msra.mxu0 %v1914_v34  ;;  %v1968_v34 = vpack.c.bf16 %v312_v29, %v300_v28  ;;  %v362_v56 = vld [vmem:[#allocation6 + $0x3b8] sm:$0xff]  ;;  %v361_v63 = vld [vmem:[#allocation6 + $0x3b0] sm:$0xff]  ;;  %v396_v13 = vld [vmem:[#allocation6 + $0x4c8] sm:$0xff] }
  0xc7   : >> { %1947 = vmatpush1.bf16.msra.mxu1 %v1946_v35  ;;  %1917 = vmatprep.subr.bf16.mxu0 %v1916_v36  ;;  %v299_v35 = vld [vmem:[#allocation6 + $0x1c0] sm:$0xff]  ;;  %v2008_v62 = vpack.c.bf16 %v362_v56, %v350_v55  ;;  %v374_v2 = vld [vmem:[#allocation6 + $0x418] sm:$0xff]  ;;  %v385_v12 = vld [vmem:[#allocation6 + $0x470] sm:$0xff] }
  0xc8   : >> { %1949 = vmatprep.subr.bf16.mxu1 %v1948_v40  ;;  %v311_v36 = vld [vmem:[#allocation6 + $0x220] sm:$0xff]  ;;  %v324_v40 = vld [vmem:[#allocation6 + $0x288] sm:$0xff]  ;;  %v386_v3 = vld [vmem:[#allocation6 + $0x478] sm:$0xff] }
  0xc9   : >> { %v1970_v44 = vpack.c.bf16 %v311_v36, %v299_v35  ;;  %v2012_v11 = vpack.c.bf16 %v386_v3, %v374_v2  ;;  %v398_v15 = vld [vmem:[#allocation6 + $0x4d8] sm:$0xff]  ;;  %v409_v24 = vld [vmem:[#allocation6 + $0x530] sm:$0xff]  ;;  %v420_v25 = vld [vmem:[#allocation6 + $0x588] sm:$0xff] }
  0xca   : >> { %1919 = vmatpush1.bf16.msra.mxu0 %v1918_v46  ;;  %v1972_v46 = vpack.c.bf16 %v336_v41, %v324_v40  ;;  %v410_v16 = vld [vmem:[#allocation6 + $0x538] sm:$0xff]  ;;  %v421_v35 = vld [vmem:[#allocation6 + $0x590] sm:$0xff]  ;;  %v440_v40 = vshrl.u32 %v439_v39, 7  ;;  %v435_v42 = vld [vmem:[#allocation8] sm:$0xff] }
  0xcb   : >> { %1951 = vmatpush1.bf16.msra.mxu1 %v1950_v47  ;;  %1921 = vmatprep.subr.bf16.mxu0 %v1920_v49  ;;  %v323_v47 = vld [vmem:[#allocation6 + $0x280] sm:$0xff]  ;;  %v2016_v23 = vpack.c.bf16 %v410_v16, %v398_v15  ;;  %v422_v27 = vld [vmem:[#allocation6 + $0x598] sm:$0xff]  ;;  %v433_v36 = vld [vmem:[#allocation6 + $0x5f0] sm:$0xff] }
  0xcc   : >> { %1953 = vmatprep.subr.bf16.mxu1 %v1952_v53  ;;  %v335_v49 = vld [vmem:[#allocation6 + $0x2e0] sm:$0xff]  ;;  %v348_v53 = vld [vmem:[#allocation6 + $0x348] sm:$0xff]  ;;  %v434_v28 = vld [vmem:[#allocation6 + $0x5f8] sm:$0xff]  ;;  %v441_v41 = vsub.s32 0, %v440_v40  ;;  %v449_v43 = vsub.s32 2, %v440_v40 }
  0xcd   : >> { %v1974_v57 = vpack.c.bf16 %v335_v49, %v323_v47  ;;  %v1976_v58 = vpack.c.bf16 %v360_v54, %v348_v53 }
  0xce   : >> { %1923 = vmatpush1.bf16.msra.mxu0 %v1922_v59  ;;  %v347_v59 = vld [vmem:[#allocation6 + $0x340] sm:$0xff]  ;;  %v450_v47 = vrot.slane %v435_v42, %v449_v43 }
  0xcf   : >> { %1955 = vmatpush1.bf16.msra.mxu1 %v1954_v60  ;;  %1925 = vmatprep.subr.bf16.mxu0 %v1924_v61  ;;  %v359_v60 = vld [vmem:[#allocation6 + $0x3a0] sm:$0xff]  ;;  %v349_v61 = vld [vmem:[#allocation6 + $0x350] sm:$0xff] }
  0xd0   : >> { %1957 = vmatprep.subr.bf16.mxu1 %v1956_v1  ;;  %v384_v1 = vld [vmem:[#allocation6 + $0x468] sm:$0xff]  ;;  %v1978_v4 = vpack.c.bf16 %v359_v60, %v347_v59  ;;  %v2010_v5 = vpack.c.bf16 %v361_v63, %v349_v61  ;;  %v461_v59 = vsub.s32 5, %v440_v40  ;;  %v469_v60 = vsub.s32 7, %v440_v40 }
  0xd1   : >> { %v1980_v6 = vpack.c.bf16 %v384_v1, %v372_v0 }
  0xd2   : >> { %1927 = vmatpush1.bf16.msra.mxu0 %v1926_v8  ;;  %v371_v8 = vld [vmem:[#allocation6 + $0x400] sm:$0xff]  ;;  %v462_v63 = vrot.slane %v435_v42, %v461_v59  ;;  %v470_v0 = vrot.slane %v435_v42, %v469_v60 }
  0xd3   : >> { %1959 = vmatpush1.bf16.msra.mxu1 %v1958_v9  ;;  %1961 = vmatprep.subr.bf16.mxu0 %v1960_v10  ;;  %v383_v9 = vld [vmem:[#allocation6 + $0x460] sm:$0xff]  ;;  %v373_v10 = vld [vmem:[#allocation6 + $0x410] sm:$0xff] }
  0xd4   : >> { %1993 = vmatprep.subr.bf16.mxu1 %v1992_v14  ;;  %v408_v14 = vld [vmem:[#allocation6 + $0x528] sm:$0xff]  ;;  %v1982_v17 = vpack.c.bf16 %v383_v9, %v371_v8  ;;  %v2014_v18 = vpack.c.bf16 %v385_v12, %v373_v10 }
  0xd5   : >> { %706 = vmatmul.mubr.f32.vlgmr.msra.gmra.mrb[2].mxu0 %v2704_v48  ;;  %v1984_v19 = vpack.c.bf16 %v408_v14, %v396_v13  ;;  %v436_v10 = vld [vmem:[#allocation8 + $0x8] sm:$0xf] }
  0xd6   : >> { %777 = vmatmul.mubr.f32.vlgmr.msra.gmra.mrb[2].mxu1 %v2704_v48  ;;  %1963 = vmatpush1.bf16.msra.mxu0 %v1962_v20  ;;  %v395_v20 = vld [vmem:[#allocation6 + $0x4c0] sm:$0xff]  ;;  %v482_v12 = vrot.slane %v436_v10, %v449_v43 }
  0xd7   : >> { %1995 = vmatpush1.bf16.msra.mxu1 %v1994_v21  ;;  %1965 = vmatprep.subr.bf16.mxu0 %v1964_v22  ;;  %v407_v21 = vld [vmem:[#allocation6 + $0x520] sm:$0xff]  ;;  %v397_v22 = vld [vmem:[#allocation6 + $0x4d0] sm:$0xff] }
  0xd8   : >> { %1997 = vmatprep.subr.bf16.mxu1 %v1996_v26  ;;  %847 = vmatprep.mubr.f32.mxu0 %v2432_v7  ;;  %v432_v26 = vld [vmem:[#allocation6 + $0x5e8] sm:$0xff]  ;;  %v1986_v29 = vpack.c.bf16 %v407_v21, %v395_v20  ;;  %v2018_v30 = vpack.c.bf16 %v409_v24, %v397_v22 }
  0xd9   : >> { %918 = vmatprep.mubr.f32.mxu1 %v2432_v7  ;;  %v2006_v7 = vpack.c.bf16 %v337_v52, %v325_v50  ;;  %v1988_v31 = vpack.c.bf16 %v432_v26, %v420_v25 }
  0xda   : >> { %1967 = vmatpush1.bf16.msra.mxu0 %v1966_v32  ;;  %v419_v32 = vld [vmem:[#allocation6 + $0x580] sm:$0xff] }
  0xdb   : >> { %1999 = vmatpush1.bf16.msra.mxu1 %v1998_v33  ;;  %1969 = vmatprep.subr.bf16.mxu0 %v1968_v34  ;;  %v431_v33 = vld [vmem:[#allocation6 + $0x5e0] sm:$0xff]  ;;  %v2020_v34 = vpack.c.bf16 %v434_v28, %v422_v27 }
  0xdc   : >> { %2001 = vmatprep.subr.bf16.mxu1 %v2000_v38  ;;  %v1990_v37 = vpack.c.bf16 %v431_v33, %v419_v32  ;;  %v2022_v38 = vpack.c.bf16 %v433_v36, %v421_v35 }
  0xde   : >> { %1971 = vmatpush1.bf16.msra.mxu0 %v1970_v44  ;;  %v445_v44 = vsub.s32 1, %v440_v40 }
  0xdf   : >> { %2003 = vmatpush1.bf16.msra.mxu1 %v2002_v45  ;;  %1973 = vmatprep.subr.bf16.mxu0 %v1972_v46  ;;  %v453_v45 = vsub.s32 3, %v440_v40  ;;  %v442_v46 = vrot.slane %v435_v42, %v441_v41 }
  0xe0   : >> { %2005 = vmatprep.subr.bf16.mxu1 %v2004_v51  ;;  %v446_v49 = vrot.slane %v435_v42, %v445_v44  ;;  %v478_v13 = vrot.slane %v436_v10, %v445_v44 }
  0xe1   : >> { %v454_v50 = vrot.slane %v435_v42, %v453_v45  ;;  %v486_v14 = vrot.slane %v436_v10, %v453_v45 }
  0xe2   : >> { %1975 = vmatpush1.bf16.msra.mxu0 %v1974_v57 }
  0xe3   : >> { %2007 = vmatpush1.bf16.msra.mxu1 %v2006_v7  ;;  %1977 = vmatprep.subr.bf16.mxu0 %v1976_v58  ;;  %v457_v7 = vsub.s32 4, %v440_v40  ;;  %v465_v58 = vsub.s32 6, %v440_v40 }
  0xe4   : >> { %2009 = vmatprep.subr.bf16.mxu1 %v2008_v62 }
  0xe5   : >> { %v458_v61 = vrot.slane %v435_v42, %v457_v7  ;;  %v466_v62 = vrot.slane %v435_v42, %v465_v58 }
  0xe6   : >> { %1979 = vmatpush1.bf16.msra.mxu0 %v1978_v4 }
  0xe7   : >> { %2011 = vmatpush1.bf16.msra.mxu1 %v2010_v5  ;;  %1981 = vmatprep.subr.bf16.mxu0 %v1980_v6 }
  0xe8   : >> { %2013 = vmatprep.subr.bf16.mxu1 %v2012_v11  ;;  %v474_v11 = vrot.slane %v436_v10, %v441_v41 }
  0xea   : >> { %1983 = vmatpush1.bf16.msra.mxu0 %v1982_v17 }
  0xeb   : >> { %2015 = vmatpush1.bf16.msra.mxu1 %v2014_v18  ;;  %1985 = vmatprep.subr.bf16.mxu0 %v1984_v19 }
  0xec   : >> { %2017 = vmatprep.subr.bf16.mxu1 %v2016_v23 }
  0xee   : >> { %1987 = vmatpush1.bf16.msra.mxu0 %v1986_v29 }
  0xef   : >> { %2019 = vmatpush1.bf16.msra.mxu1 %v2018_v30  ;;  %1989 = vmatprep.subr.bf16.mxu0 %v1988_v31 }
  0xf0   : >> { %2021 = vmatprep.subr.bf16.mxu1 %v2020_v34 }
  0xf2   : >> { %1991 = vmatpush1.bf16.msra.mxu0 %v1990_v37 }
  0xf3   : >> { %2023 = vmatpush1.bf16.msra.mxu1 %v2022_v38 }
  0xf5   : >> { %848 = vmatmul.mubr.f32.vlgmr.msra.gmra.mrb[4].mxu0 %v2704_v48 }
  0xf6   : >> { %919 = vmatmul.mubr.f32.vlgmr.msra.gmra.mrb[4].mxu1 %v2704_v48 }
 0x188   : >> { %v565_v51 = vpop.f32.mrb[0].mxu0 }
 0x189   : >> { %v566_v52 = vadd.f32 %v565_v51, %v442_v46  ;;  %v636_v53 = vpop.f32.mrb[0].mxu1  ;;  %v567_v54 = vpop.f32.mrb[1].mxu0 }
 0x18a   : >> { %v637_v55 = vadd.f32 %v636_v53, %v450_v47  ;;  %v568_v48 = vadd.f32 %v567_v54, %v446_v49  ;;  %v638_v56 = vpop.f32.mrb[1].mxu1 }
 0x18b   : >> { %930 = vst [vmem:[%s2718_s4] sm:$0xff] %v566_v52  ;;  %v639_v57 = vadd.f32 %v638_v56, %v454_v50 }
 0x18c   : >> { %932 = vst [vmem:[%s2718_s4 + $0x10] sm:$0xff] %v637_v55  ;;  %931 = vst [vmem:[%s2718_s4 + $0x8] sm:$0xff] %v568_v48 }
 0x18d   : >> { %933 = vst [vmem:[%s2718_s4 + $0x18] sm:$0xff] %v639_v57 }
 0x1a8   : >> { %v707_v1 = vpop.f32.mrb[2].mxu0 }
 0x1a9   : >> { %v708_v2 = vadd.f32 %v707_v1, %v458_v61  ;;  %v778_v3 = vpop.f32.mrb[2].mxu1  ;;  %v709_v4 = vpop.f32.mrb[3].mxu0 }
 0x1aa   : >> { %v779_v5 = vadd.f32 %v778_v3, %v466_v62  ;;  %v710_v6 = vadd.f32 %v709_v4, %v462_v63  ;;  %v780_v8 = vpop.f32.mrb[3].mxu1 }
 0x1ab   : >> { %934 = vst [vmem:[%s2718_s4 + $0x20] sm:$0xff] %v708_v2  ;;  %v781_v9 = vadd.f32 %v780_v8, %v470_v0 }
 0x1ac   : >> { %936 = vst [vmem:[%s2718_s4 + $0x30] sm:$0xff] %v779_v5  ;;  %935 = vst [vmem:[%s2718_s4 + $0x28] sm:$0xff] %v710_v6 }
 0x1ad   : >> { %937 = vst [vmem:[%s2718_s4 + $0x38] sm:$0xff] %v781_v9 }
 0x1c7   : > { %238 = sbr.rel (!%p236_p1) target bundleno = 145 (0x91), region = 99 }
 0x1c8   : >> { %v849_v15 = vpop.f32.mrb[4].mxu0 }
 0x1c9   : >> { %v850_v16 = vadd.f32 %v849_v15, %v474_v11  ;;  %v920_v17 = vpop.f32.mrb[4].mxu1  ;;  %v851_v18 = vpop.f32.mrb[5].mxu0 }
 0x1ca   : >> { %v921_v19 = vadd.f32 %v920_v17, %v482_v12  ;;  %v852_v20 = vadd.f32 %v851_v18, %v478_v13  ;;  %v922_v21 = vpop.f32.mrb[5].mxu1 }
 0x1cb   : >> { %938 = vst [vmem:[%s2718_s4 + $0x40] sm:$0xff] %v850_v16  ;;  %v923_v22 = vadd.f32 %v922_v21, %v486_v14 }
 0x1cc   : >> { %940 = vst [vmem:[%s2718_s4 + $0x50] sm:$0xff] %v921_v19  ;;  %939 = vst [vmem:[%s2718_s4 + $0x48] sm:$0xff] %v852_v20 }
 0x1cd   : >> { %941 = vst [vmem:[%s2718_s4 + $0x58] sm:$0xff] %v923_v22 }
 0x1ce PF: > { %s1737_s7 = sshll.u32 %s2403_s18, 3  ;;  %v2433_v25 = vmov 0.0|0.0   ;;  %vm2434_vm0 = vmmov 0   ;;  %v2435_v27 = vmov 0.0   ;;  %vm1023_vm1 = vcmask 130048   ;;  %s1744_s29 = sshll.u32 %s2403_s18, 2 }
 0x1cf   : > { %2024 = vmatprep.subr.bf16.mxu0 %v2433_v25  ;;  %1780 = vmatprep.mubr.msk.f32.mxu0 %vm2434_vm0, %v2435_v27  ;;  %s943_s5 = sshra.s32 %s1737_s7, 3  ;;  %s1745_s10 = sshll.u32 %s2407_s19, 3 }
 0x1d0   : > { %s1751_s6 = smul.u32 96, %s943_s5  ;;  %2027 = vmatprep.subr.bf16.mxu1 %v2433_v25  ;;  %1787 = vmatprep.mubr.msk.f32.mxu1 %vm2434_vm0, %v2435_v27  ;;  %s1602_s23 = sadd.s32 %s1745_s10, %s1744_s29 }
 0x1d1   : > { %s1746_s24 = sshll.u32 %s1602_s23, 7  ;;  %s1606_s30 = sshll.u32 %s2689_s12, 4  ;;  %s2789_s30 = int_to_ptr.vmem [resolvable:$true] %s1606_s30 }
 0x1d2   : > { %s2743_s1 = scalar_lea.vmem [#allocation2], %s1751_s6  ;;  %s2787_s27 = scalar_lea.hbm %s2855_s3, %s1746_s24 }
 0x1d3   : > { %s1590_s18 = scalar_lea.sflag [#allocation5], %s227_s20  ;;  %s2289_s19 = scalar_lea.vmem %s2789_s30, 512 }
 0x1d4   : > { %v949_v23 = vld [vmem:[#allocation2 + $0x20] sm:$0xff]  ;;  %v1110_v38 = vld [vmem:[#allocation2 + $0x28] sm:$0xff]  ;;  %v1270_v56 = vld [vmem:[#allocation2 + $0x30] sm:$0xff]  ;;  %p2290_p3 = scmp.ne.s32.totalorder %s2789_s30, %s2289_s19  ;;  %p2885_p13 = scmp.ne.s32.totalorder %s2871_s28, 0 }
 0x1d5   : > { %v950_v24 = vld [vmem:[#allocation2 + $0x80] sm:$0xff]  ;;  %v1111_v39 = vld [vmem:[#allocation2 + $0x88] sm:$0xff]  ;;  %v1271_v57 = vld [vmem:[#allocation2 + $0x90] sm:$0xff]  ;;  %s2436_s15 = smov [#allocation9]  }
 0x1d6   : > { %v2025_v26 = vpack.c.bf16 %v950_v24, %v949_v23  ;;  %v948_v28 = vld [vmem:[%s2743_s1] sm:$0xff]  ;;  %v2031_v40 = vpack.c.bf16 %v1111_v39, %v1110_v38  ;;  %v1109_v42 = vld [vmem:[%s2743_s1 + $0x8] sm:$0xff]  ;;  %v2037_v7 = vpack.c.bf16 %v1271_v57, %v1270_v56  ;;  %v1269_v61 = vld [vmem:[%s2743_s1 + $0x10] sm:$0xff]  ;;  %p2291_p7 = pnand %p2290_p3, %p2885_p13  ;;  %s2293_s8 = sshll.u32 %s2436_s15, 4  ;;  %s2294_s8 = int_to_ptr.vmem [resolvable:$false] %s2293_s8 }
 0x1d7   : > { %v951_v32 = vld [vmem:[#allocation2 + $0x40] sm:$0xff]  ;;  %v1112_v50 = vld [vmem:[#allocation2 + $0x48] sm:$0xff]  ;;  %v1272_v3 = vld [vmem:[#allocation2 + $0x50] sm:$0xff]  ;;  %s2295_s4 = scalar_lea.vmem %s2294_s8, 1024  ;;  %p2296_p11 = scmp.lt.s32.totalorder %s2789_s30, %s2294_s8 }
 0x1d8   : > { %2026 = vmatpush3.bf16.xpose.msra.mxu0 %v2025_v26  ;;  %v952_v33 = vld [vmem:[#allocation2 + $0xa0] sm:$0xff]  ;;  %v1113_v51 = vld [vmem:[#allocation2 + $0xa8] sm:$0xff]  ;;  %v1273_v4 = vld [vmem:[#allocation2 + $0xb0] sm:$0xff]  ;;  %p2292_p9 = pneg %p2291_p7  ;;  %p2297_p5 = scmp.lt.s32.totalorder %s2295_s4, %s2289_s19 }
 0x1d9   : > { %2033 = vmatprep.subr.bf16.mxu0 %v2433_v25  ;;  %v2028_v34 = vpack.c.bf16 %v952_v33, %v951_v32  ;;  %v2034_v52 = vpack.c.bf16 %v1113_v51, %v1112_v50  ;;  %v2040_v5 = vpack.c.bf16 %v1273_v4, %v1272_v3  ;;  %v1430_v10 = vld [vmem:[#allocation2 + $0x38] sm:$0xff] }
 0x1da   : > { %v1431_v11 = vld [vmem:[#allocation2 + $0x98] sm:$0xff]  ;;  %p2298_p8 = por %p2297_p5, %p2296_p11 }
 0x1db   : > { %2029 = vmatpush3.bf16.msra.mxu1 %v2028_v34  ;;  %v2043_v12 = vpack.c.bf16 %v1431_v11, %v1430_v10  ;;  %v1429_v15 = vld [vmem:[%s2743_s1 + $0x18] sm:$0xff] }
 0x1dc   : > { %2030 = vmatprep.subr.bf16.mxu1 %v2433_v25  ;;  %v1433_v26 = vld [vmem:[#allocation2 + $0xb8] sm:$0xff]  ;;  %p2299_p12 = pnand %p2298_p8, %p2292_p9 }
 0x1df   : > { %1781 = vmatmul.mubr.f32.vlgmr.msra.gmra.mrb[0].mxu0 %v948_v28 }
 0x1e0   : > { %1801 = vmatprep.mubr.msk.f32.mxu0 %vm2434_vm0, %v2435_v27  ;;  %2035 = vmatpush3.bf16.msra.mxu0 %v2034_v52 }
 0x1e1   : > { %2036 = vmatprep.subr.bf16.mxu0 %v2433_v25 }
 0x2b2   : > { %v1019_v29 = vpop.f32.mrb[0].mxu0 }
 0x2b3   : > { %v1782_v30 = vpop.f32.mrb[1].mxu0  ;;  %v1024_v31 = vsel %vm1023_vm1, %v1019_v29, -inf }
 0x2b4   : > { %1025 = vmax.xlane.f32.xlu0 %v1024_v31 }
 0x341   : > { %v1026_v35 = vpop.xlane.xlu0 %1025 }
 0x342   : > { %v1027_v36 = vsub.f32 %v1019_v29, %v1026_v35 }
 0x344   : > { %v1028_v37 = vmul.f32 1.442695, %v1027_v36 }
 0x346   : > { %2187 = vpow2.f32 %v1028_v37 }
 0x350   : > { %v2188_v41 = vpop.eup %2187 }
 0x351   : > { %1788 = vmatmul.mubr.msk.f32.vlgmr.msra.gmra.mrb[0].mxu1 %vm1023_vm1, %v2188_v41  ;;  %v1030_v49 = vsel %vm1023_vm1, %v2188_v41, 0.0 }
 0x352   : > { %2032 = vmatpush3.bf16.xpose.msra.mxu1 %v2031_v40  ;;  %1794 = vmatprep.mubr.msk.f32.mxu1 %vm2434_vm0, %v2435_v27 }
 0x353   : > { %2039 = vmatprep.subr.bf16.mxu1 %v2433_v25 }
 0x359   : > { %1795 = vmatmul.mubr.f32.vlgmr.msra.gmra.mrb[2].mxu1 %v1109_v42 }
 0x35a   : > { %1815 = vmatprep.mubr.msk.f32.mxu1 %vm2434_vm0, %v2435_v27  ;;  %2041 = vmatpush3.bf16.msra.mxu1 %v2040_v5 }
 0x35b   : > { %2042 = vmatprep.subr.bf16.mxu1 %v2433_v25 }
 0x424   : > { %v1102_v43 = vpop.f32.mrb[0].mxu1 }
 0x425   : > { %v1789_v44 = vpop.f32.mrb[1].mxu1 }
 0x42c   : > { %v1180_v45 = vpop.f32.mrb[2].mxu1 }
 0x42d   : > { %v1796_v46 = vpop.f32.mrb[3].mxu1  ;;  %v1184_v47 = vsel %vm1023_vm1, %v1180_v45, -inf }
 0x42e   : > { %1185 = vmax.xlane.f32.xlu0 %v1184_v47 }
 0x432   : > { %1031 = vadd.xlane.f32.xlu0 %v1030_v49 }
 0x4bb   : > { %v1186_v53 = vpop.xlane.xlu0 %1185 }
 0x4bc   : > { %v1187_v54 = vsub.f32 %v1180_v45, %v1186_v53 }
 0x4be   : > { %v1188_v55 = vmul.f32 1.442695, %v1187_v54 }
 0x4bf   : > { %v1032_v48 = vpop.xlane.xlu0 %1031 }
 0x4c0   : > { %2189 = vpow2.f32 %v1188_v55 }
 0x4c1   : > { %2191 = vrcp.f32 %v1032_v48 }
 0x4ca   : > { %v2190_v58 = vpop.eup %2189 }
 0x4cb   : > { %v2192_v59 = vpop.eup %2191  ;;  %1802 = vmatmul.mubr.msk.f32.vlgmr.msra.gmra.mrb[2].mxu0 %vm1023_vm1, %v2190_v58  ;;  %v1190_v24 = vsel %vm1023_vm1, %v2190_v58, 0.0 }
 0x4cc   : > { %v1107_v60 = vmul.f32 %v2192_v59, %v1102_v43  ;;  %2038 = vmatpush3.bf16.xpose.msra.mxu0 %v2037_v7  ;;  %1808 = vmatprep.mubr.msk.f32.mxu0 %vm2434_vm0, %v2435_v27 }
 0x4cd   : > { %2045 = vmatprep.subr.bf16.mxu0 %v2433_v25  ;;  %v1432_v25 = vld [vmem:[#allocation2 + $0x58] sm:$0xff] }
 0x4ce   : > { %1108 = vst [vmem:[%s2689_s12] sm:$0xff] %v1107_v60 }
 0x4d3   : > { %1809 = vmatmul.mubr.f32.vlgmr.msra.gmra.mrb[4].mxu0 %v1269_v61 }
 0x4d4   : > { %1829 = vmatprep.mubr.msk.f32.mxu0 %vm2434_vm0, %v2435_v27 }
 0x59e   : > { %v1262_v62 = vpop.f32.mrb[2].mxu0 }
 0x59f   : > { %v1803_v63 = vpop.f32.mrb[3].mxu0 }
 0x5a6   : > { %v1340_v0 = vpop.f32.mrb[4].mxu0 }
 0x5a7   : > { %v1810_v1 = vpop.f32.mrb[5].mxu0  ;;  %v1344_v2 = vsel %vm1023_vm1, %v1340_v0, -inf }
 0x5a8   : > { %1345 = vmax.xlane.f32.xlu1 %v1344_v2 }
 0x635   : > { %v1346_v6 = vpop.xlane.xlu1 %1345 }
 0x636   : > { %v1347_v8 = vsub.f32 %v1340_v0, %v1346_v6 }
 0x638   : > { %v1348_v9 = vmul.f32 1.442695, %v1347_v8 }
 0x63a   : > { %2193 = vpow2.f32 %v1348_v9 }
 0x644   : > { %v2194_v13 = vpop.eup %2193 }
 0x645   : > { %1816 = vmatmul.mubr.msk.f32.vlgmr.msra.gmra.mrb[4].mxu1 %vm1023_vm1, %v2194_v13  ;;  %v1350_v14 = vsel %vm1023_vm1, %v2194_v13, 0.0 }
 0x646   : > { %2044 = vmatpush3.bf16.xpose.msra.mxu1 %v2043_v12  ;;  %1351 = vadd.xlane.f32.xlu0 %v1350_v14 }
 0x647   : > { %1822 = vmatprep.mubr.msk.f32.mxu1 %vm2434_vm0, %v2435_v27  ;;  %v2046_v27 = vpack.c.bf16 %v1433_v26, %v1432_v25 }
 0x649   : > { %2047 = vmatpush3.bf16.msra.mxu0 %v2046_v27 }
 0x64d   : > { %1823 = vmatmul.mubr.f32.vlgmr.msra.gmra.mrb[6].mxu1 %v1429_v15 }
 0x6d3   : > { %v1352_v16 = vpop.xlane.xlu0 %1351 }
 0x6d4   : > { %2195 = vrcp.f32 %v1352_v16 }
 0x6de   : > { %v2196_v17 = vpop.eup %2195 }
 0x718   : > { %v1422_v18 = vpop.f32.mrb[4].mxu1 }
 0x719   : > { %v1427_v19 = vmul.f32 %v2196_v17, %v1422_v18  ;;  %v1817_v20 = vpop.f32.mrb[5].mxu1 }
 0x71b   : > { %1428 = vst [vmem:[%s2689_s12 + $0x10] sm:$0xff] %v1427_v19 }
 0x720   : > { %v1500_v21 = vpop.f32.mrb[6].mxu1 }
 0x721   : > { %v1824_v22 = vpop.f32.mrb[7].mxu1  ;;  %v1504_v23 = vsel %vm1023_vm1, %v1500_v21, -inf }
 0x722   : > { %1505 = vmax.xlane.f32.xlu1 %v1504_v23 }
 0x726   : > { %1191 = vadd.xlane.f32.xlu1 %v1190_v24 }
 0x7af   : > { %v1506_v28 = vpop.xlane.xlu1 %1505 }
 0x7b0   : > { %v1507_v29 = vsub.f32 %v1500_v21, %v1506_v28 }
 0x7b2   : > { %v1508_v30 = vmul.f32 1.442695, %v1507_v29 }
 0x7b3   : > { %v1192_v31 = vpop.xlane.xlu1 %1191 }
 0x7b4   : > { %2197 = vpow2.f32 %v1508_v30 }
 0x7b5   : > { %2199 = vrcp.f32 %v1192_v31 }
 0x7be   : > { %v2198_v32 = vpop.eup %2197 }
 0x7bf   : > { %v2200_v33 = vpop.eup %2199  ;;  %1830 = vmatmul.mubr.msk.f32.vlgmr.msra.gmra.mrb[6].mxu0 %vm1023_vm1, %v2198_v32  ;;  %v1510_v34 = vsel %vm1023_vm1, %v2198_v32, 0.0 }
 0x7c0   : > { %v1267_v35 = vmul.f32 %v2200_v33, %v1262_v62  ;;  %1511 = vadd.xlane.f32.xlu1 %v1510_v34 }
 0x7c2   : > { %1268 = vst [vmem:[%s2689_s12 + $0x8] sm:$0xff] %v1267_v35 }
 0x84d   : > { %v1512_v36 = vpop.xlane.xlu1 %1511 }
 0x84e   : > { %2201 = vrcp.f32 %v1512_v36 }
 0x858   : > { %v2202_v37 = vpop.eup %2201 }
 0x892   : > { %v1582_v38 = vpop.f32.mrb[6].mxu0 }
 0x893   : > { %v1587_v39 = vmul.f32 %v2202_v37, %v1582_v38  ;;  %v1831_v40 = vpop.f32.mrb[7].mxu0 }
 0x895   : > { %1588 = vst [vmem:[%s2689_s12 + $0x18] sm:$0xff] %v1587_v39 }
 0x896   : > { %2302 = shalt.err (!%p2299_p12)
}
 0x897   : > { %s2303_s20 = scalar_lea.hbm %s2787_s27, 512  ;;  %s2307_s5 = scalar_lea.hbm %s2855_s3, 2048 }
 0x898   : > { %p2304_p2 = scmp.ne.s32.totalorder %s2787_s27, %s2303_s20  ;;  %p2308_p0 = scmp.lt.u32.totalorder %s2787_s27, %s2855_s3 }
 0x899   : > { %p2309_p4 = scmp.lt.u32.totalorder %s2307_s5, %s2303_s20  ;;  %p2311_p3 = scmp.lt.u32.totalorder %s2303_s20, %s2787_s27 }
 0x89a   : > { %p2305_p6 = pnand %p2304_p2, %p2885_p13 }
 0x89b   : > { %p2310_p1 = por %p2309_p4, %p2308_p0 }
 0x89c   : > { %p2306_p10 = pneg %p2305_p6 }
 0x89d   : > { %p2312_p7 = por %p2311_p3, %p2310_p1 }
 0x89f   : > { %p2313_p9 = pnand %p2312_p7, %p2306_p10 }
 0x8a1   : > { %2316 = shalt.err (!%p2313_p9)
}
 0x8a2   : > { %2058 = dma.vmem_to_hbm [thread:$0]  (%p2885_p13), %s2789_s30, 512, %s2787_s27, %s1590_s18  }
 0x8a3 PF: > { %s2886_s29 = sld [smem:[#allocation13_spill]]  ;;  %s2887_s10 = sld [smem:[#allocation15_spill]] }
 0x8a4   : > { %p2080_p11 = scmp.ge.s32.totalorder %s2419_s22, 2 }
 0x8a9   : > { %s1618_s23 = sand.u32 1, %s2886_s29   ;;  %p2888_p5 = scmp.ne.s32.totalorder %s2887_s10, 0 }
 0x8aa   : > { %s1619_s24 = scalar_lea.sflag [#allocation5], %s1618_s23 }
 0x8ab   : > { %p2072_p8 = pnand %p2080_p11, %p2888_p5 }
 0x8ad   : > { %2374 = dma.done.wait (!%p2072_p8), %s1619_s24, 512  }
 0x8ae   : > { %2376 = vsyncadd (!%p2072_p8), %s1619_s24, 4294966784  ;;  %s20_s22 = sadd.s32 1, %s2419_s22   ;;  %s2889_s18 = sld [smem:[#allocation14_spill]] }
 0x8af   : > { %p17_p12 = scmp.ge.s32.totalorder %s20_s22, 6   ;;  %s2890_s20 = sld [smem:[#allocation16_spill]] }
 0x8b0   : > { %s2891_s12 = smov %s2383_s13  ;;  %s2892_s13 = smov %s2387_s14 }
 0x8b1   : > { %s2893_s14 = smov %s2632_s2  ;;  %s2894_s15 = smov %s2395_s16 }
 0x8b2   : > { %s2895_s16 = smov %s2399_s17  ;;  %s2896_s17 = smov %s2627_s26 }
 0x8b3   : > { %s2897_s19 = smov %s2415_s21  ;;  %s2898_s21 = smov %s2904_s9 }
 0x8b4   :  { %19 = sbr.rel (!%p17_p12) target bundleno = 13 (0xd), region = 110 }
 0x8bb   :  { %1624 = vsyncpa [#allocation4], 1 }
 0x8bc   :  { %1626 = vsyncpa [#allocation4 + $0x1], 1 }
 0x8bd   :  { %1627 = vsyncpa [#allocation7], 1 }
 0x8be   :  { %1628 = vsyncpa [#allocation5], 1 }
 0x8bf   :  { %1630 = vsyncpa [#allocation5 + $0x1], 1 }

// kernel: tpu_custom_call.1
= control target key start
LH: loop header
LB: loop body
LE: loop exit
PB: predicated region body
PF: predicated region fallthrough
CT: control target
= control target key end

     0   :  { %s2852_s0 = inlined_call_operand.hbm [shape: f32[2,16,128], index: 0, kind: input, shape index: {}]   ;;  %s2853_s1 = inlined_call_operand.hbm [shape: f32[128,1536], index: 1, kind: input, shape index: {}]   ;;  %s2854_s2 = inlined_call_operand.hbm [shape: f32[1,1536], index: 2, kind: input, shape index: {}]   ;;  %s2855_s3 = inlined_call_operand.hbm [shape: f32[2,16,512], index: 3, kind: output, shape index: {}]  }
   0x1   :  { %2865 = sst [smem:[#allocation17_spill]] %s2853_s1 }
   0x2   :  { %2866 = sst [smem:[#allocation18_spill]] %s2854_s2 }
   0x3   :  { %8 = vsyncpa [#allocation4], 0 }
   0x4   :  { %10 = vsyncpa [#allocation4 + $0x1], 0 }
   0x5   :  { %11 = vsyncpa [#allocation7], 0 }
   0x6   :  { %12 = vsyncpa [#allocation5], 0 }
   0x7   :  { %14 = vsyncpa [#allocation5 + $0x1], 0  ;;  %s2457_s12 = smov 0   ;;  %s2459_s13 = smov 0  }
   0x8   :  { %s2461_s14 = smov 0   ;;  %s2463_s15 = smov 0  }
   0x9   :  { %s2465_s16 = smov 0   ;;  %s2467_s17 = smov 0  }
   0xa   :  { %s2469_s18 = smov 0   ;;  %s2471_s19 = smov 0  }
   0xb   :  { %s2473_s20 = smov 0   ;;  %s2475_s21 = smov 0  }
   0xc   :  { %s2477_s22 = smov 0  }
   0xd LB: > { %2867 = sst [smem:[#allocation13_spill]] %s2379_s12  ;;  %s1720_s23 = sadd.s32 4294967295, %s2419_s22   ;;  %s2419_s22 = sphi %s2477_s22, %s20_s22   ;;  %s2415_s21 = sphi %s2475_s21, %s2898_s21   ;;  %s2411_s20 = sphi %s2473_s20, %s2890_s20   ;;  %s2407_s19 = sphi %s2471_s19, %s2897_s19   ;;  %s2403_s18 = sphi %s2469_s18, %s2889_s18   ;;  %s2399_s17 = sphi %s2467_s17, %s2896_s17   ;;  %s2395_s16 = sphi %s2465_s16, %s2895_s16   ;;  %s2391_s15 = sphi %s2463_s15, %s2894_s15   ;;  %s2387_s14 = sphi %s2461_s14, %s2893_s14   ;;  %s2383_s13 = sphi %s2459_s13, %s2892_s13   ;;  %s2379_s12 = sphi %s2457_s12, %s2891_s12  }
   0xe   : > { %2868 = sst [smem:[#allocation14_spill]] %s2411_s20  ;;  %s1721_s24 = sadd.s32 4294967294, %s2419_s22  }
   0xf   : > { %p52_p0 = scmp.ne.s32.totalorder %s2395_s16, %s2391_s15  ;;  %p2513_p1 = scmp.eq.s32.totalorder %s1720_s23, 0 }
  0x10   : > { %p119_p2 = scmp.ne.s32.totalorder %s2387_s14, %s2383_s13  ;;  %p120_p4 = scmp.eq.s32.totalorder %s1720_s23, 3 }
  0x11   : > { %s2869_s25 = scalar_select %p2513_p1, 1, 0 }
  0x12   : > { %p2522_p3 = por %p2513_p1, %p52_p0  ;;  %p125_p5 = scmp.ne.s32.totalorder %s2383_s13, %s2379_s12 }
  0x13   : > { %p126_p6 = scmp.eq.s32.totalorder %s1721_s24, 3  ;;  %p2528_p7 = por %p120_p4, %p119_p2 }
  0x14   : > { %s2870_s27 = scalar_select %p2522_p3, 1, 0 }
  0x15   : > { %s2871_s28 = scalar_select %p2528_p7, 1, 0 }
  0x16   : > { %p1722_p8 = scmp.ge.s32.totalorder %s2419_s22, 1  ;;  %p2533_p9 = por %p126_p6, %p125_p5 }
  0x17   : > { %p133_p10 = scmp.lt.s32.totalorder %s2419_s22, 5  ;;  %s2425_s4 = smov [#allocation6]  }
  0x18   : > { %s2872_s29 = scalar_select %p2533_p9, 1, 0 }
  0x19   : > { %p2538_p11 = pnand %p1722_p8, %p133_p10  ;;  %s145_s5 = sshll.u32 %s2425_s4, 4  ;;  %s146_s5 = int_to_ptr.vmem [resolvable:$true] %s145_s5 }
  0x1a   : > { %2873 = sst [smem:[#allocation15_spill]] %s2872_s29  ;;  %s2426_s7 = smov [#allocation8]  }
  0x1b   : > { %s2874_s30 = scalar_select %p2538_p11, 1, 0 }
  0x1c   : > { %p2060_p12 = pneg %p2538_p11  ;;  %s159_s8 = sshll.u32 %s2426_s7, 4  ;;  %s2550_s8 = int_to_ptr.vmem [resolvable:$true] %s159_s8 }
  0x1d   : > { %s2876_s1 = sld [smem:[#allocation17_spill]] }
  0x1e   : > { %p2546_p13 = pnand %p2060_p12, %p2513_p1 }
  0x20   : > { %p2205_p2 = pneg %p2546_p13 }
  0x23   : > { %s2203_s11 = scalar_lea.hbm %s2876_s1, 24576 }
  0x24   : > { %p2204_p0 = scmp.ne.s32.totalorder %s2876_s1, %s2203_s11  ;;  %p2210_p6 = scmp.lt.u32.totalorder %s2203_s11, %s2876_s1 }
  0x26   : > { %p2206_p4 = pnand %p2205_p2, %p2204_p0 }
  0x28   : > { %p2207_p5 = pneg %p2206_p4 }
  0x2a   : > { %p2212_p8 = pnand %p2210_p6, %p2207_p5 }
  0x2c   : > { %2215 = shalt.err (!%p2212_p8)
}
  0x2d   : > { %s2216_s7 = scalar_lea.vmem %s146_s5, 24576  ;;  %p2224_p7 = scmp.lt.s32.totalorder %s146_s5, %s146_s5 }
  0x2e   : > { %p2217_p10 = scmp.ne.s32.totalorder %s146_s5, %s2216_s7  ;;  %p2225_p1 = scmp.lt.s32.totalorder %s2216_s7, %s2216_s7 }
  0x30   : > { %p2219_p12 = pnand %p2217_p10, %p2205_p2  ;;  %p2226_p3 = por %p2225_p1, %p2224_p7 }
  0x32   : > { %p2220_p9 = pneg %p2219_p12 }
  0x34   : > { %p2227_p11 = pnand %p2226_p3, %p2220_p9 }
  0x36   : > { %2230 = shalt.err (!%p2227_p11)
}
  0x37   : > { %s2427_s9 = smov 1536   ;;  %s2428_s10 = smov 96  }
  0x38   : > { %2063 = dma.hbm_to_vmem [thread:$0]  (!%p2546_p13), %s2876_s1, 24576, %s146_s5, [#allocation7], %s2427_s9, %s2427_s9, %s2428_s10  }
  0x39   : > { %s2877_s2 = sld [smem:[#allocation18_spill]] }
  0x3f   : > { %s2231_s4 = scalar_lea.hbm %s2877_s2, 192 }
  0x40   : > { %p2232_p0 = scmp.ne.s32.totalorder %s2877_s2, %s2231_s4  ;;  %p2238_p7 = scmp.lt.u32.totalorder %s2231_s4, %s2877_s2 }
  0x42   : > { %p2234_p1 = pnand %p2232_p0, %p2205_p2 }
  0x44   : > { %p2235_p3 = pneg %p2234_p1 }
  0x46   : > { %p2240_p9 = pnand %p2238_p7, %p2235_p3 }
  0x48   : > { %2243 = shalt.err (!%p2240_p9)
}
  0x49   : > { %s2244_s5 = scalar_lea.vmem %s2550_s8, 192  ;;  %p2252_p6 = scmp.lt.s32.totalorder %s2550_s8, %s2550_s8 }
  0x4a   : > { %p2245_p11 = scmp.ne.s32.totalorder %s2550_s8, %s2244_s5  ;;  %p2253_p8 = scmp.lt.s32.totalorder %s2244_s5, %s2244_s5 }
  0x4c   : > { %p2247_p4 = pnand %p2245_p11, %p2205_p2  ;;  %p2254_p10 = por %p2253_p8, %p2252_p6 }
  0x4e   : > { %p2248_p5 = pneg %p2247_p4 }
  0x50   : > { %p2255_p12 = pnand %p2254_p10, %p2248_p5 }
  0x52   : > { %2258 = shalt.err (!%p2255_p12)
}
  0x53   : > { %2066 = dma.hbm_to_vmem [thread:$0]  (!%p2546_p13), %s2877_s2, 192, %s2550_s8, [#allocation7]  }
  0x54   : > { %s29_s29 = sadd.s32 1, %s2411_s20  ;;  %s32_s9 = sadd.s32 1, %s2415_s21 }
  0x55   : > { %p30_p2 = scmp.ge.s32.totalorder %s29_s29, 2  ;;  %s39_s6 = sadd.s32 1, %s2399_s17 }
  0x56   : > { %p46_p0 = scmp.ne.s32.totalorder %s2399_s17, %s2395_s16  ;;  %p47_p1 = scmp.eq.s32.totalorder %s2419_s22, 0 }
  0x57   : > { %s2900_s29 = smov (%p30_p2, %s29_s29), 0  ;;  %s2902_s9 = smov (!%p30_p2, %s32_s9), %s2415_s21 }
  0x58   : > { %2878 = sst [smem:[#allocation16_spill]] %s2900_s29  ;;  %p2608_p3 = por %p47_p1, %p46_p0 }
  0x59   : > { %s105_s11 = ssub.s32 %s2411_s20, %s2900_s29  ;;  %p34_p13 = scmp.ge.s32.totalorder %s2902_s9, 2 }
  0x5a   : > { %p2077_p7 = scmp.lt.s32.totalorder %s2419_s22, 4  ;;  %s170_s8 = sand.u32 1, %s2399_s17  }
  0x5b   : > { %s1749_s15 = sshll.u32 %s2415_s21, 8  ;;  %s2904_s9 = smov (%p34_p13, %s2902_s9), 0 }
  0x5c   : > { %s1726_s23 = sshll.u32 %s170_s8, 4  ;;  %s36_s24 = ssub.s32 %s2415_s21, %s2904_s9 }
  0x5d   : > { %p37_p9 = scmp.eq.s32.totalorder %s36_s24, 0  ;;  %s106_s4 = sor.u32 %s105_s11, %s36_s24 }
  0x5e   : > { %p107_p11 = scmp.eq.s32.totalorder %s106_s4, 0  ;;  %s2624_s12 = scalar_lea.hbm %s2852_s0, %s1749_s15 }
  0x5f   : > { %s2627_s26 = scalar_select %p37_p9, %s2399_s17, %s39_s6  }
  0x60   : > { %s2880_s1 = sadd.s32 1, %s2387_s14  ;;  %s174_s29 = scalar_lea.vmem [#allocation3], %s1726_s23 }
  0x61   : > { %s2632_s2 = scalar_select %p107_p11, %s2387_s14, %s2880_s1  }
  0x62   : > { %s181_s20 = sshll.u32 %s174_s29, 4  ;;  %p2638_p4 = pnand %p2077_p7, %p2608_p3  ;;  %s2642_s20 = int_to_ptr.vmem [resolvable:$true] %s181_s20 }
  0x63   : > { %s2644_s15 = scalar_lea.sflag [#allocation4], %s170_s8  ;;  %s2259_s6 = scalar_lea.hbm %s2624_s12, 256 }
  0x64   : > { %p2260_p5 = scmp.ne.s32.totalorder %s2624_s12, %s2259_s6  ;;  %p2261_p6 = pneg %p2638_p4 }
  0x65   : > { %s2264_s10 = scalar_lea.hbm %s2852_s0, 512  ;;  %p2265_p12 = scmp.lt.u32.totalorder %s2624_s12, %s2852_s0 }
  0x66   : > { %p2262_p8 = pnand %p2261_p6, %p2260_p5  ;;  %p2266_p2 = scmp.lt.u32.totalorder %s2264_s10, %s2259_s6 }
  0x67   : > { %p2268_p1 = scmp.lt.u32.totalorder %s2259_s6, %s2624_s12 }
  0x68   : > { %p2263_p10 = pneg %p2262_p8  ;;  %p2267_p0 = por %p2266_p2, %p2265_p12 }
  0x6a   : > { %p2269_p3 = por %p2268_p1, %p2267_p0 }
  0x6c   : > { %p2270_p13 = pnand %p2269_p3, %p2263_p10 }
  0x6e   : > { %2273 = shalt.err (!%p2270_p13)
}
  0x6f   : > { %s2274_s8 = scalar_lea.vmem %s2642_s20, 256  ;;  %s2429_s4 = smov [#allocation3]  }
  0x70   : > { %p2275_p7 = scmp.ne.s32.totalorder %s2642_s20, %s2274_s8  ;;  %s2279_s7 = sshll.u32 %s2429_s4, 4  ;;  %s2280_s7 = int_to_ptr.vmem [resolvable:$false] %s2279_s7 }
  0x71   : > { %s2281_s5 = scalar_lea.vmem %s2280_s7, 512  ;;  %p2282_p5 = scmp.lt.s32.totalorder %s2642_s20, %s2280_s7 }
  0x72   : > { %p2277_p9 = pnand %p2275_p7, %p2261_p6  ;;  %p2283_p8 = scmp.lt.s32.totalorder %s2281_s5, %s2274_s8 }
  0x74   : > { %p2278_p11 = pneg %p2277_p9  ;;  %p2284_p12 = por %p2283_p8, %p2282_p5 }
  0x76   : > { %p2285_p2 = pnand %p2284_p12, %p2278_p11 }
  0x78   : > { %2288 = shalt.err (!%p2285_p2)
}
  0x79   : > { %s2430_s6 = smov 128   ;;  %s2431_s1 = smov 8  }
  0x7a   : > { %2070 = dma.hbm_to_vmem [thread:$0]  (!%p2638_p4), %s2624_s12, 256, %s2642_s20, %s2644_s15, %s2430_s6, %s2430_s6, %s2431_s1  }
  0x7b   : > { %p2882_p6 = scmp.ne.s32.totalorder %s2874_s30, 0 }
  0x7c   : > { %s195_s29 = sand.u32 (!%p2882_p6), 1, %s2395_s16   ;;  %p2883_p10 = scmp.ne.s32.totalorder (!%p2882_p6), %s2870_s27, 0 }
  0x7d   : > { %193 = sbr.rel (%p2882_p6) target bundleno = 2211 (0x8a3), region = 32  ;;  %s2675_s10 = sshll.u32 (!%p2882_p6), %s195_s29, 4 }
  0x7e   : > { %s196_s23 = scalar_lea.sflag (!%p2882_p6), [#allocation4], %s195_s29  ;;  %s199_s24 = scalar_lea.vmem (!%p2882_p6), [#allocation3], %s2675_s10 }
  0x84   : > { %2366 = dma.done.wait (%p2883_p10), %s196_s23, 256  }
  0x85   : > { %2368 = vsyncadd (%p2883_p10), %s196_s23, 4294967040  ;;  %p2884_p0 = scmp.ne.s32.totalorder %s2869_s25, 0 }
  0x87   : > { %2370 = dma.done.wait (%p2884_p0), [#allocation7], 24768  }
  0x88   : > { %2372 = vsyncadd (%p2884_p0), [#allocation7], 4294942528  ;;  %s227_s20 = sand.u32 1, %s2383_s13   ;;  %p1734_p4 = scmp.ne.s32.totalorder %s2403_s18, 0 }
  0x89   : > { %s1733_s30 = sshll.u32 %s227_s20, 5  ;;  %s2692_s11 = smov (!%p1734_p4), 0  }
  0x8a   : > { %s2689_s12 = scalar_lea.vmem [#allocation9], %s1733_s30  ;;  %233 = sbr.rel (%p1734_p4) target bundleno = 462 (0x1ce), region = 48 }
  0x91 LB: >> { %v244_v0 = vld [vmem:[#allocation6 + $0x8] sm:$0xff]  ;;  %v246_v2 = vld [vmem:[#allocation6 + $0x18] sm:$0xff]  ;;  %v243_v5 = vld [vmem:[#allocation6] sm:$0xff]  ;;  %v2432_v7 = vmov 0.0   ;;  %s1735_s25 = sshll.u32 %s2423_s11, 3  ;;  %s239_s11 = sadd.s32 1, %s2423_s11   ;;  %s2423_s11 = sphi %s2692_s11, %s239_s11  }
  0x92   : >> { %v256_v1 = vld [vmem:[#allocation6 + $0x68] sm:$0xff]  ;;  %v258_v4 = vld [vmem:[#allocation6 + $0x78] sm:$0xff]  ;;  %v255_v6 = vld [vmem:[#allocation6 + $0x60] sm:$0xff]  ;;  %563 = vmatprep.mubr.f32.mxu0 %v2432_v7  ;;  %634 = vmatprep.mubr.f32.mxu1 %v2432_v7  ;;  %s241_s27 = scalar_lea.vmem %s199_s24, %s1735_s25 [#allocation3]  ;;  %s925_s15 = sshra.s32 %s1735_s25, 3 }
  0x93   : >> { %v1832_v3 = vpack.c.bf16 %v256_v1, %v244_v0  ;;  %v1864_v8 = vpack.c.bf16 %v258_v4, %v246_v2  ;;  %v1834_v9 = vpack.c.bf16 %v255_v6, %v243_v5  ;;  %v245_v10 = vld [vmem:[#allocation6 + $0x10] sm:$0xff]  ;;  %v268_v12 = vld [vmem:[#allocation6 + $0xc8] sm:$0xff]  ;;  %v270_v15 = vld [vmem:[#allocation6 + $0xd8] sm:$0xff]  ;;  %s1750_s8 = smul.u32 96, %s925_s15  ;;  %p236_p1 = scmp.ge.s32.totalorder %s239_s11, 2  }
  0x94   : >> { %v257_v11 = vld [vmem:[#allocation6 + $0x70] sm:$0xff]  ;;  %v280_v14 = vld [vmem:[#allocation6 + $0x128] sm:$0xff]  ;;  %v282_v16 = vld [vmem:[#allocation6 + $0x138] sm:$0xff] }
  0x95   : >> { %1833 = vmatprep.subr.bf16.mxu0 %v1832_v3  ;;  %v1866_v13 = vpack.c.bf16 %v257_v11, %v245_v10  ;;  %1865 = vmatprep.subr.bf16.mxu1 %v1864_v8  ;;  %v1836_v17 = vpack.c.bf16 %v280_v14, %v268_v12  ;;  %v1868_v18 = vpack.c.bf16 %v282_v16, %v270_v15  ;;  %v267_v19 = vld [vmem:[#allocation6 + $0xc0] sm:$0xff]  ;;  %v269_v21 = vld [vmem:[#allocation6 + $0xd0] sm:$0xff]  ;;  %v292_v24 = vld [vmem:[#allocation6 + $0x188] sm:$0xff]  ;;  %s2718_s4 = scalar_lea.vmem [#allocation2], %s1750_s8 }
  0x96   : >> { %1835 = vmatpush1.bf16.msra.mxu0 %v1834_v9  ;;  %v279_v20 = vld [vmem:[#allocation6 + $0x120] sm:$0xff]  ;;  %v281_v23 = vld [vmem:[#allocation6 + $0x130] sm:$0xff]  ;;  %v304_v25 = vld [vmem:[#allocation6 + $0x1e8] sm:$0xff] }
  0x97   : >> { %1867 = vmatpush1.bf16.msra.mxu1 %v1866_v13  ;;  %v1838_v22 = vpack.c.bf16 %v279_v20, %v267_v19  ;;  %1837 = vmatprep.subr.bf16.mxu0 %v1836_v17  ;;  %v1870_v26 = vpack.c.bf16 %v281_v23, %v269_v21  ;;  %v1840_v27 = vpack.c.bf16 %v304_v25, %v292_v24  ;;  %v294_v28 = vld [vmem:[#allocation6 + $0x198] sm:$0xff]  ;;  %v291_v30 = vld [vmem:[#allocation6 + $0x180] sm:$0xff]  ;;  %v293_v33 = vld [vmem:[#allocation6 + $0x190] sm:$0xff] }
  0x98   : >> { %1869 = vmatprep.subr.bf16.mxu1 %v1868_v18  ;;  %v306_v29 = vld [vmem:[#allocation6 + $0x1f8] sm:$0xff]  ;;  %v303_v32 = vld [vmem:[#allocation6 + $0x1e0] sm:$0xff]  ;;  %v305_v34 = vld [vmem:[#allocation6 + $0x1f0] sm:$0xff] }
  0x99   : >> { %v1872_v31 = vpack.c.bf16 %v306_v29, %v294_v28  ;;  %v1842_v35 = vpack.c.bf16 %v303_v32, %v291_v30  ;;  %v316_v36 = vld [vmem:[#allocation6 + $0x248] sm:$0xff]  ;;  %v318_v38 = vld [vmem:[#allocation6 + $0x258] sm:$0xff]  ;;  %v1874_v39 = vpack.c.bf16 %v305_v34, %v293_v33  ;;  %v315_v42 = vld [vmem:[#allocation6 + $0x240] sm:$0xff] }
  0x9a   : >> { %1839 = vmatpush1.bf16.msra.mxu0 %v1838_v22  ;;  %v328_v37 = vld [vmem:[#allocation6 + $0x2a8] sm:$0xff]  ;;  %v330_v41 = vld [vmem:[#allocation6 + $0x2b8] sm:$0xff]  ;;  %v327_v43 = vld [vmem:[#allocation6 + $0x2a0] sm:$0xff] }
  0x9b   : >> { %1871 = vmatpush1.bf16.msra.mxu1 %v1870_v26  ;;  %1841 = vmatprep.subr.bf16.mxu0 %v1840_v27  ;;  %v1844_v40 = vpack.c.bf16 %v328_v37, %v316_v36  ;;  %v1876_v44 = vpack.c.bf16 %v330_v41, %v318_v38  ;;  %v317_v45 = vld [vmem:[#allocation6 + $0x250] sm:$0xff]  ;;  %v340_v47 = vld [vmem:[#allocation6 + $0x308] sm:$0xff]  ;;  %v342_v49 = vld [vmem:[#allocation6 + $0x318] sm:$0xff]  ;;  %v1846_v51 = vpack.c.bf16 %v327_v43, %v315_v42 }
  0x9c   : >> { %1873 = vmatprep.subr.bf16.mxu1 %v1872_v31  ;;  %v329_v46 = vld [vmem:[#allocation6 + $0x2b0] sm:$0xff]  ;;  %v352_v48 = vld [vmem:[#allocation6 + $0x368] sm:$0xff]  ;;  %v354_v50 = vld [vmem:[#allocation6 + $0x378] sm:$0xff] }
  0x9d   : >> { %v1878_v52 = vpack.c.bf16 %v329_v46, %v317_v45  ;;  %v1848_v53 = vpack.c.bf16 %v352_v48, %v340_v47  ;;  %v339_v54 = vld [vmem:[#allocation6 + $0x300] sm:$0xff]  ;;  %v341_v56 = vld [vmem:[#allocation6 + $0x310] sm:$0xff]  ;;  %v1880_v57 = vpack.c.bf16 %v354_v50, %v342_v49  ;;  %v364_v59 = vld [vmem:[#allocation6 + $0x3c8] sm:$0xff] }
  0x9e   : >> { %1843 = vmatpush1.bf16.msra.mxu0 %v1842_v35  ;;  %v351_v55 = vld [vmem:[#allocation6 + $0x360] sm:$0xff]  ;;  %v353_v58 = vld [vmem:[#allocation6 + $0x370] sm:$0xff]  ;;  %v376_v60 = vld [vmem:[#allocation6 + $0x428] sm:$0xff] }
  0x9f   : >> { %1875 = vmatpush1.bf16.msra.mxu1 %v1874_v39  ;;  %1845 = vmatprep.subr.bf16.mxu0 %v1844_v40  ;;  %v366_v61 = vld [vmem:[#allocation6 + $0x3d8] sm:$0xff]  ;;  %v1850_v63 = vpack.c.bf16 %v351_v55, %v339_v54  ;;  %v1882_v0 = vpack.c.bf16 %v353_v58, %v341_v56  ;;  %v1852_v1 = vpack.c.bf16 %v376_v60, %v364_v59  ;;  %v363_v2 = vld [vmem:[#allocation6 + $0x3c0] sm:$0xff]  ;;  %v365_v4 = vld [vmem:[#allocation6 + $0x3d0] sm:$0xff] }
  0xa0   : >> { %1877 = vmatprep.subr.bf16.mxu1 %v1876_v44  ;;  %v378_v62 = vld [vmem:[#allocation6 + $0x438] sm:$0xff]  ;;  %v375_v3 = vld [vmem:[#allocation6 + $0x420] sm:$0xff]  ;;  %v377_v6 = vld [vmem:[#allocation6 + $0x430] sm:$0xff] }
  0xa1   : >> { %v1884_v5 = vpack.c.bf16 %v378_v62, %v366_v61  ;;  %v388_v8 = vld [vmem:[#allocation6 + $0x488] sm:$0xff]  ;;  %v390_v10 = vld [vmem:[#allocation6 + $0x498] sm:$0xff]  ;;  %v1854_v12 = vpack.c.bf16 %v375_v3, %v363_v2  ;;  %v1886_v13 = vpack.c.bf16 %v377_v6, %v365_v4  ;;  %v387_v15 = vld [vmem:[#allocation6 + $0x480] sm:$0xff] }
  0xa2   : >> { %1847 = vmatpush1.bf16.msra.mxu0 %v1846_v51  ;;  %v400_v9 = vld [vmem:[#allocation6 + $0x4e8] sm:$0xff]  ;;  %v402_v11 = vld [vmem:[#allocation6 + $0x4f8] sm:$0xff]  ;;  %v399_v16 = vld [vmem:[#allocation6 + $0x4e0] sm:$0xff] }
  0xa3   : >> { %1879 = vmatpush1.bf16.msra.mxu1 %v1878_v52  ;;  %1849 = vmatprep.subr.bf16.mxu0 %v1848_v53  ;;  %v1856_v14 = vpack.c.bf16 %v400_v9, %v388_v8  ;;  %v389_v17 = vld [vmem:[#allocation6 + $0x490] sm:$0xff]  ;;  %v1888_v18 = vpack.c.bf16 %v402_v11, %v390_v10  ;;  %v412_v20 = vld [vmem:[#allocation6 + $0x548] sm:$0xff]  ;;  %v414_v22 = vld [vmem:[#allocation6 + $0x558] sm:$0xff]  ;;  %v1858_v24 = vpack.c.bf16 %v399_v16, %v387_v15 }
  0xa4   : >> { %1881 = vmatprep.subr.bf16.mxu1 %v1880_v57  ;;  %v401_v19 = vld [vmem:[#allocation6 + $0x4f0] sm:$0xff]  ;;  %v424_v21 = vld [vmem:[#allocation6 + $0x5a8] sm:$0xff]  ;;  %v426_v23 = vld [vmem:[#allocation6 + $0x5b8] sm:$0xff] }
  0xa5   : >> { %v1890_v25 = vpack.c.bf16 %v401_v19, %v389_v17  ;;  %v1860_v26 = vpack.c.bf16 %v424_v21, %v412_v20  ;;  %v411_v27 = vld [vmem:[#allocation6 + $0x540] sm:$0xff]  ;;  %v413_v29 = vld [vmem:[#allocation6 + $0x550] sm:$0xff]  ;;  %v1892_v30 = vpack.c.bf16 %v426_v23, %v414_v22  ;;  %v248_v32 = vld [vmem:[#allocation6 + $0x28] sm:$0xff] }
  0xa6   : >> { %1851 = vmatpush1.bf16.msra.mxu0 %v1850_v63  ;;  %v423_v28 = vld [vmem:[#allocation6 + $0x5a0] sm:$0xff]  ;;  %v425_v31 = vld [vmem:[#allocation6 + $0x5b0] sm:$0xff]  ;;  %v260_v33 = vld [vmem:[#allocation6 + $0x88] sm:$0xff] }
  0xa7   : >> { %1883 = vmatpush1.bf16.msra.mxu1 %v1882_v0  ;;  %1853 = vmatprep.subr.bf16.mxu0 %v1852_v1  ;;  %v250_v34 = vld [vmem:[#allocation6 + $0x38] sm:$0xff]  ;;  %v1862_v36 = vpack.c.bf16 %v423_v28, %v411_v27  ;;  %v1894_v37 = vpack.c.bf16 %v425_v31, %v413_v29  ;;  %v1896_v38 = vpack.c.bf16 %v260_v33, %v248_v32  ;;  %v247_v39 = vld [vmem:[#allocation6 + $0x20] sm:$0xff]  ;;  %v249_v41 = vld [vmem:[#allocation6 + $0x30] sm:$0xff] }
  0xa8   : >> { %1885 = vmatprep.subr.bf16.mxu1 %v1884_v5  ;;  %v262_v35 = vld [vmem:[#allocation6 + $0x98] sm:$0xff]  ;;  %v259_v40 = vld [vmem:[#allocation6 + $0x80] sm:$0xff]  ;;  %v261_v43 = vld [vmem:[#allocation6 + $0x90] sm:$0xff] }
  0xa9   : >> { %v1928_v42 = vpack.c.bf16 %v262_v35, %v250_v34  ;;  %v272_v44 = vld [vmem:[#allocation6 + $0xe8] sm:$0xff]  ;;  %v274_v46 = vld [vmem:[#allocation6 + $0xf8] sm:$0xff]  ;;  %v2704_v48 = vld [vmem:[%s241_s27] sm:$0xff]  ;;  %v1898_v49 = vpack.c.bf16 %v259_v40, %v247_v39  ;;  %v1930_v50 = vpack.c.bf16 %v261_v43, %v249_v41 }
  0xaa   : >> { %1855 = vmatpush1.bf16.msra.mxu0 %v1854_v12  ;;  %v284_v45 = vld [vmem:[#allocation6 + $0x148] sm:$0xff]  ;;  %v286_v47 = vld [vmem:[#allocation6 + $0x158] sm:$0xff]  ;;  %v271_v52 = vld [vmem:[#allocation6 + $0xe0] sm:$0xff] }
  0xab   : >> { %1887 = vmatpush1.bf16.msra.mxu1 %v1886_v13  ;;  %1857 = vmatprep.subr.bf16.mxu0 %v1856_v14  ;;  %v1900_v51 = vpack.c.bf16 %v284_v45, %v272_v44  ;;  %v283_v53 = vld [vmem:[#allocation6 + $0x140] sm:$0xff]  ;;  %v273_v54 = vld [vmem:[#allocation6 + $0xf0] sm:$0xff]  ;;  %v1932_v55 = vpack.c.bf16 %v286_v47, %v274_v46  ;;  %v296_v57 = vld [vmem:[#allocation6 + $0x1a8] sm:$0xff] }
  0xac   : >> { %1889 = vmatprep.subr.bf16.mxu1 %v1888_v18  ;;  %v285_v56 = vld [vmem:[#allocation6 + $0x150] sm:$0xff]  ;;  %v308_v58 = vld [vmem:[#allocation6 + $0x208] sm:$0xff]  ;;  %v298_v59 = vld [vmem:[#allocation6 + $0x1b8] sm:$0xff]  ;;  %v1902_v61 = vpack.c.bf16 %v283_v53, %v271_v52 }
  0xad   : >> { %v310_v60 = vld [vmem:[#allocation6 + $0x218] sm:$0xff]  ;;  %v1934_v62 = vpack.c.bf16 %v285_v56, %v273_v54  ;;  %v1904_v63 = vpack.c.bf16 %v308_v58, %v296_v57  ;;  %v295_v0 = vld [vmem:[#allocation6 + $0x1a0] sm:$0xff]  ;;  %v297_v2 = vld [vmem:[#allocation6 + $0x1b0] sm:$0xff] }
  0xae   : >> { %1859 = vmatpush1.bf16.msra.mxu0 %v1858_v24  ;;  %v307_v1 = vld [vmem:[#allocation6 + $0x200] sm:$0xff]  ;;  %v1936_v3 = vpack.c.bf16 %v310_v60, %v298_v59  ;;  %v309_v4 = vld [vmem:[#allocation6 + $0x210] sm:$0xff]  ;;  %v320_v5 = vld [vmem:[#allocation6 + $0x268] sm:$0xff] }
  0xaf   : >> { %1891 = vmatpush1.bf16.msra.mxu1 %v1890_v25  ;;  %1861 = vmatprep.subr.bf16.mxu0 %v1860_v26  ;;  %v332_v6 = vld [vmem:[#allocation6 + $0x2c8] sm:$0xff]  ;;  %v322_v8 = vld [vmem:[#allocation6 + $0x278] sm:$0xff]  ;;  %v1906_v10 = vpack.c.bf16 %v307_v1, %v295_v0  ;;  %v1938_v11 = vpack.c.bf16 %v309_v4, %v297_v2  ;;  %v319_v13 = vld [vmem:[#allocation6 + $0x260] sm:$0xff] }
  0xb0   : >> { %1893 = vmatprep.subr.bf16.mxu1 %v1892_v30  ;;  %v334_v9 = vld [vmem:[#allocation6 + $0x2d8] sm:$0xff]  ;;  %v1908_v12 = vpack.c.bf16 %v332_v6, %v320_v5  ;;  %v331_v14 = vld [vmem:[#allocation6 + $0x2c0] sm:$0xff]  ;;  %v321_v15 = vld [vmem:[#allocation6 + $0x270] sm:$0xff] }
  0xb1   : >> { %v1940_v16 = vpack.c.bf16 %v334_v9, %v322_v8  ;;  %v333_v17 = vld [vmem:[#allocation6 + $0x2d0] sm:$0xff]  ;;  %v344_v18 = vld [vmem:[#allocation6 + $0x328] sm:$0xff]  ;;  %v346_v20 = vld [vmem:[#allocation6 + $0x338] sm:$0xff]  ;;  %v1910_v22 = vpack.c.bf16 %v331_v14, %v319_v13 }
  0xb2   : >> { %1863 = vmatpush1.bf16.msra.mxu0 %v1862_v36  ;;  %v356_v19 = vld [vmem:[#allocation6 + $0x388] sm:$0xff]  ;;  %v358_v21 = vld [vmem:[#allocation6 + $0x398] sm:$0xff]  ;;  %v1942_v23 = vpack.c.bf16 %v333_v17, %v321_v15  ;;  %v343_v25 = vld [vmem:[#allocation6 + $0x320] sm:$0xff] }
  0xb3   : >> { %1895 = vmatpush1.bf16.msra.mxu1 %v1894_v37  ;;  %1897 = vmatprep.subr.bf16.mxu0 %v1896_v38  ;;  %v1912_v24 = vpack.c.bf16 %v356_v19, %v344_v18  ;;  %v355_v26 = vld [vmem:[#allocation6 + $0x380] sm:$0xff]  ;;  %v345_v27 = vld [vmem:[#allocation6 + $0x330] sm:$0xff]  ;;  %v1944_v28 = vpack.c.bf16 %v358_v21, %v346_v20  ;;  %v368_v30 = vld [vmem:[#allocation6 + $0x3e8] sm:$0xff] }
  0xb4   : >> { %1929 = vmatprep.subr.bf16.mxu1 %v1928_v42  ;;  %v357_v29 = vld [vmem:[#allocation6 + $0x390] sm:$0xff]  ;;  %v380_v31 = vld [vmem:[#allocation6 + $0x448] sm:$0xff]  ;;  %v370_v32 = vld [vmem:[#allocation6 + $0x3f8] sm:$0xff]  ;;  %v1914_v34 = vpack.c.bf16 %v355_v26, %v343_v25 }
  0xb5   : >> { %564 = vmatmul.mubr.f32.vlgmr.msra.gmra.mrb[0].mxu0 %v2704_v48  ;;  %v382_v33 = vld [vmem:[#allocation6 + $0x458] sm:$0xff]  ;;  %v1946_v35 = vpack.c.bf16 %v357_v29, %v345_v27  ;;  %v1916_v36 = vpack.c.bf16 %v380_v31, %v368_v30  ;;  %v367_v37 = vld [vmem:[#allocation6 + $0x3e0] sm:$0xff]  ;;  %v369_v39 = vld [vmem:[#allocation6 + $0x3f0] sm:$0xff] }
  0xb6   : >> { %635 = vmatmul.mubr.f32.vlgmr.msra.gmra.mrb[0].mxu1 %v2704_v48  ;;  %1899 = vmatpush1.bf16.msra.mxu0 %v1898_v49  ;;  %v379_v38 = vld [vmem:[#allocation6 + $0x440] sm:$0xff]  ;;  %v1948_v40 = vpack.c.bf16 %v382_v33, %v370_v32  ;;  %v381_v41 = vld [vmem:[#allocation6 + $0x450] sm:$0xff]  ;;  %v392_v42 = vld [vmem:[#allocation6 + $0x4a8] sm:$0xff] }
  0xb7   : >> { %1931 = vmatpush1.bf16.msra.mxu1 %v1930_v50  ;;  %1901 = vmatprep.subr.bf16.mxu0 %v1900_v51  ;;  %v404_v43 = vld [vmem:[#allocation6 + $0x508] sm:$0xff]  ;;  %v394_v44 = vld [vmem:[#allocation6 + $0x4b8] sm:$0xff]  ;;  %v1918_v46 = vpack.c.bf16 %v379_v38, %v367_v37  ;;  %v1950_v47 = vpack.c.bf16 %v381_v41, %v369_v39  ;;  %v391_v50 = vld [vmem:[#allocation6 + $0x4a0] sm:$0xff] }
  0xb8   : >> { %1933 = vmatprep.subr.bf16.mxu1 %v1932_v55  ;;  %705 = vmatprep.mubr.f32.mxu0 %v2432_v7  ;;  %v406_v45 = vld [vmem:[#allocation6 + $0x518] sm:$0xff]  ;;  %v1920_v49 = vpack.c.bf16 %v404_v43, %v392_v42  ;;  %v403_v51 = vld [vmem:[#allocation6 + $0x500] sm:$0xff]  ;;  %v393_v52 = vld [vmem:[#allocation6 + $0x4b0] sm:$0xff] }
  0xb9   : >> { %776 = vmatprep.mubr.f32.mxu1 %v2432_v7  ;;  %v1952_v53 = vpack.c.bf16 %v406_v45, %v394_v44  ;;  %v405_v54 = vld [vmem:[#allocation6 + $0x510] sm:$0xff]  ;;  %v416_v55 = vld [vmem:[#allocation6 + $0x568] sm:$0xff]  ;;  %v418_v57 = vld [vmem:[#allocation6 + $0x578] sm:$0xff]  ;;  %v1922_v59 = vpack.c.bf16 %v403_v51, %v391_v50 }
  0xba   : >> { %1903 = vmatpush1.bf16.msra.mxu0 %v1902_v61  ;;  %v428_v56 = vld [vmem:[#allocation6 + $0x5c8] sm:$0xff]  ;;  %v430_v58 = vld [vmem:[#allocation6 + $0x5d8] sm:$0xff]  ;;  %v1954_v60 = vpack.c.bf16 %v405_v54, %v393_v52  ;;  %v417_v0 = vld [vmem:[#allocation6 + $0x570] sm:$0xff] }
  0xbb   : >> { %1935 = vmatpush1.bf16.msra.mxu1 %v1934_v62  ;;  %1905 = vmatprep.subr.bf16.mxu0 %v1904_v63  ;;  %v1924_v61 = vpack.c.bf16 %v428_v56, %v416_v55  ;;  %v415_v62 = vld [vmem:[#allocation6 + $0x560] sm:$0xff]  ;;  %v1956_v1 = vpack.c.bf16 %v430_v58, %v418_v57  ;;  %v429_v2 = vld [vmem:[#allocation6 + $0x5d0] sm:$0xff]  ;;  %v264_v4 = vld [vmem:[#allocation6 + $0xa8] sm:$0xff] }
  0xbc   : >> { %1937 = vmatprep.subr.bf16.mxu1 %v1936_v3  ;;  %v427_v63 = vld [vmem:[#allocation6 + $0x5c0] sm:$0xff]  ;;  %v252_v3 = vld [vmem:[#allocation6 + $0x48] sm:$0xff]  ;;  %v254_v5 = vld [vmem:[#allocation6 + $0x58] sm:$0xff]  ;;  %v1958_v9 = vpack.c.bf16 %v429_v2, %v417_v0 }
  0xbd   : >> { %v266_v6 = vld [vmem:[#allocation6 + $0xb8] sm:$0xff]  ;;  %v1926_v8 = vpack.c.bf16 %v427_v63, %v415_v62  ;;  %v253_v13 = vld [vmem:[#allocation6 + $0x50] sm:$0xff]  ;;  %v288_v17 = vld [vmem:[#allocation6 + $0x168] sm:$0xff] }
  0xbe   : >> { %1907 = vmatpush1.bf16.msra.mxu0 %v1906_v10  ;;  %v1960_v10 = vpack.c.bf16 %v264_v4, %v252_v3  ;;  %v1992_v14 = vpack.c.bf16 %v266_v6, %v254_v5  ;;  %v265_v15 = vld [vmem:[#allocation6 + $0xb0] sm:$0xff]  ;;  %v278_v18 = vld [vmem:[#allocation6 + $0x118] sm:$0xff]  ;;  %v312_v29 = vld [vmem:[#allocation6 + $0x228] sm:$0xff] }
  0xbf   : >> { %1939 = vmatpush1.bf16.msra.mxu1 %v1938_v11  ;;  %1909 = vmatprep.subr.bf16.mxu0 %v1908_v12  ;;  %v251_v11 = vld [vmem:[#allocation6 + $0x40] sm:$0xff]  ;;  %v290_v19 = vld [vmem:[#allocation6 + $0x178] sm:$0xff]  ;;  %v1994_v21 = vpack.c.bf16 %v265_v15, %v253_v13  ;;  %v277_v25 = vld [vmem:[#allocation6 + $0x110] sm:$0xff] }
  0xc0   : >> { %1941 = vmatprep.subr.bf16.mxu1 %v1940_v16  ;;  %v263_v12 = vld [vmem:[#allocation6 + $0xa0] sm:$0xff]  ;;  %v276_v16 = vld [vmem:[#allocation6 + $0x108] sm:$0xff]  ;;  %v1996_v26 = vpack.c.bf16 %v290_v19, %v278_v18  ;;  %v289_v27 = vld [vmem:[#allocation6 + $0x170] sm:$0xff] }
  0xc1   : >> { %v1962_v20 = vpack.c.bf16 %v263_v12, %v251_v11  ;;  %v302_v30 = vld [vmem:[#allocation6 + $0x1d8] sm:$0xff]  ;;  %v1998_v33 = vpack.c.bf16 %v289_v27, %v277_v25  ;;  %v301_v37 = vld [vmem:[#allocation6 + $0x1d0] sm:$0xff]  ;;  %v336_v41 = vld [vmem:[#allocation6 + $0x2e8] sm:$0xff] }
  0xc2   : >> { %1911 = vmatpush1.bf16.msra.mxu0 %v1910_v22  ;;  %v1964_v22 = vpack.c.bf16 %v288_v17, %v276_v16  ;;  %v314_v31 = vld [vmem:[#allocation6 + $0x238] sm:$0xff]  ;;  %v313_v39 = vld [vmem:[#allocation6 + $0x230] sm:$0xff]  ;;  %v360_v54 = vld [vmem:[#allocation6 + $0x3a8] sm:$0xff] }
  0xc3   : >> { %1943 = vmatpush1.bf16.msra.mxu1 %v1942_v23  ;;  %1913 = vmatprep.subr.bf16.mxu0 %v1912_v24  ;;  %v275_v23 = vld [vmem:[#allocation6 + $0x100] sm:$0xff]  ;;  %v2000_v38 = vpack.c.bf16 %v314_v31, %v302_v30  ;;  %v326_v42 = vld [vmem:[#allocation6 + $0x298] sm:$0xff]  ;;  %v2002_v45 = vpack.c.bf16 %v313_v39, %v301_v37  ;;  %v325_v50 = vld [vmem:[#allocation6 + $0x290] sm:$0xff]  ;;  %v439_v39 = vlaneseq }
  0xc4   : >> { %1945 = vmatprep.subr.bf16.mxu1 %v1944_v28  ;;  %v287_v24 = vld [vmem:[#allocation6 + $0x160] sm:$0xff]  ;;  %v300_v28 = vld [vmem:[#allocation6 + $0x1c8] sm:$0xff]  ;;  %v338_v43 = vld [vmem:[#allocation6 + $0x2f8] sm:$0xff] }
  0xc5   : >> { %v1966_v32 = vpack.c.bf16 %v287_v24, %v275_v23  ;;  %v2004_v51 = vpack.c.bf16 %v338_v43, %v326_v42  ;;  %v337_v52 = vld [vmem:[#allocation6 + $0x2f0] sm:$0xff]  ;;  %v350_v55 = vld [vmem:[#allocation6 + $0x358] sm:$0xff]  ;;  %v372_v0 = vld [vmem:[#allocation6 + $0x408] sm:$0xff] }
  0xc6   : >> { %1915 = vmatpush1.bf16.msra.mxu0 %v1914_v34  ;;  %v1968_v34 = vpack.c.bf16 %v312_v29, %v300_v28  ;;  %v362_v56 = vld [vmem:[#allocation6 + $0x3b8] sm:$0xff]  ;;  %v361_v63 = vld [vmem:[#allocation6 + $0x3b0] sm:$0xff]  ;;  %v396_v13 = vld [vmem:[#allocation6 + $0x4c8] sm:$0xff] }
  0xc7   : >> { %1947 = vmatpush1.bf16.msra.mxu1 %v1946_v35  ;;  %1917 = vmatprep.subr.bf16.mxu0 %v1916_v36  ;;  %v299_v35 = vld [vmem:[#allocation6 + $0x1c0] sm:$0xff]  ;;  %v2008_v62 = vpack.c.bf16 %v362_v56, %v350_v55  ;;  %v374_v2 = vld [vmem:[#allocation6 + $0x418] sm:$0xff]  ;;  %v385_v12 = vld [vmem:[#allocation6 + $0x470] sm:$0xff] }
  0xc8   : >> { %1949 = vmatprep.subr.bf16.mxu1 %v1948_v40  ;;  %v311_v36 = vld [vmem:[#allocation6 + $0x220] sm:$0xff]  ;;  %v324_v40 = vld [vmem:[#allocation6 + $0x288] sm:$0xff]  ;;  %v386_v3 = vld [vmem:[#allocation6 + $0x478] sm:$0xff] }
  0xc9   : >> { %v1970_v44 = vpack.c.bf16 %v311_v36, %v299_v35  ;;  %v2012_v11 = vpack.c.bf16 %v386_v3, %v374_v2  ;;  %v398_v15 = vld [vmem:[#allocation6 + $0x4d8] sm:$0xff]  ;;  %v409_v24 = vld [vmem:[#allocation6 + $0x530] sm:$0xff]  ;;  %v420_v25 = vld [vmem:[#allocation6 + $0x588] sm:$0xff] }
  0xca   : >> { %1919 = vmatpush1.bf16.msra.mxu0 %v1918_v46  ;;  %v1972_v46 = vpack.c.bf16 %v336_v41, %v324_v40  ;;  %v410_v16 = vld [vmem:[#allocation6 + $0x538] sm:$0xff]  ;;  %v421_v35 = vld [vmem:[#allocation6 + $0x590] sm:$0xff]  ;;  %v440_v40 = vshrl.u32 %v439_v39, 7  ;;  %v435_v42 = vld [vmem:[#allocation8] sm:$0xff] }
  0xcb   : >> { %1951 = vmatpush1.bf16.msra.mxu1 %v1950_v47  ;;  %1921 = vmatprep.subr.bf16.mxu0 %v1920_v49  ;;  %v323_v47 = vld [vmem:[#allocation6 + $0x280] sm:$0xff]  ;;  %v2016_v23 = vpack.c.bf16 %v410_v16, %v398_v15  ;;  %v422_v27 = vld [vmem:[#allocation6 + $0x598] sm:$0xff]  ;;  %v433_v36 = vld [vmem:[#allocation6 + $0x5f0] sm:$0xff] }
  0xcc   : >> { %1953 = vmatprep.subr.bf16.mxu1 %v1952_v53  ;;  %v335_v49 = vld [vmem:[#allocation6 + $0x2e0] sm:$0xff]  ;;  %v348_v53 = vld [vmem:[#allocation6 + $0x348] sm:$0xff]  ;;  %v434_v28 = vld [vmem:[#allocation6 + $0x5f8] sm:$0xff]  ;;  %v441_v41 = vsub.s32 0, %v440_v40  ;;  %v449_v43 = vsub.s32 2, %v440_v40 }
  0xcd   : >> { %v1974_v57 = vpack.c.bf16 %v335_v49, %v323_v47  ;;  %v1976_v58 = vpack.c.bf16 %v360_v54, %v348_v53 }
  0xce   : >> { %1923 = vmatpush1.bf16.msra.mxu0 %v1922_v59  ;;  %v347_v59 = vld [vmem:[#allocation6 + $0x340] sm:$0xff]  ;;  %v450_v47 = vrot.slane %v435_v42, %v449_v43 }
  0xcf   : >> { %1955 = vmatpush1.bf16.msra.mxu1 %v1954_v60  ;;  %1925 = vmatprep.subr.bf16.mxu0 %v1924_v61  ;;  %v359_v60 = vld [vmem:[#allocation6 + $0x3a0] sm:$0xff]  ;;  %v349_v61 = vld [vmem:[#allocation6 + $0x350] sm:$0xff] }
  0xd0   : >> { %1957 = vmatprep.subr.bf16.mxu1 %v1956_v1  ;;  %v384_v1 = vld [vmem:[#allocation6 + $0x468] sm:$0xff]  ;;  %v1978_v4 = vpack.c.bf16 %v359_v60, %v347_v59  ;;  %v2010_v5 = vpack.c.bf16 %v361_v63, %v349_v61  ;;  %v461_v59 = vsub.s32 5, %v440_v40  ;;  %v469_v60 = vsub.s32 7, %v440_v40 }
  0xd1   : >> { %v1980_v6 = vpack.c.bf16 %v384_v1, %v372_v0 }
  0xd2   : >> { %1927 = vmatpush1.bf16.msra.mxu0 %v1926_v8  ;;  %v371_v8 = vld [vmem:[#allocation6 + $0x400] sm:$0xff]  ;;  %v462_v63 = vrot.slane %v435_v42, %v461_v59  ;;  %v470_v0 = vrot.slane %v435_v42, %v469_v60 }
  0xd3   : >> { %1959 = vmatpush1.bf16.msra.mxu1 %v1958_v9  ;;  %1961 = vmatprep.subr.bf16.mxu0 %v1960_v10  ;;  %v383_v9 = vld [vmem:[#allocation6 + $0x460] sm:$0xff]  ;;  %v373_v10 = vld [vmem:[#allocation6 + $0x410] sm:$0xff] }
  0xd4   : >> { %1993 = vmatprep.subr.bf16.mxu1 %v1992_v14  ;;  %v408_v14 = vld [vmem:[#allocation6 + $0x528] sm:$0xff]  ;;  %v1982_v17 = vpack.c.bf16 %v383_v9, %v371_v8  ;;  %v2014_v18 = vpack.c.bf16 %v385_v12, %v373_v10 }
  0xd5   : >> { %706 = vmatmul.mubr.f32.vlgmr.msra.gmra.mrb[2].mxu0 %v2704_v48  ;;  %v1984_v19 = vpack.c.bf16 %v408_v14, %v396_v13  ;;  %v436_v10 = vld [vmem:[#allocation8 + $0x8] sm:$0xf] }
  0xd6   : >> { %777 = vmatmul.mubr.f32.vlgmr.msra.gmra.mrb[2].mxu1 %v2704_v48  ;;  %1963 = vmatpush1.bf16.msra.mxu0 %v1962_v20  ;;  %v395_v20 = vld [vmem:[#allocation6 + $0x4c0] sm:$0xff]  ;;  %v482_v12 = vrot.slane %v436_v10, %v449_v43 }
  0xd7   : >> { %1995 = vmatpush1.bf16.msra.mxu1 %v1994_v21  ;;  %1965 = vmatprep.subr.bf16.mxu0 %v1964_v22  ;;  %v407_v21 = vld [vmem:[#allocation6 + $0x520] sm:$0xff]  ;;  %v397_v22 = vld [vmem:[#allocation6 + $0x4d0] sm:$0xff] }
  0xd8   : >> { %1997 = vmatprep.subr.bf16.mxu1 %v1996_v26  ;;  %847 = vmatprep.mubr.f32.mxu0 %v2432_v7  ;;  %v432_v26 = vld [vmem:[#allocation6 + $0x5e8] sm:$0xff]  ;;  %v1986_v29 = vpack.c.bf16 %v407_v21, %v395_v20  ;;  %v2018_v30 = vpack.c.bf16 %v409_v24, %v397_v22 }
  0xd9   : >> { %918 = vmatprep.mubr.f32.mxu1 %v2432_v7  ;;  %v2006_v7 = vpack.c.bf16 %v337_v52, %v325_v50  ;;  %v1988_v31 = vpack.c.bf16 %v432_v26, %v420_v25 }
  0xda   : >> { %1967 = vmatpush1.bf16.msra.mxu0 %v1966_v32  ;;  %v419_v32 = vld [vmem:[#allocation6 + $0x580] sm:$0xff] }
  0xdb   : >> { %1999 = vmatpush1.bf16.msra.mxu1 %v1998_v33  ;;  %1969 = vmatprep.subr.bf16.mxu0 %v1968_v34  ;;  %v431_v33 = vld [vmem:[#allocation6 + $0x5e0] sm:$0xff]  ;;  %v2020_v34 = vpack.c.bf16 %v434_v28, %v422_v27 }
  0xdc   : >> { %2001 = vmatprep.subr.bf16.mxu1 %v2000_v38  ;;  %v1990_v37 = vpack.c.bf16 %v431_v33, %v419_v32  ;;  %v2022_v38 = vpack.c.bf16 %v433_v36, %v421_v35 }
  0xde   : >> { %1971 = vmatpush1.bf16.msra.mxu0 %v1970_v44  ;;  %v445_v44 = vsub.s32 1, %v440_v40 }
  0xdf   : >> { %2003 = vmatpush1.bf16.msra.mxu1 %v2002_v45  ;;  %1973 = vmatprep.subr.bf16.mxu0 %v1972_v46  ;;  %v453_v45 = vsub.s32 3, %v440_v40  ;;  %v442_v46 = vrot.slane %v435_v42, %v441_v41 }
  0xe0   : >> { %2005 = vmatprep.subr.bf16.mxu1 %v2004_v51  ;;  %v446_v49 = vrot.slane %v435_v42, %v445_v44  ;;  %v478_v13 = vrot.slane %v436_v10, %v445_v44 }
  0xe1   : >> { %v454_v50 = vrot.slane %v435_v42, %v453_v45  ;;  %v486_v14 = vrot.slane %v436_v10, %v453_v45 }
  0xe2   : >> { %1975 = vmatpush1.bf16.msra.mxu0 %v1974_v57 }
  0xe3   : >> { %2007 = vmatpush1.bf16.msra.mxu1 %v2006_v7  ;;  %1977 = vmatprep.subr.bf16.mxu0 %v1976_v58  ;;  %v457_v7 = vsub.s32 4, %v440_v40  ;;  %v465_v58 = vsub.s32 6, %v440_v40 }
  0xe4   : >> { %2009 = vmatprep.subr.bf16.mxu1 %v2008_v62 }
  0xe5   : >> { %v458_v61 = vrot.slane %v435_v42, %v457_v7  ;;  %v466_v62 = vrot.slane %v435_v42, %v465_v58 }
  0xe6   : >> { %1979 = vmatpush1.bf16.msra.mxu0 %v1978_v4 }
  0xe7   : >> { %2011 = vmatpush1.bf16.msra.mxu1 %v2010_v5  ;;  %1981 = vmatprep.subr.bf16.mxu0 %v1980_v6 }
  0xe8   : >> { %2013 = vmatprep.subr.bf16.mxu1 %v2012_v11  ;;  %v474_v11 = vrot.slane %v436_v10, %v441_v41 }
  0xea   : >> { %1983 = vmatpush1.bf16.msra.mxu0 %v1982_v17 }
  0xeb   : >> { %2015 = vmatpush1.bf16.msra.mxu1 %v2014_v18  ;;  %1985 = vmatprep.subr.bf16.mxu0 %v1984_v19 }
  0xec   : >> { %2017 = vmatprep.subr.bf16.mxu1 %v2016_v23 }
  0xee   : >> { %1987 = vmatpush1.bf16.msra.mxu0 %v1986_v29 }
  0xef   : >> { %2019 = vmatpush1.bf16.msra.mxu1 %v2018_v30  ;;  %1989 = vmatprep.subr.bf16.mxu0 %v1988_v31 }
  0xf0   : >> { %2021 = vmatprep.subr.bf16.mxu1 %v2020_v34 }
  0xf2   : >> { %1991 = vmatpush1.bf16.msra.mxu0 %v1990_v37 }
  0xf3   : >> { %2023 = vmatpush1.bf16.msra.mxu1 %v2022_v38 }
  0xf5   : >> { %848 = vmatmul.mubr.f32.vlgmr.msra.gmra.mrb[4].mxu0 %v2704_v48 }
  0xf6   : >> { %919 = vmatmul.mubr.f32.vlgmr.msra.gmra.mrb[4].mxu1 %v2704_v48 }
 0x188   : >> { %v565_v51 = vpop.f32.mrb[0].mxu0 }
 0x189   : >> { %v566_v52 = vadd.f32 %v565_v51, %v442_v46  ;;  %v636_v53 = vpop.f32.mrb[0].mxu1  ;;  %v567_v54 = vpop.f32.mrb[1].mxu0 }
 0x18a   : >> { %v637_v55 = vadd.f32 %v636_v53, %v450_v47  ;;  %v568_v48 = vadd.f32 %v567_v54, %v446_v49  ;;  %v638_v56 = vpop.f32.mrb[1].mxu1 }
 0x18b   : >> { %930 = vst [vmem:[%s2718_s4] sm:$0xff] %v566_v52  ;;  %v639_v57 = vadd.f32 %v638_v56, %v454_v50 }
 0x18c   : >> { %932 = vst [vmem:[%s2718_s4 + $0x10] sm:$0xff] %v637_v55  ;;  %931 = vst [vmem:[%s2718_s4 + $0x8] sm:$0xff] %v568_v48 }
 0x18d   : >> { %933 = vst [vmem:[%s2718_s4 + $0x18] sm:$0xff] %v639_v57 }
 0x1a8   : >> { %v707_v1 = vpop.f32.mrb[2].mxu0 }
 0x1a9   : >> { %v708_v2 = vadd.f32 %v707_v1, %v458_v61  ;;  %v778_v3 = vpop.f32.mrb[2].mxu1  ;;  %v709_v4 = vpop.f32.mrb[3].mxu0 }
 0x1aa   : >> { %v779_v5 = vadd.f32 %v778_v3, %v466_v62  ;;  %v710_v6 = vadd.f32 %v709_v4, %v462_v63  ;;  %v780_v8 = vpop.f32.mrb[3].mxu1 }
 0x1ab   : >> { %934 = vst [vmem:[%s2718_s4 + $0x20] sm:$0xff] %v708_v2  ;;  %v781_v9 = vadd.f32 %v780_v8, %v470_v0 }
 0x1ac   : >> { %936 = vst [vmem:[%s2718_s4 + $0x30] sm:$0xff] %v779_v5  ;;  %935 = vst [vmem:[%s2718_s4 + $0x28] sm:$0xff] %v710_v6 }
 0x1ad   : >> { %937 = vst [vmem:[%s2718_s4 + $0x38] sm:$0xff] %v781_v9 }
 0x1c7   : > { %238 = sbr.rel (!%p236_p1) target bundleno = 145 (0x91), region = 99 }
 0x1c8   : >> { %v849_v15 = vpop.f32.mrb[4].mxu0 }
 0x1c9   : >> { %v850_v16 = vadd.f32 %v849_v15, %v474_v11  ;;  %v920_v17 = vpop.f32.mrb[4].mxu1  ;;  %v851_v18 = vpop.f32.mrb[5].mxu0 }
 0x1ca   : >> { %v921_v19 = vadd.f32 %v920_v17, %v482_v12  ;;  %v852_v20 = vadd.f32 %v851_v18, %v478_v13  ;;  %v922_v21 = vpop.f32.mrb[5].mxu1 }
 0x1cb   : >> { %938 = vst [vmem:[%s2718_s4 + $0x40] sm:$0xff] %v850_v16  ;;  %v923_v22 = vadd.f32 %v922_v21, %v486_v14 }
 0x1cc   : >> { %940 = vst [vmem:[%s2718_s4 + $0x50] sm:$0xff] %v921_v19  ;;  %939 = vst [vmem:[%s2718_s4 + $0x48] sm:$0xff] %v852_v20 }
 0x1cd   : >> { %941 = vst [vmem:[%s2718_s4 + $0x58] sm:$0xff] %v923_v22 }
 0x1ce PF: > { %s1737_s7 = sshll.u32 %s2403_s18, 3  ;;  %v2433_v25 = vmov 0.0|0.0   ;;  %vm2434_vm0 = vmmov 0   ;;  %v2435_v27 = vmov 0.0   ;;  %vm1023_vm1 = vcmask 130048   ;;  %s1744_s29 = sshll.u32 %s2403_s18, 2 }
 0x1cf   : > { %2024 = vmatprep.subr.bf16.mxu0 %v2433_v25  ;;  %1780 = vmatprep.mubr.msk.f32.mxu0 %vm2434_vm0, %v2435_v27  ;;  %s943_s5 = sshra.s32 %s1737_s7, 3  ;;  %s1745_s10 = sshll.u32 %s2407_s19, 3 }
 0x1d0   : > { %s1751_s6 = smul.u32 96, %s943_s5  ;;  %2027 = vmatprep.subr.bf16.mxu1 %v2433_v25  ;;  %1787 = vmatprep.mubr.msk.f32.mxu1 %vm2434_vm0, %v2435_v27  ;;  %s1602_s23 = sadd.s32 %s1745_s10, %s1744_s29 }
 0x1d1   : > { %s1746_s24 = sshll.u32 %s1602_s23, 7  ;;  %s1606_s30 = sshll.u32 %s2689_s12, 4  ;;  %s2789_s30 = int_to_ptr.vmem [resolvable:$true] %s1606_s30 }
 0x1d2   : > { %s2743_s1 = scalar_lea.vmem [#allocation2], %s1751_s6  ;;  %s2787_s27 = scalar_lea.hbm %s2855_s3, %s1746_s24 }
 0x1d3   : > { %s1590_s18 = scalar_lea.sflag [#allocation5], %s227_s20  ;;  %s2289_s19 = scalar_lea.vmem %s2789_s30, 512 }
 0x1d4   : > { %v949_v23 = vld [vmem:[#allocation2 + $0x20] sm:$0xff]  ;;  %v1110_v38 = vld [vmem:[#allocation2 + $0x28] sm:$0xff]  ;;  %v1270_v56 = vld [vmem:[#allocation2 + $0x30] sm:$0xff]  ;;  %p2290_p3 = scmp.ne.s32.totalorder %s2789_s30, %s2289_s19  ;;  %p2885_p13 = scmp.ne.s32.totalorder %s2871_s28, 0 }
 0x1d5   : > { %v950_v24 = vld [vmem:[#allocation2 + $0x80] sm:$0xff]  ;;  %v1111_v39 = vld [vmem:[#allocation2 + $0x88] sm:$0xff]  ;;  %v1271_v57 = vld [vmem:[#allocation2 + $0x90] sm:$0xff]  ;;  %s2436_s15 = smov [#allocation9]  }
 0x1d6   : > { %v2025_v26 = vpack.c.bf16 %v950_v24, %v949_v23  ;;  %v948_v28 = vld [vmem:[%s2743_s1] sm:$0xff]  ;;  %v2031_v40 = vpack.c.bf16 %v1111_v39, %v1110_v38  ;;  %v1109_v42 = vld [vmem:[%s2743_s1 + $0x8] sm:$0xff]  ;;  %v2037_v7 = vpack.c.bf16 %v1271_v57, %v1270_v56  ;;  %v1269_v61 = vld [vmem:[%s2743_s1 + $0x10] sm:$0xff]  ;;  %p2291_p7 = pnand %p2290_p3, %p2885_p13  ;;  %s2293_s8 = sshll.u32 %s2436_s15, 4  ;;  %s2294_s8 = int_to_ptr.vmem [resolvable:$false] %s2293_s8 }
 0x1d7   : > { %v951_v32 = vld [vmem:[#allocation2 + $0x40] sm:$0xff]  ;;  %v1112_v50 = vld [vmem:[#allocation2 + $0x48] sm:$0xff]  ;;  %v1272_v3 = vld [vmem:[#allocation2 + $0x50] sm:$0xff]  ;;  %s2295_s4 = scalar_lea.vmem %s2294_s8, 1024  ;;  %p2296_p11 = scmp.lt.s32.totalorder %s2789_s30, %s2294_s8 }
 0x1d8   : > { %2026 = vmatpush3.bf16.xpose.msra.mxu0 %v2025_v26  ;;  %v952_v33 = vld [vmem:[#allocation2 + $0xa0] sm:$0xff]  ;;  %v1113_v51 = vld [vmem:[#allocation2 + $0xa8] sm:$0xff]  ;;  %v1273_v4 = vld [vmem:[#allocation2 + $0xb0] sm:$0xff]  ;;  %p2292_p9 = pneg %p2291_p7  ;;  %p2297_p5 = scmp.lt.s32.totalorder %s2295_s4, %s2289_s19 }
 0x1d9   : > { %2033 = vmatprep.subr.bf16.mxu0 %v2433_v25  ;;  %v2028_v34 = vpack.c.bf16 %v952_v33, %v951_v32  ;;  %v2034_v52 = vpack.c.bf16 %v1113_v51, %v1112_v50  ;;  %v2040_v5 = vpack.c.bf16 %v1273_v4, %v1272_v3  ;;  %v1430_v10 = vld [vmem:[#allocation2 + $0x38] sm:$0xff] }
 0x1da   : > { %v1431_v11 = vld [vmem:[#allocation2 + $0x98] sm:$0xff]  ;;  %p2298_p8 = por %p2297_p5, %p2296_p11 }
 0x1db   : > { %2029 = vmatpush3.bf16.msra.mxu1 %v2028_v34  ;;  %v2043_v12 = vpack.c.bf16 %v1431_v11, %v1430_v10  ;;  %v1429_v15 = vld [vmem:[%s2743_s1 + $0x18] sm:$0xff] }
 0x1dc   : > { %2030 = vmatprep.subr.bf16.mxu1 %v2433_v25  ;;  %v1433_v26 = vld [vmem:[#allocation2 + $0xb8] sm:$0xff]  ;;  %p2299_p12 = pnand %p2298_p8, %p2292_p9 }
 0x1df   : > { %1781 = vmatmul.mubr.f32.vlgmr.msra.gmra.mrb[0].mxu0 %v948_v28 }
 0x1e0   : > { %1801 = vmatprep.mubr.msk.f32.mxu0 %vm2434_vm0, %v2435_v27  ;;  %2035 = vmatpush3.bf16.msra.mxu0 %v2034_v52 }
 0x1e1   : > { %2036 = vmatprep.subr.bf16.mxu0 %v2433_v25 }
 0x2b2   : > { %v1019_v29 = vpop.f32.mrb[0].mxu0 }
 0x2b3   : > { %v1782_v30 = vpop.f32.mrb[1].mxu0  ;;  %v1024_v31 = vsel %vm1023_vm1, %v1019_v29, -inf }
 0x2b4   : > { %1025 = vmax.xlane.f32.xlu0 %v1024_v31 }
 0x341   : > { %v1026_v35 = vpop.xlane.xlu0 %1025 }
 0x342   : > { %v1027_v36 = vsub.f32 %v1019_v29, %v1026_v35 }
 0x344   : > { %v1028_v37 = vmul.f32 1.442695, %v1027_v36 }
 0x346   : > { %2187 = vpow2.f32 %v1028_v37 }
 0x350   : > { %v2188_v41 = vpop.eup %2187 }
 0x351   : > { %1788 = vmatmul.mubr.msk.f32.vlgmr.msra.gmra.mrb[0].mxu1 %vm1023_vm1, %v2188_v41  ;;  %v1030_v49 = vsel %vm1023_vm1, %v2188_v41, 0.0 }
 0x352   : > { %2032 = vmatpush3.bf16.xpose.msra.mxu1 %v2031_v40  ;;  %1794 = vmatprep.mubr.msk.f32.mxu1 %vm2434_vm0, %v2435_v27 }
 0x353   : > { %2039 = vmatprep.subr.bf16.mxu1 %v2433_v25 }
 0x359   : > { %1795 = vmatmul.mubr.f32.vlgmr.msra.gmra.mrb[2].mxu1 %v1109_v42 }
 0x35a   : > { %1815 = vmatprep.mubr.msk.f32.mxu1 %vm2434_vm0, %v2435_v27  ;;  %2041 = vmatpush3.bf16.msra.mxu1 %v2040_v5 }
 0x35b   : > { %2042 = vmatprep.subr.bf16.mxu1 %v2433_v25 }
 0x424   : > { %v1102_v43 = vpop.f32.mrb[0].mxu1 }
 0x425   : > { %v1789_v44 = vpop.f32.mrb[1].mxu1 }
 0x42c   : > { %v1180_v45 = vpop.f32.mrb[2].mxu1 }
 0x42d   : > { %v1796_v46 = vpop.f32.mrb[3].mxu1  ;;  %v1184_v47 = vsel %vm1023_vm1, %v1180_v45, -inf }
 0x42e   : > { %1185 = vmax.xlane.f32.xlu0 %v1184_v47 }
 0x432   : > { %1031 = vadd.xlane.f32.xlu0 %v1030_v49 }
 0x4bb   : > { %v1186_v53 = vpop.xlane.xlu0 %1185 }
 0x4bc   : > { %v1187_v54 = vsub.f32 %v1180_v45, %v1186_v53 }
 0x4be   : > { %v1188_v55 = vmul.f32 1.442695, %v1187_v54 }
 0x4bf   : > { %v1032_v48 = vpop.xlane.xlu0 %1031 }
 0x4c0   : > { %2189 = vpow2.f32 %v1188_v55 }
 0x4c1   : > { %2191 = vrcp.f32 %v1032_v48 }
 0x4ca   : > { %v2190_v58 = vpop.eup %2189 }
 0x4cb   : > { %v2192_v59 = vpop.eup %2191  ;;  %1802 = vmatmul.mubr.msk.f32.vlgmr.msra.gmra.mrb[2].mxu0 %vm1023_vm1, %v2190_v58  ;;  %v1190_v24 = vsel %vm1023_vm1, %v2190_v58, 0.0 }
 0x4cc   : > { %v1107_v60 = vmul.f32 %v2192_v59, %v1102_v43  ;;  %2038 = vmatpush3.bf16.xpose.msra.mxu0 %v2037_v7  ;;  %1808 = vmatprep.mubr.msk.f32.mxu0 %vm2434_vm0, %v2435_v27 }
 0x4cd   : > { %2045 = vmatprep.subr.bf16.mxu0 %v2433_v25  ;;  %v1432_v25 = vld [vmem:[#allocation2 + $0x58] sm:$0xff] }
 0x4ce   : > { %1108 = vst [vmem:[%s2689_s12] sm:$0xff] %v1107_v60 }
 0x4d3   : > { %1809 = vmatmul.mubr.f32.vlgmr.msra.gmra.mrb[4].mxu0 %v1269_v61 }
 0x4d4   : > { %1829 = vmatprep.mubr.msk.f32.mxu0 %vm2434_vm0, %v2435_v27 }
 0x59e   : > { %v1262_v62 = vpop.f32.mrb[2].mxu0 }
 0x59f   : > { %v1803_v63 = vpop.f32.mrb[3].mxu0 }
 0x5a6   : > { %v1340_v0 = vpop.f32.mrb[4].mxu0 }
 0x5a7   : > { %v1810_v1 = vpop.f32.mrb[5].mxu0  ;;  %v1344_v2 = vsel %vm1023_vm1, %v1340_v0, -inf }
 0x5a8   : > { %1345 = vmax.xlane.f32.xlu1 %v1344_v2 }
 0x635   : > { %v1346_v6 = vpop.xlane.xlu1 %1345 }
 0x636   : > { %v1347_v8 = vsub.f32 %v1340_v0, %v1346_v6 }
 0x638   : > { %v1348_v9 = vmul.f32 1.442695, %v1347_v8 }
 0x63a   : > { %2193 = vpow2.f32 %v1348_v9 }
 0x644   : > { %v2194_v13 = vpop.eup %2193 }
 0x645   : > { %1816 = vmatmul.mubr.msk.f32.vlgmr.msra.gmra.mrb[4].mxu1 %vm1023_vm1, %v2194_v13  ;;  %v1350_v14 = vsel %vm1023_vm1, %v2194_v13, 0.0 }
 0x646   : > { %2044 = vmatpush3.bf16.xpose.msra.mxu1 %v2043_v12  ;;  %1351 = vadd.xlane.f32.xlu0 %v1350_v14 }
 0x647   : > { %1822 = vmatprep.mubr.msk.f32.mxu1 %vm2434_vm0, %v2435_v27  ;;  %v2046_v27 = vpack.c.bf16 %v1433_v26, %v1432_v25 }
 0x649   : > { %2047 = vmatpush3.bf16.msra.mxu0 %v2046_v27 }
 0x64d   : > { %1823 = vmatmul.mubr.f32.vlgmr.msra.gmra.mrb[6].mxu1 %v1429_v15 }
 0x6d3   : > { %v1352_v16 = vpop.xlane.xlu0 %1351 }
 0x6d4   : > { %2195 = vrcp.f32 %v1352_v16 }
 0x6de   : > { %v2196_v17 = vpop.eup %2195 }
 0x718   : > { %v1422_v18 = vpop.f32.mrb[4].mxu1 }
 0x719   : > { %v1427_v19 = vmul.f32 %v2196_v17, %v1422_v18  ;;  %v1817_v20 = vpop.f32.mrb[5].mxu1 }
 0x71b   : > { %1428 = vst [vmem:[%s2689_s12 + $0x10] sm:$0xff] %v1427_v19 }
 0x720   : > { %v1500_v21 = vpop.f32.mrb[6].mxu1 }
 0x721   : > { %v1824_v22 = vpop.f32.mrb[7].mxu1  ;;  %v1504_v23 = vsel %vm1023_vm1, %v1500_v21, -inf }
 0x722   : > { %1505 = vmax.xlane.f32.xlu1 %v1504_v23 }
 0x726   : > { %1191 = vadd.xlane.f32.xlu1 %v1190_v24 }
 0x7af   : > { %v1506_v28 = vpop.xlane.xlu1 %1505 }
 0x7b0   : > { %v1507_v29 = vsub.f32 %v1500_v21, %v1506_v28 }
 0x7b2   : > { %v1508_v30 = vmul.f32 1.442695, %v1507_v29 }
 0x7b3   : > { %v1192_v31 = vpop.xlane.xlu1 %1191 }
 0x7b4   : > { %2197 = vpow2.f32 %v1508_v30 }
 0x7b5   : > { %2199 = vrcp.f32 %v1192_v31 }
 0x7be   : > { %v2198_v32 = vpop.eup %2197 }
 0x7bf   : > { %v2200_v33 = vpop.eup %2199  ;;  %1830 = vmatmul.mubr.msk.f32.vlgmr.msra.gmra.mrb[6].mxu0 %vm1023_vm1, %v2198_v32  ;;  %v1510_v34 = vsel %vm1023_vm1, %v2198_v32, 0.0 }
 0x7c0   : > { %v1267_v35 = vmul.f32 %v2200_v33, %v1262_v62  ;;  %1511 = vadd.xlane.f32.xlu1 %v1510_v34 }
 0x7c2   : > { %1268 = vst [vmem:[%s2689_s12 + $0x8] sm:$0xff] %v1267_v35 }
 0x84d   : > { %v1512_v36 = vpop.xlane.xlu1 %1511 }
 0x84e   : > { %2201 = vrcp.f32 %v1512_v36 }
 0x858   : > { %v2202_v37 = vpop.eup %2201 }
 0x892   : > { %v1582_v38 = vpop.f32.mrb[6].mxu0 }
 0x893   : > { %v1587_v39 = vmul.f32 %v2202_v37, %v1582_v38  ;;  %v1831_v40 = vpop.f32.mrb[7].mxu0 }
 0x895   : > { %1588 = vst [vmem:[%s2689_s12 + $0x18] sm:$0xff] %v1587_v39 }
 0x896   : > { %2302 = shalt.err (!%p2299_p12)
}
 0x897   : > { %s2303_s20 = scalar_lea.hbm %s2787_s27, 512  ;;  %s2307_s5 = scalar_lea.hbm %s2855_s3, 2048 }
 0x898   : > { %p2304_p2 = scmp.ne.s32.totalorder %s2787_s27, %s2303_s20  ;;  %p2308_p0 = scmp.lt.u32.totalorder %s2787_s27, %s2855_s3 }
 0x899   : > { %p2309_p4 = scmp.lt.u32.totalorder %s2307_s5, %s2303_s20  ;;  %p2311_p3 = scmp.lt.u32.totalorder %s2303_s20, %s2787_s27 }
 0x89a   : > { %p2305_p6 = pnand %p2304_p2, %p2885_p13 }
 0x89b   : > { %p2310_p1 = por %p2309_p4, %p2308_p0 }
 0x89c   : > { %p2306_p10 = pneg %p2305_p6 }
 0x89d   : > { %p2312_p7 = por %p2311_p3, %p2310_p1 }
 0x89f   : > { %p2313_p9 = pnand %p2312_p7, %p2306_p10 }
 0x8a1   : > { %2316 = shalt.err (!%p2313_p9)
}
 0x8a2   : > { %2058 = dma.vmem_to_hbm [thread:$0]  (%p2885_p13), %s2789_s30, 512, %s2787_s27, %s1590_s18  }
 0x8a3 PF: > { %s2886_s29 = sld [smem:[#allocation13_spill]]  ;;  %s2887_s10 = sld [smem:[#allocation15_spill]] }
 0x8a4   : > { %p2080_p11 = scmp.ge.s32.totalorder %s2419_s22, 2 }
 0x8a9   : > { %s1618_s23 = sand.u32 1, %s2886_s29   ;;  %p2888_p5 = scmp.ne.s32.totalorder %s2887_s10, 0 }
 0x8aa   : > { %s1619_s24 = scalar_lea.sflag [#allocation5], %s1618_s23 }
 0x8ab   : > { %p2072_p8 = pnand %p2080_p11, %p2888_p5 }
 0x8ad   : > { %2374 = dma.done.wait (!%p2072_p8), %s1619_s24, 512  }
 0x8ae   : > { %2376 = vsyncadd (!%p2072_p8), %s1619_s24, 4294966784  ;;  %s20_s22 = sadd.s32 1, %s2419_s22   ;;  %s2889_s18 = sld [smem:[#allocation14_spill]] }
 0x8af   : > { %p17_p12 = scmp.ge.s32.totalorder %s20_s22, 6   ;;  %s2890_s20 = sld [smem:[#allocation16_spill]] }
 0x8b0   : > { %s2891_s12 = smov %s2383_s13  ;;  %s2892_s13 = smov %s2387_s14 }
 0x8b1   : > { %s2893_s14 = smov %s2632_s2  ;;  %s2894_s15 = smov %s2395_s16 }
 0x8b2   : > { %s2895_s16 = smov %s2399_s17  ;;  %s2896_s17 = smov %s2627_s26 }
 0x8b3   : > { %s2897_s19 = smov %s2415_s21  ;;  %s2898_s21 = smov %s2904_s9 }
 0x8b4   :  { %19 = sbr.rel (!%p17_p12) target bundleno = 13 (0xd), region = 110 }
 0x8bb   :  { %1624 = vsyncpa [#allocation4], 1 }
 0x8bc   :  { %1626 = vsyncpa [#allocation4 + $0x1], 1 }
 0x8bd   :  { %1627 = vsyncpa [#allocation7], 1 }
 0x8be   :  { %1628 = vsyncpa [#allocation5], 1 }
 0x8bf   :  { %1630 = vsyncpa [#allocation5 + $0x1], 1 }

</bundles_post_ra>
